<compile_context>
chip_gen: v7x
topology: tpu7x:2x2x1
jax: 0.10.0
libtpu: 0.0.40
codegen_flags: <defaults>
</compile_context>

<pallas_src>
import functools

import jax
import jax.numpy as jnp
from jax import lax
from jax.experimental import pallas as pl
from jax.experimental.pallas import tpu as pltpu


# ----------------------------------------------------------------------------
# Kernel
# ----------------------------------------------------------------------------
def _window_attn_kernel(x_ref, wqkv_ref, bqkv_ref, bm_ref, wproj_ref, bproj_ref,
                        out_ref, acc_ref, *, num_heads, scale):
    """One grid step = WB windows.

    x_ref    : (WB, N, C)     activations (compute dtype, bf16 or f32)
    wqkv_ref : (C, 3C)        fused QKV weight        (resident)
    bqkv_ref : (1, 3C)        QKV bias, f32           (resident)
    bm_ref   : (H*WB, N, N)   bias+mask, f32, g=h*WB+w(resident)
    wproj_ref: (C, C)         output-proj weight      (resident)
    bproj_ref: (1, C)         output-proj bias, f32   (resident)
    out_ref  : (WB, N, C)
    acc_ref  : VMEM scratch (WB*N, C), compute dtype (head-scatter buffer)
    """
    WB, N, C = x_ref.shape
    H = num_heads
    hd = C // H
    M = WB * N
    cdt = x_ref.dtype

    # ---- fused QKV projection on the MXU, f32 accumulation.
    x2 = x_ref[...].reshape(M, C)                       # leading-dim merge (no relayout)
    qkv = jnp.dot(x2, wqkv_ref[...], preferred_element_type=jnp.float32)
    qkv = qkv + bqkv_ref[...]                           # (M, 3C) f32

    # ---- gather per-head q/k/v into one (head, window) batch dim, g = h*WB+w.
    #      Each piece: 8-lane column slice + no-op leading-dim reshape, stacked
    #      along the cheap leading axis.
    def heads(col0, scl=None):
        parts = [qkv[:, col0 + h * hd: col0 + (h + 1) * hd].reshape(WB, N, hd)
                 for h in range(H)]
        y = jnp.concatenate(parts, axis=0)              # (H*WB, N, hd) f32
        if scl is not None:
            y = y * scl
        return y.astype(cdt)

    q = heads(0, scale)
    k = heads(C)
    v = heads(2 * C)

    # ---- attention: two dot_generals batched over (head, window).
    s = lax.dot_general(q, k, (((2,), (2,)), ((0,), (0,))),
                        preferred_element_type=jnp.float32)      # (G, N, N) f32
    s = s + bm_ref[...]                                          # rel-pos bias + mask
    s = s - jnp.max(s, axis=-1, keepdims=True)                   # stable softmax (f32)
    p = jnp.exp(s)
    p = p * pl.reciprocal(jnp.sum(p, axis=-1, keepdims=True), approx=True)

    o = lax.dot_general(p.astype(cdt), v, (((2,), (1,)), ((0,), (0,))),
                        preferred_element_type=jnp.float32)      # (G, N, hd) f32

    # ---- scatter heads back to (WB*N, C) in VMEM scratch (no minor-dim concat).
    for h in range(H):
        acc_ref[:, h * hd:(h + 1) * hd] = (
            o[h * WB:(h + 1) * WB].reshape(M, hd).astype(acc_ref.dtype))

    # ---- output projection.
    y = jnp.dot(acc_ref[...], wproj_ref[...],
                preferred_element_type=jnp.float32) + bproj_ref[...]
    out_ref[...] = y.reshape(WB, N, C).astype(out_ref.dtype)


# ----------------------------------------------------------------------------
# Wrapper
# ----------------------------------------------------------------------------
def _choose_window_batch(B_, nW, N, C, num_heads, itemsize, *,
                         max_windows=64, vmem_budget_bytes=12 << 20):
    """Windows per grid step: divides B_, multiple of nW (mask repeats cleanly),
    small per-step VMEM footprint (conservative for v7x's 64 MiB chip VMEM),
    and — when possible — at least 4 grid steps so v7x's two TensorCores and
    the software pipeline stay busy."""
    cands = [w for w in range(nW, B_ + 1, nW)
             if B_ % w == 0 and w <= max_windows]
    if not cands:
        cands = [nW]

    def vmem_ok(w):
        io = 2 * 2 * w * N * C * itemsize               # double-buffered x + out tiles
        resident = (4 * C * C) * itemsize + 16 * C      # W_qkv, W_proj, biases
        resident += num_heads * w * N * N * 4           # fused bias+mask (f32)
        scratch = w * N * C * itemsize                  # head-scatter scratch
        return io + resident + scratch <= vmem_budget_bytes

    fitting = [w for w in cands if vmem_ok(w)] or [cands[0]]
    for min_steps in (4, 2, 1):
        ok = [w for w in fitting if B_ // w >= min_steps]
        if ok:
            return max(ok)
    return max(fitting)


def window_attention(x, wqkv, bqkv, rel_pos_bias, mask, wproj, bproj, *,
                     num_heads, scale, compute_dtype=jnp.bfloat16,
                     window_batch=None):
    """x: (B_, N, C); mask: (nW, N, N) or None; rel_pos_bias: (H, N, N).

    Weights use the (in, out) convention: y = x @ W + b.
    compute_dtype=bf16 keeps the MXU bf16-native on v6e/v7x; all accumulation,
    softmax and bias/mask math stay in f32.  Use compute_dtype=jnp.float32 when
    full precision is required (e.g. v5e has no bf16 VPU path anyway).
    """
    B_, N, C = x.shape
    H = num_heads
    assert C % H == 0
    if mask is None:
        mask = jnp.zeros((1, N, N), jnp.float32)
    nW = mask.shape[0]
    assert B_ % nW == 0, "B_ must be a multiple of the number of windows"

    cdt = jnp.dtype(compute_dtype)
    WB = window_batch or _choose_window_batch(B_, nW, N, C, H, cdt.itemsize)
    assert B_ % WB == 0 and WB % nW == 0
    G = H * WB

    # Cast streamed / weight operands to the compute dtype; keep biases in f32.
    xk = x.astype(cdt)
    wqkv_k = wqkv.astype(cdt)
    wproj_k = wproj.astype(cdt)
    bqkv_k = bqkv.reshape(1, 3 * C).astype(jnp.float32)
    bproj_k = bproj.reshape(1, C).astype(jnp.float32)

    # Pre-fuse relative-position bias + shifted-window mask per (head, window in
    # block); resident in VMEM via a constant index map (no per-step mask DMA).
    # Window w of a block has global index step*WB + w; since WB % nW == 0 its
    # mask index is w % nW, which jnp.tile reproduces.
    mask_wb = jnp.tile(mask.astype(jnp.float32), (WB // nW, 1, 1))          # (WB, N, N)
    bm = rel_pos_bias.astype(jnp.float32)[:, None, :, :] + mask_wb[None]    # (H, WB, N, N)
    bm = bm.reshape(G, N, N)

    kernel = functools.partial(_window_attn_kernel, num_heads=H, scale=scale)

    grid_spec = pltpu.PrefetchScalarGridSpec(
        num_scalar_prefetch=0,
        grid=(B_ // WB,),
        in_specs=[
            pl.BlockSpec((WB, N, C), lambda b: (b, 0, 0)),     # x (streamed)
            pl.BlockSpec((C, 3 * C), lambda b: (0, 0)),        # W_qkv (resident)
            pl.BlockSpec((1, 3 * C), lambda b: (0, 0)),        # b_qkv (resident)
            pl.BlockSpec((G, N, N), lambda b: (0, 0, 0)),      # bias+mask (resident)
            pl.BlockSpec((C, C), lambda b: (0, 0)),            # W_proj (resident)
            pl.BlockSpec((1, C), lambda b: (0, 0)),            # b_proj (resident)
        ],
        out_specs=pl.BlockSpec((WB, N, C), lambda b: (b, 0, 0)),
        scratch_shapes=[pltpu.VMEM((WB * N, C), cdt)],
    )

    # Only raise the scoped-VMEM limit if a large config actually needs it
    # (keeps headroom on v7x where chip VMEM is 64 MiB vs 128 MiB on v5e/v6e).
    vmem_est = (4 * WB * N * C * cdt.itemsize
                + 4 * C * C * cdt.itemsize + 16 * C
                + G * N * N * 4
                + WB * N * C * cdt.itemsize)
    cp_kwargs = dict(dimension_semantics=("parallel",))
    if vmem_est > (24 << 20):
        cp_kwargs["vmem_limit_bytes"] = min(2 * vmem_est, 60 << 20)

    return pl.pallas_call(
        kernel,
        out_shape=jax.ShapeDtypeStruct((B_, N, C), x.dtype),
        grid_spec=grid_spec,
        compiler_params=pltpu.CompilerParams(**cp_kwargs),
    )(xk, wqkv_k, bqkv_k, bm, wproj_k, bproj_k)


# ----------------------------------------------------------------------------
# Parameter / buffer construction (mirrors the PyTorch __init__)
# ----------------------------------------------------------------------------
def build_relative_position_index(window_size):
    Wh, Ww = window_size
    coords_h = jnp.arange(Wh)
    coords_w = jnp.arange(Ww)
    coords = jnp.stack(jnp.meshgrid(coords_h, coords_w, indexing="ij"))   # (2,Wh,Ww)
    coords_flatten = coords.reshape(2, -1)                                # (2, N)
    rel = coords_flatten[:, :, None] - coords_flatten[:, None, :]         # (2, N, N)
    rel = rel.transpose(1, 2, 0)                                          # (N, N, 2)
    rel = rel.at[:, :, 0].add(Wh - 1)
    rel = rel.at[:, :, 1].add(Ww - 1)
    rel = rel.at[:, :, 0].multiply(2 * Ww - 1)
    return rel.sum(-1)                                                    # (N, N)


def init_params(key, dim, window_size, num_heads):
    Wh, Ww = window_size
    k0, k1, k2, k3, k4 = jax.random.split(key, 5)
    table_len = (2 * Wh - 1) * (2 * Ww - 1)
    rpb_table = 0.02 * jax.random.truncated_normal(
        k0, -2.0, 2.0, (table_len, num_heads), dtype=jnp.float32)
    wqkv = 0.05 * jax.random.normal(k1, (dim, 3 * dim), dtype=jnp.float32)
    bqkv = 0.05 * jax.random.normal(k2, (1, 3 * dim), dtype=jnp.float32)
    wproj = 0.05 * jax.random.normal(k3, (dim, dim), dtype=jnp.float32)
    bproj = 0.05 * jax.random.normal(k4, (1, dim), dtype=jnp.float32)
    return rpb_table, wqkv, bqkv, wproj, bproj


def relative_position_bias(rpb_table, rel_pos_index, window_size, num_heads):
    N = window_size[0] * window_size[1]
    bias = rpb_table[rel_pos_index.reshape(-1)].reshape(N, N, num_heads)
    return jnp.transpose(bias, (2, 0, 1)).astype(jnp.float32)             # (H, N, N)


# ----------------------------------------------------------------------------
# Pure-JAX reference (mirrors the PyTorch forward exactly)
# ----------------------------------------------------------------------------
def reference_forward(x, wqkv, bqkv, bias, mask, wproj, bproj,
                      *, num_heads, scale):
    B_, N, C = x.shape
    H, hd = num_heads, C // num_heads
    qkv = x @ wqkv + bqkv[0]
    q, k, v = jnp.split(qkv, 3, axis=-1)
    q = q.reshape(B_, N, H, hd).transpose(0, 2, 1, 3) * scale
    k = k.reshape(B_, N, H, hd).transpose(0, 2, 1, 3)
    v = v.reshape(B_, N, H, hd).transpose(0, 2, 1, 3)
    attn = q @ k.transpose(0, 1, 3, 2) + bias[None]
    nW = mask.shape[0]
    attn = attn.reshape(B_ // nW, nW, H, N, N) + mask[None, :, None]
    attn = attn.reshape(B_, H, N, N)
    attn = jax.nn.softmax(attn, axis=-1)
    out = (attn @ v).transpose(0, 2, 1, 3).reshape(B_, N, C)
    return out @ wproj + bproj[0]


if __name__ == "__main__":
    dim = 32
    window_size = (4, 4)
    num_heads = 4
    head_dim = dim // num_heads
    scale = head_dim ** (-0.5)
    N = window_size[0] * window_size[1]
    nW = 4          # windows per image
    B = 8           # images
    B_ = B * nW     # 32 windows total -> WB=8 per step, 4 parallel grid steps

    key = jax.random.PRNGKey(0)
    kx, km, kp = jax.random.split(key, 3)

    x = jax.random.normal(kx, (B_, N, dim), dtype=jnp.float32)

    # 0 / -100 style shifted-window mask (as used by Swin)
    mask_bits = jax.random.bernoulli(km, 0.3, (nW, N, N))
    mask = jnp.where(mask_bits, -100.0, 0.0).astype(jnp.float32)
    eye = jnp.eye(N, dtype=bool)[None]
    mask = jnp.where(eye, 0.0, mask)

    rpb_table, wqkv, bqkv, wproj, bproj = init_params(
        kp, dim, window_size, num_heads)
    rel_pos_index = build_relative_position_index(window_size)
    bias = relative_position_bias(rpb_table, rel_pos_index,
                                  window_size, num_heads)

    ref = reference_forward(x, wqkv, bqkv, bias, mask, wproj, bproj,
                            num_heads=num_heads, scale=scale)
    ref = jax.block_until_ready(ref)

    # f32 compute path: tight numerical check (also the v5e-friendly config).
    out_f32 = window_attention(x, wqkv, bqkv, bias, mask, wproj, bproj,
                               num_heads=num_heads, scale=scale,
                               compute_dtype=jnp.float32)
    out_f32 = jax.block_until_ready(out_f32)
    assert out_f32.shape == (B_, N, dim)
    err32 = float(jnp.max(jnp.abs(out_f32 - ref)))
    assert jnp.allclose(out_f32, ref, atol=2e-3, rtol=2e-3), err32

    # bf16 compute path: MXU-native on v6e/v7x, f32 accumulation + f32 softmax.
    out_bf16 = window_attention(x, wqkv, bqkv, bias, mask, wproj, bproj,
                                num_heads=num_heads, scale=scale,
                                compute_dtype=jnp.bfloat16)
    out_bf16 = jax.block_until_ready(out_bf16)
    err16 = float(jnp.max(jnp.abs(out_bf16 - ref)))
    assert jnp.allclose(out_bf16, ref, atol=6e-2, rtol=6e-2), err16

    print("KERNEL_OK")
</pallas_src>

<mosaic_0001>
module attributes {stable_mosaic.version = 11 : i64} {
  func.func @_window_attn_kernel(%arg0: i32, %arg1: memref<8x16x32xf32, #tpu.memory_space<vmem>>, %arg2: memref<32x96xf32, #tpu.memory_space<vmem>>, %arg3: memref<1x96xf32, #tpu.memory_space<vmem>>, %arg4: memref<32x16x16xf32, #tpu.memory_space<vmem>>, %arg5: memref<32x32xf32, #tpu.memory_space<vmem>>, %arg6: memref<1x32xf32, #tpu.memory_space<vmem>>, %arg7: memref<8x16x32xf32, #tpu.memory_space<vmem>>, %arg8: memref<128x32xf32, #tpu.memory_space<vmem>>) attributes {dimension_semantics = [#tpu.dimension_semantics<parallel>], iteration_bounds = array<i64: 4>, scalar_prefetch = 0 : i64, scratch_operands = 1 : i64, tpu.core_type = #tpu.core_type<tc>, window_params = [{transform_indices = @transform_0, window_bounds = array<i64: 8, 16, 32>}, {pipeline_mode = #tpu.pipeline_mode<synchronous>, transform_indices = @transform_1, window_bounds = array<i64: 32, 96>}, {pipeline_mode = #tpu.pipeline_mode<synchronous>, transform_indices = @transform_2, window_bounds = array<i64: 1, 96>}, {pipeline_mode = #tpu.pipeline_mode<synchronous>, transform_indices = @transform_3, window_bounds = array<i64: 32, 16, 16>}, {pipeline_mode = #tpu.pipeline_mode<synchronous>, transform_indices = @transform_4, window_bounds = array<i64: 32, 32>}, {pipeline_mode = #tpu.pipeline_mode<synchronous>, transform_indices = @transform_5, window_bounds = array<i64: 1, 32>}, {transform_indices = @transform_6, window_bounds = array<i64: 8, 16, 32>}]} {
    %c0 = arith.constant 0 : index
    %c0_0 = arith.constant 0 : index
    %c0_1 = arith.constant 0 : index
    %0 = vector.load %arg1[%c0, %c0_0, %c0_1] : memref<8x16x32xf32, #tpu.memory_space<vmem>>, vector<8x16x32xf32>
    %1 = vector.shape_cast %0 : vector<8x16x32xf32> to vector<128x32xf32>
    %c0_2 = arith.constant 0 : index
    %c0_3 = arith.constant 0 : index
    %2 = vector.load %arg2[%c0_2, %c0_3] : memref<32x96xf32, #tpu.memory_space<vmem>>, vector<32x96xf32>
    %cst = arith.constant dense<0.000000e+00> : vector<128x96xf32>
    %3 = tpu.matmul %1, %2, %cst {dimension_numbers = #tpu.dot_dimension_numbers<[1], [0], [0], [1], [0, 0, 1, 1], [], []>} : vector<128x32xf32>, vector<32x96xf32>, vector<128x96xf32> -> vector<128x96xf32>
    %c0_4 = arith.constant 0 : index
    %c0_5 = arith.constant 0 : index
    %4 = vector.load %arg3[%c0_4, %c0_5] : memref<1x96xf32, #tpu.memory_space<vmem>>, vector<1x96xf32>
    %5 = vector.broadcast %4 : vector<1x96xf32> to vector<128x96xf32>
    %6 = arith.addf %3, %5 : vector<128x96xf32>
    %7 = vector.extract_strided_slice %6 {offsets = [0, 0], sizes = [128, 8], strides = [1, 1]} : vector<128x96xf32> to vector<128x8xf32>
    %8 = vector.shape_cast %7 : vector<128x8xf32> to vector<8x16x8xf32>
    %9 = vector.extract_strided_slice %6 {offsets = [0, 8], sizes = [128, 8], strides = [1, 1]} : vector<128x96xf32> to vector<128x8xf32>
    %10 = vector.shape_cast %9 : vector<128x8xf32> to vector<8x16x8xf32>
    %11 = vector.extract_strided_slice %6 {offsets = [0, 16], sizes = [128, 8], strides = [1, 1]} : vector<128x96xf32> to vector<128x8xf32>
    %12 = vector.shape_cast %11 : vector<128x8xf32> to vector<8x16x8xf32>
    %13 = vector.extract_strided_slice %6 {offsets = [0, 24], sizes = [128, 8], strides = [1, 1]} : vector<128x96xf32> to vector<128x8xf32>
    %14 = vector.shape_cast %13 : vector<128x8xf32> to vector<8x16x8xf32>
    %15 = tpu.concatenate %8, %10, %12, %14 in 0 : vector<8x16x8xf32>, vector<8x16x8xf32>, vector<8x16x8xf32>, vector<8x16x8xf32> -> vector<32x16x8xf32>
    %cst_6 = arith.constant 0.353553385 : f32
    %16 = vector.broadcast %cst_6 : f32 to vector<32x16x8xf32>
    %17 = arith.mulf %15, %16 : vector<32x16x8xf32>
    %18 = vector.extract_strided_slice %6 {offsets = [0, 32], sizes = [128, 8], strides = [1, 1]} : vector<128x96xf32> to vector<128x8xf32>
    %19 = vector.shape_cast %18 : vector<128x8xf32> to vector<8x16x8xf32>
    %20 = vector.extract_strided_slice %6 {offsets = [0, 40], sizes = [128, 8], strides = [1, 1]} : vector<128x96xf32> to vector<128x8xf32>
    %21 = vector.shape_cast %20 : vector<128x8xf32> to vector<8x16x8xf32>
    %22 = vector.extract_strided_slice %6 {offsets = [0, 48], sizes = [128, 8], strides = [1, 1]} : vector<128x96xf32> to vector<128x8xf32>
    %23 = vector.shape_cast %22 : vector<128x8xf32> to vector<8x16x8xf32>
    %24 = vector.extract_strided_slice %6 {offsets = [0, 56], sizes = [128, 8], strides = [1, 1]} : vector<128x96xf32> to vector<128x8xf32>
    %25 = vector.shape_cast %24 : vector<128x8xf32> to vector<8x16x8xf32>
    %26 = tpu.concatenate %19, %21, %23, %25 in 0 : vector<8x16x8xf32>, vector<8x16x8xf32>, vector<8x16x8xf32>, vector<8x16x8xf32> -> vector<32x16x8xf32>
    %27 = vector.extract_strided_slice %6 {offsets = [0, 64], sizes = [128, 8], strides = [1, 1]} : vector<128x96xf32> to vector<128x8xf32>
    %28 = vector.shape_cast %27 : vector<128x8xf32> to vector<8x16x8xf32>
    %29 = vector.extract_strided_slice %6 {offsets = [0, 72], sizes = [128, 8], strides = [1, 1]} : vector<128x96xf32> to vector<128x8xf32>
    %30 = vector.shape_cast %29 : vector<128x8xf32> to vector<8x16x8xf32>
    %31 = vector.extract_strided_slice %6 {offsets = [0, 80], sizes = [128, 8], strides = [1, 1]} : vector<128x96xf32> to vector<128x8xf32>
    %32 = vector.shape_cast %31 : vector<128x8xf32> to vector<8x16x8xf32>
    %33 = vector.extract_strided_slice %6 {offsets = [0, 88], sizes = [128, 8], strides = [1, 1]} : vector<128x96xf32> to vector<128x8xf32>
    %34 = vector.shape_cast %33 : vector<128x8xf32> to vector<8x16x8xf32>
    %35 = tpu.concatenate %28, %30, %32, %34 in 0 : vector<8x16x8xf32>, vector<8x16x8xf32>, vector<8x16x8xf32>, vector<8x16x8xf32> -> vector<32x16x8xf32>
    %cst_7 = arith.constant dense<0.000000e+00> : vector<32x16x16xf32>
    %36 = tpu.matmul %17, %26, %cst_7 {dimension_numbers = #tpu.dot_dimension_numbers<[2], [2], [1], [1], [0, 0, 0, 1, 1, 1], [0], [0]>} : vector<32x16x8xf32>, vector<32x16x8xf32>, vector<32x16x16xf32> -> vector<32x16x16xf32>
    %c0_8 = arith.constant 0 : index
    %c0_9 = arith.constant 0 : index
    %c0_10 = arith.constant 0 : index
    %37 = vector.load %arg4[%c0_8, %c0_9, %c0_10] : memref<32x16x16xf32, #tpu.memory_space<vmem>>, vector<32x16x16xf32>
    %38 = arith.addf %36, %37 : vector<32x16x16xf32>
    %cst_11 = arith.constant dense<0xFF800000> : vector<32x16xf32>
    %39 = vector.multi_reduction <maximumf>, %38, %cst_11 [2] : vector<32x16x16xf32> to vector<32x16xf32>
    %40 = vector.shape_cast %39 : vector<32x16xf32> to vector<32x16x1xf32>
    %41 = vector.broadcast %40 : vector<32x16x1xf32> to vector<32x16x16xf32>
    %42 = arith.subf %38, %41 : vector<32x16x16xf32>
    %43 = math.exp %42 : vector<32x16x16xf32>
    %cst_12 = arith.constant dense<0.000000e+00> : vector<32x16xf32>
    %44 = vector.multi_reduction <add>, %43, %cst_12 [2] : vector<32x16x16xf32> to vector<32x16xf32>
    %45 = vector.shape_cast %44 : vector<32x16xf32> to vector<32x16x1xf32>
    %46 = tpu.reciprocal %45 {approx = true} : vector<32x16x1xf32> -> vector<32x16x1xf32>
    %47 = vector.broadcast %46 : vector<32x16x1xf32> to vector<32x16x16xf32>
    %48 = arith.mulf %43, %47 : vector<32x16x16xf32>
    %cst_13 = arith.constant dense<0.000000e+00> : vector<32x16x8xf32>
    %49 = tpu.matmul %48, %35, %cst_13 {dimension_numbers = #tpu.dot_dimension_numbers<[2], [1], [1], [2], [0, 0, 0, 1, 1, 2], [0], [0]>} : vector<32x16x16xf32>, vector<32x16x8xf32>, vector<32x16x8xf32> -> vector<32x16x8xf32>
    %50 = vector.extract_strided_slice %49 {offsets = [0, 0, 0], sizes = [8, 16, 8], strides = [1, 1, 1]} : vector<32x16x8xf32> to vector<8x16x8xf32>
    %51 = vector.shape_cast %50 : vector<8x16x8xf32> to vector<128x8xf32>
    %c0_14 = arith.constant 0 : index
    %c0_15 = arith.constant 0 : index
    %52 = vector.load %arg8[%c0_14, %c0_15] : memref<128x32xf32, #tpu.memory_space<vmem>>, vector<128x8xf32>
    tpu.vector_store %arg8[%c0_14, %c0_15], %51 {strides = array<i32>} : memref<128x32xf32, #tpu.memory_space<vmem>>, vector<128x8xf32>,
    %53 = vector.extract_strided_slice %49 {offsets = [8, 0, 0], sizes = [8, 16, 8], strides = [1, 1, 1]} : vector<32x16x8xf32> to vector<8x16x8xf32>
    %54 = vector.shape_cast %53 : vector<8x16x8xf32> to vector<128x8xf32>
    %c0_16 = arith.constant 0 : index
    %c8 = arith.constant 8 : index
    %55 = vector.load %arg8[%c0_16, %c8] : memref<128x32xf32, #tpu.memory_space<vmem>>, vector<128x8xf32>
    tpu.vector_store %arg8[%c0_16, %c8], %54 {strides = array<i32>} : memref<128x32xf32, #tpu.memory_space<vmem>>, vector<128x8xf32>,
    %56 = vector.extract_strided_slice %49 {offsets = [16, 0, 0], sizes = [8, 16, 8], strides = [1, 1, 1]} : vector<32x16x8xf32> to vector<8x16x8xf32>
    %57 = vector.shape_cast %56 : vector<8x16x8xf32> to vector<128x8xf32>
    %c0_17 = arith.constant 0 : index
    %c16 = arith.constant 16 : index
    %58 = vector.load %arg8[%c0_17, %c16] : memref<128x32xf32, #tpu.memory_space<vmem>>, vector<128x8xf32>
    tpu.vector_store %arg8[%c0_17, %c16], %57 {strides = array<i32>} : memref<128x32xf32, #tpu.memory_space<vmem>>, vector<128x8xf32>,
    %59 = vector.extract_strided_slice %49 {offsets = [24, 0, 0], sizes = [8, 16, 8], strides = [1, 1, 1]} : vector<32x16x8xf32> to vector<8x16x8xf32>
    %60 = vector.shape_cast %59 : vector<8x16x8xf32> to vector<128x8xf32>
    %c0_18 = arith.constant 0 : index
    %c24 = arith.constant 24 : index
    %61 = vector.load %arg8[%c0_18, %c24] : memref<128x32xf32, #tpu.memory_space<vmem>>, vector<128x8xf32>
    tpu.vector_store %arg8[%c0_18, %c24], %60 {strides = array<i32>} : memref<128x32xf32, #tpu.memory_space<vmem>>, vector<128x8xf32>,
    %c0_19 = arith.constant 0 : index
    %c0_20 = arith.constant 0 : index
    %62 = vector.load %arg8[%c0_19, %c0_20] : memref<128x32xf32, #tpu.memory_space<vmem>>, vector<128x32xf32>
    %c0_21 = arith.constant 0 : index
    %c0_22 = arith.constant 0 : index
    %63 = vector.load %arg5[%c0_21, %c0_22] : memref<32x32xf32, #tpu.memory_space<vmem>>, vector<32x32xf32>
    %cst_23 = arith.constant dense<0.000000e+00> : vector<128x32xf32>
    %64 = tpu.matmul %62, %63, %cst_23 {dimension_numbers = #tpu.dot_dimension_numbers<[1], [0], [0], [1], [0, 0, 1, 1], [], []>} : vector<128x32xf32>, vector<32x32xf32>, vector<128x32xf32> -> vector<128x32xf32>
    %c0_24 = arith.constant 0 : index
    %c0_25 = arith.constant 0 : index
    %65 = vector.load %arg6[%c0_24, %c0_25] : memref<1x32xf32, #tpu.memory_space<vmem>>, vector<1x32xf32>
    %66 = vector.broadcast %65 : vector<1x32xf32> to vector<128x32xf32>
    %67 = arith.addf %64, %66 : vector<128x32xf32>
    %68 = vector.shape_cast %67 : vector<128x32xf32> to vector<8x16x32xf32>
    %c0_26 = arith.constant 0 : index
    %c0_27 = arith.constant 0 : index
    %c0_28 = arith.constant 0 : index
    %69 = vector.load %arg7[%c0_26, %c0_27, %c0_28] : memref<8x16x32xf32, #tpu.memory_space<vmem>>, vector<8x16x32xf32>
    tpu.vector_store %arg7[%c0_26, %c0_27, %c0_28], %68 {strides = array<i32>} : memref<8x16x32xf32, #tpu.memory_space<vmem>>, vector<8x16x32xf32>,
    return
  }
  func.func @transform_0(%arg0: i32) -> (i32, i32, i32) {
    %c0_i32 = arith.constant 0 : i32
    %c0_i32_0 = arith.constant 0 : i32
    %c0_i32_1 = arith.constant 0 : i32
    return %arg0, %c0_i32, %c0_i32_0 : i32, i32, i32
  }
  func.func @transform_1(%arg0: i32) -> (i32, i32) {
    %c0_i32 = arith.constant 0 : i32
    %c0_i32_0 = arith.constant 0 : i32
    %c0_i32_1 = arith.constant 0 : i32
    return %c0_i32, %c0_i32_0 : i32, i32
  }
  func.func @transform_2(%arg0: i32) -> (i32, i32) {
    %c0_i32 = arith.constant 0 : i32
    %c0_i32_0 = arith.constant 0 : i32
    %c0_i32_1 = arith.constant 0 : i32
    return %c0_i32, %c0_i32_0 : i32, i32
  }
  func.func @transform_3(%arg0: i32) -> (i32, i32, i32) {
    %c0_i32 = arith.constant 0 : i32
    %c0_i32_0 = arith.constant 0 : i32
    %c0_i32_1 = arith.constant 0 : i32
    %c0_i32_2 = arith.constant 0 : i32
    return %c0_i32, %c0_i32_0, %c0_i32_1 : i32, i32, i32
  }
  func.func @transform_4(%arg0: i32) -> (i32, i32) {
    %c0_i32 = arith.constant 0 : i32
    %c0_i32_0 = arith.constant 0 : i32
    %c0_i32_1 = arith.constant 0 : i32
    return %c0_i32, %c0_i32_0 : i32, i32
  }
  func.func @transform_5(%arg0: i32) -> (i32, i32) {
    %c0_i32 = arith.constant 0 : i32
    %c0_i32_0 = arith.constant 0 : i32
    %c0_i32_1 = arith.constant 0 : i32
    return %c0_i32, %c0_i32_0 : i32, i32
  }
  func.func @transform_6(%arg0: i32) -> (i32, i32, i32) {
    %c0_i32 = arith.constant 0 : i32
    %c0_i32_0 = arith.constant 0 : i32
    %c0_i32_1 = arith.constant 0 : i32
    return %arg0, %c0_i32, %c0_i32_0 : i32, i32, i32
  }
}

</mosaic_0001>

<bundles_post_ra>
// kernel: tpu_custom_call.1
= control target key start
LH: loop header
LB: loop body
LE: loop exit
PB: predicated region body
PF: predicated region fallthrough
CT: control target
= control target key end

     0   :  { %11 = vsyncpa [#allocation4], 0  ;;  %s12004_s0 = inlined_call_operand.vmem [shape: f32[32,16,32], index: 0, kind: input, shape index: {}]   ;;  %s12005_s1 = inlined_call_operand.vmem [shape: f32[32,96], index: 1, kind: input, shape index: {}]   ;;  %s12006_s2 = inlined_call_operand.vmem [shape: f32[1,96], index: 2, kind: input, shape index: {}]   ;;  %s12007_s3 = inlined_call_operand.vmem [shape: f32[32,16,16], index: 3, kind: input, shape index: {}]   ;;  %s12008_s4 = inlined_call_operand.vmem [shape: f32[32,32], index: 4, kind: input, shape index: {}]   ;;  %s12009_s5 = inlined_call_operand.vmem [shape: f32[1,32], index: 5, kind: input, shape index: {}]   ;;  %s12010_s6 = inlined_call_operand.hbm [shape: f32[32,16,32], index: 6, kind: output, shape index: {}]  }
   0x1   :  { %13 = vsyncpa [#allocation4 + $0x1], 0  ;;  %s9799_s21 = smov 0   ;;  %s9801_s22 = smov 0  }
   0x2   :  { %s9803_s23 = smov 0   ;;  %s9805_s24 = smov 0  }
   0x3 LB: > { %s9820_s25 = sadd.s32 4294967295, %s9752_s24   ;;  %s7675_s26 = sadd.s32 4294967294, %s9752_s24   ;;  %s9752_s24 = sphi %s9805_s24, %s12186_s24   ;;  %s9748_s23 = sphi %s9803_s23, %s12185_s23   ;;  %s9744_s22 = sphi %s9801_s22, %s12184_s22   ;;  %s9740_s21 = sphi %s9799_s21, %s12183_s21  }
   0x4   : > { %s9824_s27 = sadd.s32 1, %s9752_s24   ;;  %s157_s28 = sadd.s32 1, %s9748_s23 }
   0x5   : > { %s154_s29 = ssub.s32 %s9752_s24, %s9824_s27  ;;  %p167_p0 = scmp.ne.s32.totalorder %s9748_s23, %s9744_s22 }
   0x6   : > { %p155_p1 = scmp.eq.s32.totalorder %s154_s29, 0  ;;  %p168_p2 = scmp.eq.s32.totalorder %s9820_s25, 3 }
   0x7   : > { %p173_p3 = scmp.ne.s32.totalorder %s9744_s22, %s9740_s21  ;;  %p174_p4 = scmp.eq.s32.totalorder %s7675_s26, 3 }
   0x8   : > { %s9835_s30 = scalar_select %p155_p1, %s9748_s23, %s157_s28  }
   0x9   : > { %p9837_p5 = por %p168_p2, %p167_p0  ;;  %p9841_p6 = por %p174_p4, %p173_p3 }
   0xa   : > { %p7678_p7 = scmp.ge.s32.totalorder %s9752_s24, 1  ;;  %p217_p8 = scmp.lt.s32.totalorder %s9752_s24, 5 }
   0xc   : > { %p218_p9 = pnand %p7678_p7, %p217_p8 }
   0xe   : > { %221 = sbr.rel (%p218_p9) target bundleno = 1916 (0x77c), region = 44 }
  0x15   : > { %v272_v0 = vld [vmem:[%s12005_s1] sm:$0xff]  ;;  %v273_v1 = vld [vmem:[%s12005_s1 + $0x8] sm:$0xff]  ;;  %v274_v2 = vld [vmem:[%s12005_s1 + $0x10] sm:$0xff]  ;;  %s7680_s15 = sshll.u32 %s9820_s25, 3  ;;  %vm283_vm0 = vcmask 261120   ;;  %s9754_s9 = smov 112  }
  0x16   : > { %v8726_v3 = vpack.c.bf16 %v273_v1, %v272_v0  ;;  %v275_v4 = vld [vmem:[%s12005_s1 + $0x18] sm:$0xff]  ;;  %p249_p10 = scmp.lt.s32.totalorder %s7680_s15, 31  ;;  %v9900_v22 = vld [vmem:[%s12006_s2] ss:$0 sm:$0xff]  ;;  %s9755_s10 = smov 120   ;;  %vm769_vm1 = vcmask 64512  }
  0x17   : > { %v8730_v5 = vpack.c.bf16 %v275_v4, %v274_v2  ;;  %s9756_s11 = smov 104   ;;  %s9757_s12 = smov 96   ;;  %vm10123_vm2 = vmpackc.low %vm769_vm1, %vm769_vm1  ;;  %vm3614_vm3 = vcmask 130048   ;;  %vm7183_vm4 = vcmask 130112   ;;  %vm7264_vm5 = vcmask 195712  }
  0x18   : > { %8727 = vmatprep.subr.bf16.mxu0 %v8726_v3  ;;  %9062 = vmatprep.subr.bf16.mxu1 %v8726_v3  ;;  %s12188_s15 = smov (!%p249_p10, %s7680_s15), 31  ;;  %s9758_s13 = smov 64   ;;  %vm7345_vm6 = vcmask 261312  }
  0x19   : > { %8729 = vmatpush3.bf16.msra.mxu0 %v8726_v3  ;;  %9064 = vmatpush3.bf16.msra.mxu1 %v8726_v3  ;;  %s7915_s18 = sshll.u32 %s12188_s15, 4  ;;  %s9760_s16 = smov 16  }
  0x1a   : > { %8731 = vmatprep.subr.bf16.mxu0 %v8730_v5  ;;  %9063 = vmatprep.subr.bf16.mxu1 %v8730_v5  ;;  %s9863_s26 = scalar_lea.vmem %s12004_s0, %s7915_s18  ;;  %s7917_s17 = sshll.u32 %s9820_s25, 11 }
  0x1b   : > { %v256_v6 = vld [vmem:[%s9863_s26] sm:$0xff]  ;;  %v257_v8 = vld [vmem:[%s9863_s26 + $0x8] sm:$0xff]  ;;  %v258_v10 = vld [vmem:[%s9863_s26 + $0x10] sm:$0xff]  ;;  %s9762_s29 = smov [#allocation3]  }
  0x1c   : > { %v264_v7 = vld [vmem:[%s9863_s26 + $0x40] sm:$0xff]  ;;  %v265_v9 = vld [vmem:[%s9863_s26 + $0x48] sm:$0xff]  ;;  %8222 = vmatprep.mubr.msk.f32.mxu0 %vm283_vm0, %v256_v6  ;;  %v266_v11 = vld [vmem:[%s9863_s26 + $0x50] sm:$0xff] }
  0x1d   : > { %8733 = vmatpush3.bf16.msra.mxu0 %v8730_v5  ;;  %9065 = vmatpush3.bf16.msra.mxu1 %v8730_v5  ;;  %v259_v12 = vld [vmem:[%s9863_s26 + $0x18] sm:$0xff]  ;;  %v260_v14 = vld [vmem:[%s9863_s26 + $0x20] sm:$0xff]  ;;  %v261_v16 = vld [vmem:[%s9863_s26 + $0x28] sm:$0xff] }
  0x1e   : > { %8234 = vmatprep.mubr.msk.f32.mxu1 %vm283_vm0, %v264_v7  ;;  %v267_v13 = vld [vmem:[%s9863_s26 + $0x58] sm:$0xff]  ;;  %v268_v15 = vld [vmem:[%s9863_s26 + $0x60] sm:$0xff]  ;;  %v269_v17 = vld [vmem:[%s9863_s26 + $0x68] sm:$0xff] }
  0x1f   : > { %v262_v18 = vld [vmem:[%s9863_s26 + $0x30] sm:$0xff]  ;;  %v263_v20 = vld [vmem:[%s9863_s26 + $0x38] sm:$0xff] }
  0x20   : > { %8223 = vmatmul.mubr.msk.f32.vlgmr.msra.gmra.mrb[0].mxu0 %vm283_vm0, %v257_v8  ;;  %8235 = vmatmul.mubr.msk.f32.vlgmr.msra.gmra.mrb[0].mxu1 %vm283_vm0, %v265_v9  ;;  %v270_v19 = vld [vmem:[%s9863_s26 + $0x70] sm:$0xff]  ;;  %v271_v21 = vld [vmem:[%s9863_s26 + $0x78] sm:$0xff]  ;;  %s11952_s26 = scalar_lea.hbm %s12010_s6, %s7917_s17 }
  0x21   : > { %8225 = vmatprep.mubr.msk.f32.mxu0 %vm283_vm0, %v258_v10  ;;  %8237 = vmatprep.mubr.msk.f32.mxu1 %vm283_vm0, %v266_v11 }
  0x24   : > { %8226 = vmatmul.mubr.msk.f32.gmra.mrb[2].mxu0 %vm283_vm0, %v259_v12  ;;  %8238 = vmatmul.mubr.msk.f32.gmra.mrb[2].mxu1 %vm283_vm0, %v267_v13 }
  0x25   : > { %8228 = vmatprep.mubr.msk.f32.mxu0 %vm283_vm0, %v260_v14  ;;  %8240 = vmatprep.mubr.msk.f32.mxu1 %vm283_vm0, %v268_v15 }
  0x28   : > { %8229 = vmatmul.mubr.msk.f32.gmra.mrb[4].mxu0 %vm283_vm0, %v261_v16  ;;  %8241 = vmatmul.mubr.msk.f32.gmra.mrb[4].mxu1 %vm283_vm0, %v269_v17 }
  0x29   : > { %8231 = vmatprep.mubr.msk.f32.mxu0 %vm283_vm0, %v262_v18  ;;  %8243 = vmatprep.mubr.msk.f32.mxu1 %vm283_vm0, %v270_v19 }
  0x2c   : > { %8232 = vmatmul.mubr.msk.f32.gmra.mrb[6].mxu0 %vm283_vm0, %v263_v20  ;;  %8244 = vmatmul.mubr.msk.f32.gmra.mrb[6].mxu1 %vm283_vm0, %v271_v21 }
  0xf3   : > { %v8224_v23 = vpop.f32.mrb[0].mxu0  ;;  %v8236_v24 = vpop.f32.mrb[0].mxu1 }
  0xf4   : > { %v9903_v25 = vadd.f32 %v8224_v23, %v9900_v22  ;;  %v9906_v26 = vadd.f32 %v8236_v24, %v9900_v22  ;;  %v398_v27 = vpop.f32.mrb[1].mxu0  ;;  %v438_v28 = vpop.f32.mrb[1].mxu1 }
  0xf5   : > { %v399_v29 = vadd.f32 %v9900_v22, %v398_v27  ;;  %v9910_v30 = vadd.f32 %v9900_v22, %v438_v28 }
  0xf6   : > { %559 = vrot.lane.b32.xlu1 %v9906_v26, %s9754_s9  ;;  %495 = vrot.lane.b32.xlu0 %v9903_v25, %s9755_s10 }
  0xf7   : > { %v637_v31 = vmul.f32 0.35355338, %v399_v29  ;;  %v645_v32 = vmul.f32 0.35355338, %v9910_v30  ;;  %v8227_v33 = vpop.f32.mrb[2].mxu0  ;;  %v9918_v34 = vpack.i.bf16 %v9903_v25, %v399_v29  ;;  %v8239_v35 = vpop.f32.mrb[2].mxu1  ;;  %v9119_v56 = vpack.i.bf16 %v9906_v26, %v9910_v30 }
  0xf8   : > { %v408_v36 = vpop.f32.mrb[3].mxu0  ;;  %v448_v37 = vpop.f32.mrb[3].mxu1  ;;  %v9923_v38 = vadd.f32 %v8227_v33, %v9900_v22  ;;  %v9981_v58 = vadd.f32 %v8239_v35, %v9900_v22 }
  0xf9   : > { %8250 = vmatprep.mubr.msk.f32.mxu1 %vm769_vm1, %v637_v31  ;;  %8278 = vmatprep.mubr.msk.f32.mxu0 %vm769_vm1, %v645_v32  ;;  %v9926_v39 = vadd.f32 %v9900_v22, %v408_v36  ;;  %v9974_v57 = vadd.f32 %v9900_v22, %v448_v37  ;;  %v646_v37 = vmul.f32 0.35355338, %v9906_v26 }
  0xfa   : > { %591 = vrot.lane.b32.xlu1 %v9903_v25, %s9756_s11  ;;  %511 = vrot.lane.b32.xlu0 %v9906_v26, %s9755_s10 }
  0xfb   : > { %v9934_v40 = vpack.i.bf16 %v9923_v38, %v9926_v39  ;;  %v8230_v41 = vpop.f32.mrb[4].mxu0  ;;  %v8242_v42 = vpop.f32.mrb[4].mxu1  ;;  %v9992_v59 = vpack.i.bf16 %v9981_v58, %v9974_v57  ;;  %v639_v32 = vmul.f32 0.35355338, %v9926_v39 }
  0xfc   : > { %v9937_v43 = vadd.f32 %v8230_v41, %v9900_v22  ;;  %v418_v44 = vpop.f32.mrb[5].mxu0  ;;  %v458_v45 = vpop.f32.mrb[5].mxu1  ;;  %v10007_v60 = vadd.f32 %v8242_v42, %v9900_v22 }
  0xfd   : > { %v9940_v46 = vadd.f32 %v9900_v22, %v418_v44  ;;  %v10010_v61 = vadd.f32 %v9900_v22, %v458_v45  ;;  %v640_v45 = vmul.f32 0.35355338, %v9923_v38 }
  0xfe   : > { %509 = vrot.lane.b32.xlu1 %v9910_v30, %s9755_s10  ;;  %543 = vrot.lane.b32.xlu0 %v9903_v25, %s9754_s9 }
  0xff   : > { %v9948_v47 = vpack.i.bf16 %v9937_v43, %v9940_v46  ;;  %v8233_v48 = vpop.f32.mrb[6].mxu0  ;;  %v8245_v49 = vpop.f32.mrb[6].mxu1  ;;  %v10030_v62 = vpack.i.bf16 %v10007_v60, %v10010_v61 }
 0x100   : > { %v9951_v50 = vadd.f32 %v8233_v48, %v9900_v22  ;;  %v9954_v51 = vadd.f32 %v8245_v49, %v9900_v22  ;;  %v428_v52 = vpop.f32.mrb[7].mxu0  ;;  %v468_v53 = vpop.f32.mrb[7].mxu1  ;;  %v641_v49 = vmul.f32 0.35355338, %v9940_v46 }
 0x101   : > { %v9957_v54 = vadd.f32 %v9900_v22, %v428_v52  ;;  %v9960_v55 = vadd.f32 %v9900_v22, %v468_v53 }
 0x102   : > { %541 = vrot.lane.b32.xlu1 %v399_v29, %s9754_s9  ;;  %493 = vrot.lane.b32.xlu0 %v399_v29, %s9755_s10 }
 0x103   : > { %v9164_v63 = vpack.i.bf16 %v9951_v50, %v9957_v54  ;;  %v10075_v0 = vpack.i.bf16 %v9954_v51, %v9960_v55 }
 0x106   : > { %499 = vrot.lane.b32.xlu1 %v9923_v38, %s9755_s10  ;;  %9115 = vrot.lane.b32.xlu0 %v9918_v34, %s9757_s12 }
 0x10a   : > { %497 = vrot.lane.b32.xlu1 %v9926_v39, %s9755_s10  ;;  %9120 = vrot.lane.b32.xlu0 %v9119_v56, %s9757_s12 }
 0x10e   : > { %513 = vrot.lane.b32.xlu1 %v9974_v57, %s9755_s10  ;;  %557 = vrot.lane.b32.xlu0 %v9910_v30, %s9754_s9 }
 0x112   : > { %9125 = vrot.lane.b32.xlu1 %v9934_v40, %s9757_s12  ;;  %589 = vrot.lane.b32.xlu0 %v399_v29, %s9756_s11  ;;  %v638_v29 = vmul.f32 0.35355338, %v9903_v25 }
 0x116   : > { %545 = vrot.lane.b32.xlu1 %v9926_v39, %s9754_s9  ;;  %515 = vrot.lane.b32.xlu0 %v9981_v58, %s9755_s10 }
 0x11a   : > { %9130 = vrot.lane.b32.xlu1 %v9992_v59, %s9757_s12  ;;  %547 = vrot.lane.b32.xlu0 %v9923_v38, %s9754_s9 }
 0x11e   : > { %561 = vrot.lane.b32.xlu1 %v9974_v57, %s9754_s9  ;;  %563 = vrot.lane.b32.xlu0 %v9981_v58, %s9754_s9 }
 0x122   : > { %593 = vrot.lane.b32.xlu1 %v9926_v39, %s9756_s11  ;;  %595 = vrot.lane.b32.xlu0 %v9923_v38, %s9756_s11  ;;  %v649_v39 = vmul.f32 0.35355338, %v10010_v61 }
 0x126   : > { %503 = vrot.lane.b32.xlu1 %v9937_v43, %s9755_s10  ;;  %501 = vrot.lane.b32.xlu0 %v9940_v46, %s9755_s10 }
 0x12a   : > { %519 = vrot.lane.b32.xlu1 %v10007_v60, %s9755_s10  ;;  %517 = vrot.lane.b32.xlu0 %v10010_v61, %s9755_s10 }
 0x12e   : > { %551 = vrot.lane.b32.xlu1 %v9937_v43, %s9754_s9  ;;  %9135 = vrot.lane.b32.xlu0 %v9948_v47, %s9757_s12 }
 0x132   : > { %567 = vrot.lane.b32.xlu1 %v10007_v60, %s9754_s9  ;;  %549 = vrot.lane.b32.xlu0 %v9940_v46, %s9754_s9 }
 0x136   : > { %599 = vrot.lane.b32.xlu1 %v9937_v43, %s9756_s11  ;;  %9140 = vrot.lane.b32.xlu0 %v10030_v62, %s9757_s12 }
 0x13a   : > { %507 = vrot.lane.b32.xlu1 %v9951_v50, %s9755_s10  ;;  %565 = vrot.lane.b32.xlu0 %v10010_v61, %s9754_s9 }
 0x13e   : > { %523 = vrot.lane.b32.xlu1 %v9954_v51, %s9755_s10  ;;  %597 = vrot.lane.b32.xlu0 %v9940_v46, %s9756_s11 }
 0x142   : > { %607 = vrot.lane.b32.xlu1 %v9906_v26, %s9756_s11  ;;  %555 = vrot.lane.b32.xlu0 %v9951_v50, %s9754_s9 }
 0x146   : > { %609 = vrot.lane.b32.xlu1 %v9974_v57, %s9756_s11  ;;  %571 = vrot.lane.b32.xlu0 %v9954_v51, %s9754_s9 }
 0x14a   : > { %615 = vrot.lane.b32.xlu1 %v10007_v60, %s9756_s11  ;;  %603 = vrot.lane.b32.xlu0 %v9951_v50, %s9756_s11 }
 0x14e   : > { %9145 = vrot.lane.b32.xlu1 %v9918_v34, %s9758_s13  ;;  %505 = vrot.lane.b32.xlu0 %v9957_v54, %s9755_s10 }
 0x152   : > { %9150 = vrot.lane.b32.xlu1 %v9934_v40, %s9758_s13  ;;  %605 = vrot.lane.b32.xlu0 %v9910_v30, %s9756_s11 }
 0x156   : > { %9165 = vrot.lane.b32.xlu1 %v9164_v63, %s9757_s12  ;;  %611 = vrot.lane.b32.xlu0 %v9981_v58, %s9756_s11 }
 0x15a   : > { %553 = vrot.lane.b32.xlu1 %v9957_v54, %s9754_s9  ;;  %613 = vrot.lane.b32.xlu0 %v10010_v61, %s9756_s11 }
 0x15e   : > { %9170 = vrot.lane.b32.xlu1 %v10075_v0, %s9757_s12  ;;  %521 = vrot.lane.b32.xlu0 %v9960_v55, %s9755_s10  ;;  %s9761_s10 = smov 24  }
 0x162   : > { %569 = vrot.lane.b32.xlu1 %v9960_v55, %s9754_s9  ;;  %619 = vrot.lane.b32.xlu0 %v9954_v51, %s9756_s11  ;;  %s9694_s9 = sshll.u32 %s9762_s29, 4  ;;  %s9695_s9 = int_to_ptr.vmem [resolvable:$false] %s9694_s9 }
 0x166   : > { %601 = vrot.lane.b32.xlu1 %v9957_v54, %s9756_s11  ;;  %9155 = vrot.lane.b32.xlu0 %v9948_v47, %s9758_s13 }
 0x168   : > { %v10089_v1 = vpop.permute.xlu1 %559  ;;  %v10091_v2 = vpop.permute.xlu0 %495 }
 0x16a   : > { %617 = vrot.lane.b32.xlu1 %v9960_v55, %s9756_s11  ;;  %9160 = vrot.lane.b32.xlu0 %v9119_v56, %s9758_s13  ;;  %s245_s11 = sand.u32 1, %s9744_s22  }
 0x16b   : > { %s11962_s25 = scalar_lea.sflag [#allocation4], %s245_s11 }
 0x16c   : > { %v10096_v3 = vpop.permute.xlu1 %591  ;;  %v10098_v4 = vpop.permute.xlu0 %511 }
 0x16d   : > { %12069 = vst [vmem:[#allocation6_spill] sm:$0xff] %v10096_v3 }
 0x16e   : > { %9175 = vrot.lane.b32.xlu1 %v9164_v63, %s9758_s13 }
 0x170   : > { %v10101_v5 = vpop.permute.xlu1 %509  ;;  %v10103_v6 = vpop.permute.xlu0 %543 }
 0x171   : > { %v10119_v14 = vpack.i.bf16 %v10098_v4, %v10101_v5 }
 0x174   : > { %v10105_v7 = vpop.permute.xlu1 %541  ;;  %v10107_v8 = vpop.permute.xlu0 %493 }
 0x175   : > { %v10111_v9 = vpack.i.bf16 %v10091_v2, %v10107_v8  ;;  %v10139_v22 = vpack.i.bf16 %v10103_v6, %v10105_v7 }
 0x177   : > { %9180 = vrot.lane.b32.xlu0 %v10111_v9, %s9757_s12 }
 0x178   : > { %v10115_v10 = vpop.permute.xlu1 %499  ;;  %v9116_v11 = vpop.permute.xlu0 %9115 }
 0x179   : > { %v9118_v12 = vunpack.i.h.bf16 %v9116_v11  ;;  %v9117_v13 = vunpack.i.l.bf16 %v9116_v11 }
 0x17b   : > { %v8734_v16 = vpack.c.bf16 %v9118_v12, %v9117_v13  ;;  %9185 = vrot.lane.b32.xlu0 %v10119_v14, %s9757_s12 }
 0x17c   : > { %v10129_v17 = vpop.permute.xlu1 %497  ;;  %v9121_v18 = vpop.permute.xlu0 %9120 }
 0x17d   : > { %v9123_v19 = vunpack.i.h.bf16 %v9121_v18  ;;  %v9122_v20 = vunpack.i.l.bf16 %v9121_v18  ;;  %8736 = vmatprep.subr.msk.bf16.mxu1 %vm10123_vm2, %v8734_v16  ;;  %v10135_v21 = vpack.i.bf16 %v10115_v10, %v10129_v17 }
 0x17e   : > { %8739 = vmatpush3.bf16.xpose.msk.msra.mxu1 %vm10123_vm2, %v8734_v16 }
 0x17f   : > { %v8758_v23 = vpack.c.bf16 %v9123_v19, %v9122_v20  ;;  %9210 = vrot.lane.b32.xlu1 %v10135_v21, %s9757_s12  ;;  %9190 = vrot.lane.b32.xlu0 %v10139_v22, %s9757_s12 }
 0x180   : > { %v10147_v24 = vpop.permute.xlu1 %513  ;;  %v10149_v27 = vpop.permute.xlu0 %557 }
 0x181   : > { %8760 = vmatprep.subr.msk.bf16.mxu0 %vm10123_vm2, %v8758_v23  ;;  %v10155_v28 = vpack.i.bf16 %v10089_v1, %v10149_v27 }
 0x182   : > { %8763 = vmatpush3.bf16.xpose.msk.msra.mxu0 %vm10123_vm2, %v8758_v23 }
 0x183   : > { %9195 = vrot.lane.b32.xlu0 %v10155_v28, %s9757_s12 }
 0x184   : > { %v9126_v30 = vpop.permute.xlu1 %9125  ;;  %v10162_v31 = vpop.permute.xlu0 %589 }
 0x185   : > { %v9128_v33 = vunpack.i.h.bf16 %v9126_v30  ;;  %v9127_v34 = vunpack.i.l.bf16 %v9126_v30  ;;  %8251 = vmatmul.mubr.msk.f32.vlgmr.msra.gmra.mrb[8].mxu1 %vm769_vm1, %v638_v29  ;;  %v10169_v35 = vpack.i.bf16 %v10096_v3, %v10162_v31 }
 0x186   : > { %8257 = vmatprep.mubr.msk.f32.mxu1 %vm769_vm1, %v639_v32 }
 0x187   : > { %12072 = vst [vmem:[#allocation7_spill] sm:$0xff] %v10169_v35  ;;  %v8740_v36 = vpack.c.bf16 %v9128_v33, %v9127_v34  ;;  %9200 = vrot.lane.b32.xlu0 %v10169_v35, %s9757_s12 }
 0x188   : > { %v10174_v25 = vpop.permute.xlu1 %545  ;;  %v10176_v40 = vpop.permute.xlu0 %515 }
 0x189   : > { %8742 = vmatprep.subr.msk.bf16.mxu1 %vm10123_vm2, %v8740_v36  ;;  %8279 = vmatmul.mubr.msk.f32.vlgmr.msra.gmra.mrb[8].mxu0 %vm769_vm1, %v646_v37  ;;  %v10184_v41 = vpack.i.bf16 %v10176_v40, %v10147_v24 }
 0x18a   : > { %8745 = vmatpush3.bf16.xpose.msk.msra.mxu1 %vm10123_vm2, %v8740_v36  ;;  %8292 = vmatprep.mubr.msk.f32.mxu0 %vm769_vm1, %v649_v39  ;;  %v642_v36 = vmul.f32 0.35355338, %v9937_v43  ;;  %v650_v43 = vmul.f32 0.35355338, %v10007_v60 }
 0x18b   : > { %9215 = vrot.lane.b32.xlu1 %v10184_v41, %s9757_s12 }
 0x18c   : > { %v10191_v26 = vpop.permute.xlu1 %9130  ;;  %v10193_v42 = vpop.permute.xlu0 %547 }
 0x18d   : > { %v10197_v44 = vpack.i.bf16 %v10193_v42, %v10174_v25  ;;  %v9132_v35 = vunpack.i.l.bf16 %v10191_v26 }
 0x18f   : > { %9220 = vrot.lane.b32.xlu1 %v10197_v44, %s9757_s12 }
 0x190   : > { %v10202_v47 = vpop.permute.xlu1 %561  ;;  %v10204_v48 = vpop.permute.xlu0 %563 }
 0x191   : > { %8258 = vmatmul.mubr.msk.f32.vlgmr.msra.gmra.mrb[10].mxu1 %vm769_vm1, %v640_v45  ;;  %v10210_v52 = vpack.i.bf16 %v10204_v48, %v10202_v47  ;;  %v643_v45 = vmul.f32 0.35355338, %v9957_v54 }
 0x192   : > { %8264 = vmatprep.mubr.msk.f32.mxu1 %vm769_vm1, %v641_v49 }
 0x193   : > { %12073 = vst [vmem:[#allocation8_spill] sm:$0xff] %v10210_v52  ;;  %9225 = vrot.lane.b32.xlu1 %v10210_v52, %s9757_s12 }
 0x194   : > { %v10215_v53 = vpop.permute.xlu1 %593  ;;  %v10217_v38 = vpop.permute.xlu0 %595 }
 0x195   : > { %12074 = vst [vmem:[#allocation9_spill] sm:$0xff] %v10217_v38  ;;  %v10221_v56 = vpack.i.bf16 %v10217_v38, %v10215_v53 }
 0x197   : > { %12075 = vst [vmem:[#allocation10_spill] sm:$0xff] %v10221_v56  ;;  %9230 = vrot.lane.b32.xlu1 %v10221_v56, %s9757_s12  ;;  %v9133_v56 = vunpack.i.h.bf16 %v10191_v26 }
 0x198   : > { %v10225_v46 = vpop.permute.xlu1 %503  ;;  %v10227_v61 = vpop.permute.xlu0 %501 }
 0x19c   : > { %v10229_v63 = vpop.permute.xlu1 %519  ;;  %v10231_v11 = vpop.permute.xlu0 %517 }
 0x1a0   : > { %v10233_v12 = vpop.permute.xlu1 %551  ;;  %v9136_v13 = vpop.permute.xlu0 %9135 }
 0x1a1   : > { %v9138_v16 = vunpack.i.h.bf16 %v9136_v13  ;;  %v9137_v18 = vunpack.i.l.bf16 %v9136_v13 }
 0x1a3   : > { %v8746_v19 = vpack.c.bf16 %v9138_v16, %v9137_v18  ;;  %v653_v16 = vmul.f32 0.35355338, %v10107_v8 }
 0x1a4   : > { %v10235_v20 = vpop.permute.xlu1 %567  ;;  %v10237_v23 = vpop.permute.xlu0 %549 }
 0x1a5   : > { %8748 = vmatprep.subr.msk.bf16.mxu1 %vm10123_vm2, %v8746_v19 }
 0x1a6   : > { %8751 = vmatpush3.bf16.xpose.msk.msra.mxu1 %vm10123_vm2, %v8746_v19 }
 0x1a8   : > { %v10243_v29 = vpop.permute.xlu1 %599  ;;  %v9141_v30 = vpop.permute.xlu0 %9140 }
 0x1a9   : > { %v9143_v32 = vunpack.i.h.bf16 %v9141_v30  ;;  %v9142_v33 = vunpack.i.l.bf16 %v9141_v30 }
 0x1ab   : > { %v8770_v34 = vpack.c.bf16 %v9143_v32, %v9142_v33 }
 0x1ac   : > { %v10246_v37 = vpop.permute.xlu1 %507  ;;  %v10248_v39 = vpop.permute.xlu0 %565 }
 0x1ad   : > { %8265 = vmatmul.mubr.msk.f32.vlgmr.msra.gmra.mrb[12].mxu1 %vm769_vm1, %v642_v36  ;;  %8772 = vmatprep.subr.msk.bf16.mxu0 %vm10123_vm2, %v8770_v34 }
 0x1ae   : > { %8271 = vmatprep.mubr.msk.f32.mxu1 %vm769_vm1, %v643_v45  ;;  %8775 = vmatpush3.bf16.xpose.msk.msra.mxu0 %vm10123_vm2, %v8770_v34 }
 0x1b0   : > { %v10257_v49 = vpop.permute.xlu1 %523  ;;  %v10259_v13 = vpop.permute.xlu0 %597 }
 0x1b4   : > { %v10263_v18 = vpop.permute.xlu1 %607  ;;  %v10265_v54 = vpop.permute.xlu0 %555 }
 0x1b5   : > { %12076 = vst [vmem:[#allocation11_spill] sm:$0xff] %v10263_v18  ;;  %8293 = vmatmul.mubr.msk.f32.vlgmr.msra.gmra.mrb[10].mxu0 %vm769_vm1, %v650_v43 }
 0x1b6   : > { %8306 = vmatprep.mubr.msk.f32.mxu0 %vm769_vm1, %v653_v16 }
 0x1b8   : > { %v10269_v19 = vpop.permute.xlu1 %609  ;;  %v10271_v30 = vpop.permute.xlu0 %571 }
 0x1bc   : > { %v10273_v32 = vpop.permute.xlu1 %615  ;;  %v10275_v33 = vpop.permute.xlu0 %603 }
 0x1c0   : > { %v10277_v34 = vpop.permute.xlu1 %9145  ;;  %v10279_v60 = vpop.permute.xlu0 %505 }
 0x1c1   : > { %12077 = vst [vmem:[#allocation12_spill] sm:$0xff] %v10277_v34  ;;  %v10314_v26 = vpack.i.bf16 %v10246_v37, %v10279_v60 }
 0x1c4   : > { %v10281_v8 = vpop.permute.xlu1 %9150  ;;  %v10283_v36 = vpop.permute.xlu0 %605 }
 0x1c5   : > { %12078 = vst [vmem:[#allocation13_spill] sm:$0xff] %v10281_v8  ;;  %12079 = vst [vmem:[#allocation14_spill] sm:$0xff] %v10283_v36  ;;  %v10287_v45 = vpack.i.bf16 %v10263_v18, %v10283_v36  ;;  %v9239_v8 = vpack.i.bf16 %v10225_v46, %v10227_v61  ;;  %v8764_v36 = vpack.c.bf16 %v9133_v56, %v9132_v35 }
 0x1c7   : > { %12080 = vst [vmem:[#allocation15_spill] sm:$0xff] %v10287_v45  ;;  %9205 = vrot.lane.b32.xlu0 %v10287_v45, %s9757_s12 }
 0x1c8   : > { %v9166_v43 = vpop.permute.xlu1 %9165  ;;  %v10291_v16 = vpop.permute.xlu0 %611 }
 0x1c9   : > { %v9168_v52 = vunpack.i.h.bf16 %v9166_v43  ;;  %v9167_v34 = vunpack.i.l.bf16 %v9166_v43  ;;  %v10299_v38 = vpack.i.bf16 %v10291_v16, %v10269_v19  ;;  %v644_v43 = vmul.f32 0.35355338, %v9951_v50 }
 0x1cb   : > { %12081 = vst [vmem:[#allocation16_spill] sm:$0xff] %v10299_v38  ;;  %v8752_v18 = vpack.c.bf16 %v9168_v52, %v9167_v34  ;;  %9240 = vrot.lane.b32.xlu0 %v9239_v8, %s9757_s12  ;;  %9235 = vrot.lane.b32.xlu1 %v10299_v38, %s9757_s12  ;;  %v9249_v34 = vpack.i.bf16 %v10229_v63, %v10231_v11 }
 0x1cc   : > { %v10304_v45 = vpop.permute.xlu1 %553  ;;  %v10306_v3 = vpop.permute.xlu0 %613 }
 0x1cd   : > { %8754 = vmatprep.subr.msk.bf16.mxu1 %vm10123_vm2, %v8752_v18 }
 0x1ce   : > { %8757 = vmatpush3.bf16.xpose.msk.msra.mxu1 %vm10123_vm2, %v8752_v18 }
 0x1cf   : > { %8766 = vmatprep.subr.msk.bf16.mxu1 %vm10123_vm2, %v8764_v36  ;;  %9245 = vrot.lane.b32.xlu0 %v9992_v59, %s9758_s13  ;;  %v647_v59 = vmul.f32 0.35355338, %v9974_v57  ;;  %v10349_v57 = vpack.i.bf16 %v10235_v20, %v10248_v39 }
 0x1d0   : > { %9275 = vrot.lane.b32.xlu1 %v10314_v26, %s9757_s12  ;;  %v9171_v35 = vpop.permute.xlu1 %9170  ;;  %v10324_v18 = vpop.permute.xlu0 %521 }
 0x1d1   : > { %v9173_v52 = vunpack.i.h.bf16 %v9171_v35  ;;  %v9172_v56 = vunpack.i.l.bf16 %v9171_v35  ;;  %v10337_v35 = vpack.i.bf16 %v10233_v12, %v10237_v23  ;;  %12082 = vst [vmem:[#allocation17_spill] sm:$0xff] %v10349_v57 }
 0x1d3   : > { %9250 = vrot.lane.b32.xlu0 %v9249_v34, %s9757_s12  ;;  %v8776_v38 = vpack.c.bf16 %v9173_v52, %v9172_v56  ;;  %v651_v52 = vmul.f32 0.35355338, %v9960_v55 }
 0x1d4   : > { %9280 = vrot.lane.b32.xlu1 %v10030_v62, %s9758_s13  ;;  %v10345_v50 = vpop.permute.xlu0 %619  ;;  %v10351_v62 = vpop.permute.xlu1 %569 }
 0x1d5   : > { %8272 = vmatmul.mubr.msk.f32.vlgmr.msra.gmra.mrb[14].mxu1 %vm769_vm1, %v644_v43  ;;  %v655_v43 = vmul.f32 0.35355338, %v10129_v17 }
 0x1d6   : > { %8769 = vmatpush3.bf16.xpose.msk.msra.mxu1 %vm10123_vm2, %v8764_v36  ;;  %8285 = vmatprep.mubr.msk.f32.mxu1 %vm769_vm1, %v647_v59  ;;  %v648_v36 = vmul.f32 0.35355338, %v9981_v58  ;;  %v9304_v58 = vpack.i.bf16 %v10257_v49, %v10324_v18 }
 0x1d7   : > { %8778 = vmatprep.subr.msk.bf16.mxu1 %vm10123_vm2, %v8776_v38  ;;  %9255 = vrot.lane.b32.xlu0 %v10337_v35, %s9757_s12 }
 0x1d8   : > { %9290 = vrot.lane.b32.xlu1 %v10111_v9, %s9758_s13  ;;  %v10364_v9 = vpack.i.bf16 %v10243_v29, %v10259_v13  ;;  %v10368_v56 = vpop.permute.xlu0 %9155  ;;  %v10373_v55 = vpop.permute.xlu1 %601 }
 0x1da   : > { %12083 = vst [vmem:[#allocation18_spill] sm:$0xff] %v10364_v9 }
 0x1db   : > { %9260 = vrot.lane.b32.xlu0 %v10349_v57, %s9757_s12 }
 0x1dc   : > { %9300 = vrot.lane.b32.xlu1 %v9239_v8, %s9758_s13  ;;  %v652_v8 = vmul.f32 0.35355338, %v9954_v51  ;;  %v10385_v59 = vpop.permute.xlu0 %9160 }
 0x1dd   : > { %8286 = vmatmul.mubr.msk.f32.vlgmr.msra.gmra.mrb[16].mxu1 %vm769_vm1, %v648_v36  ;;  %12085 = vst [vmem:[#allocation20_spill] sm:$0xff] %v10385_v59  ;;  %v10389_v36 = vpop.permute.xlu1 %617 }
 0x1de   : > { %8781 = vmatpush3.bf16.xpose.msk.msra.mxu1 %vm10123_vm2, %v8776_v38  ;;  %8299 = vmatprep.mubr.msk.f32.mxu1 %vm769_vm1, %v651_v52  ;;  %v10377_v38 = vpack.i.bf16 %v10273_v32, %v10306_v3 }
 0x1df   : > { %9265 = vrot.lane.b32.xlu0 %v10364_v9, %s9757_s12 }
 0x1e0   : > { %9305 = vrot.lane.b32.xlu1 %v9304_v58, %s9757_s12  ;;  %12084 = vst [vmem:[#allocation19_spill] sm:$0xff] %v10377_v38 }
 0x1e3   : > { %9270 = vrot.lane.b32.xlu0 %v10377_v38, %s9757_s12 }
 0x1e4   : > { %9310 = vrot.lane.b32.xlu1 %v10119_v14, %s9758_s13  ;;  %v10398_v14 = vpop.permute.xlu1 %9175 }
 0x1e5   : > { %8300 = vmatmul.mubr.msk.f32.vlgmr.msra.gmra.mrb[18].mxu1 %vm769_vm1, %v652_v8 }
 0x1e6   : > { %8313 = vmatprep.mubr.msk.f32.mxu1 %vm769_vm1, %v655_v43  ;;  %v654_v43 = vmul.f32 0.35355338, %v10091_v2  ;;  %v10434_v2 = vpack.i.bf16 %v10345_v50, %v10389_v36 }
 0x1e7   : > { %9285 = vrot.lane.b32.xlu0 %v10075_v0, %s9758_s13  ;;  %v9329_v0 = vpack.i.bf16 %v10265_v54, %v10304_v45 }
 0x1e8   : > { %9320 = vrot.lane.b32.xlu1 %v9249_v34, %s9758_s13  ;;  %12088 = vst [vmem:[#allocation23_spill] sm:$0xff] %v10434_v2 }
 0x1e9   : > { %v9181_v51 = vpop.permute.xlu0 %9180 }
 0x1ea   : > { %v9183_v17 = vunpack.i.h.bf16 %v9181_v51  ;;  %v9182_v52 = vunpack.i.l.bf16 %v9181_v51 }
 0x1eb   : > { %9295 = vrot.lane.b32.xlu0 %v10135_v21, %s9758_s13 }
 0x1ec   : > { %v8782_v38 = vpack.c.bf16 %v9183_v17, %v9182_v52  ;;  %9325 = vrot.lane.b32.xlu1 %v10139_v22, %s9758_s13  ;;  %v10411_v22 = vpack.i.bf16 %v10271_v30, %v10351_v62 }
 0x1ee   : > { %8784 = vmatprep.subr.msk.bf16.mxu0 %vm10123_vm2, %v8782_v38  ;;  %12086 = vst [vmem:[#allocation21_spill] sm:$0xff] %v10411_v22 }
 0x1ef   : > { %8787 = vmatpush3.bf16.xpose.msk.msra.mxu0 %vm10123_vm2, %v8782_v38  ;;  %9315 = vrot.lane.b32.xlu0 %v10184_v41, %s9758_s13  ;;  %v657_v41 = vmul.f32 0.35355338, %v10227_v61  ;;  %v10424_v38 = vpack.i.bf16 %v10275_v33, %v10373_v55  ;;  %v656_v61 = vmul.f32 0.35355338, %v10115_v10  ;;  %v9186_v10 = vpop.permute.xlu0 %9185 }
 0x1f0   : > { %9330 = vrot.lane.b32.xlu1 %v9329_v0, %s9757_s12 }
 0x1f1   : > { %v9211_v21 = vpop.permute.xlu1 %9210  ;;  %12087 = vst [vmem:[#allocation22_spill] sm:$0xff] %v10424_v38 }
 0x1f2   : > { %v9213_v34 = vunpack.i.h.bf16 %v9211_v21  ;;  %v9212_v8 = vunpack.i.l.bf16 %v9211_v21 }
 0x1f3   : > { %9350 = vrot.lane.b32.xlu0 %v10314_v26, %s9758_s13  ;;  %v659_v26 = vmul.f32 0.35355338, %v10279_v60 }
 0x1f4   : > { %v8788_v51 = vpack.c.bf16 %v9213_v34, %v9212_v8  ;;  %9335 = vrot.lane.b32.xlu1 %v10411_v22, %s9757_s12  ;;  %v9188_v8 = vunpack.i.h.bf16 %v9186_v10 }
 0x1f6   : > { %8307 = vmatmul.mubr.msk.f32.vlgmr.msra.gmra.mrb[12].mxu0 %vm769_vm1, %v654_v43  ;;  %8790 = vmatprep.subr.msk.bf16.mxu1 %vm10123_vm2, %v8788_v51 }
 0x1f7   : > { %8793 = vmatpush3.bf16.xpose.msk.msra.mxu1 %vm10123_vm2, %v8788_v51  ;;  %8320 = vmatprep.mubr.msk.f32.mxu0 %vm769_vm1, %v657_v41 }
 0x1f8   : > { %9355 = vrot.lane.b32.xlu0 %v9304_v58, %s9758_s13  ;;  %9340 = vrot.lane.b32.xlu1 %v10424_v38, %s9757_s12 }
 0x1fc   : > { %9360 = vrot.lane.b32.xlu0 %v10197_v44, %s9758_s13  ;;  %9345 = vrot.lane.b32.xlu1 %v10434_v2, %s9757_s12  ;;  %v9191_v44 = vpop.permute.xlu0 %9190  ;;  %s7679_s12 = sshll.u32 %s245_s11, 7 }
 0x1fd   : > { %v9216_v58 = vpop.permute.xlu1 %9215 }
 0x1fe   : > { %8314 = vmatmul.mubr.msk.f32.vlgmr.msra.gmra.mrb[20].mxu1 %vm769_vm1, %v656_v61  ;;  %v9218_v9 = vunpack.i.h.bf16 %v9216_v58  ;;  %v9217_v22 = vunpack.i.l.bf16 %v9216_v58 }
 0x1ff   : > { %8327 = vmatprep.mubr.msk.f32.mxu1 %vm769_vm1, %v659_v26 }
 0x200   : > { %9370 = vrot.lane.b32.xlu0 %v9329_v0, %s9758_s13  ;;  %9365 = vrot.lane.b32.xlu1 %v10337_v35, %s9758_s13  ;;  %v10451_v52 = vpop.permute.xlu0 %9195  ;;  %v9187_v35 = vunpack.i.l.bf16 %v9186_v10 }
 0x201   : > { %v10449_v17 = vpop.permute.xlu1 %9220 }
 0x202   : > { %v8806_v26 = vpack.c.bf16 %v9188_v8, %v9187_v35  ;;  %v8812_v35 = vpack.c.bf16 %v9218_v9, %v9217_v22  ;;  %v660_v9 = vmul.f32 0.35355338, %v10246_v37  ;;  %v9193_v22 = vunpack.i.h.bf16 %v9191_v44 }
 0x203   : > { %v665_v37 = vmul.f32 0.35355338, %v10231_v11  ;;  %v667_v11 = vmul.f32 0.35355338, %v10324_v18  ;;  %v666_v18 = vmul.f32 0.35355338, %v10229_v63 }
 0x204   : > { %9375 = vrot.lane.b32.xlu1 %v10155_v28, %s9758_s13  ;;  %v10455_v21 = vpop.permute.xlu0 %9200 }
 0x205   : > { %v10453_v60 = vpop.permute.xlu1 %9225 }
 0x209   : > { %v10457_v34 = vpop.permute.xlu1 %9230 }
 0x239   : > { %v10459_v0 = vpop.permute.xlu0 %9205 }
 0x23d   : > { %v10461_v43 = vpop.permute.xlu1 %9235  ;;  %v9241_v28 = vpop.permute.xlu0 %9240 }
 0x23e   : > { %v9243_v51 = vunpack.i.h.bf16 %v9241_v28  ;;  %v9242_v41 = vunpack.i.l.bf16 %v9241_v28 }
 0x240   : > { %v8794_v61 = vpack.c.bf16 %v9243_v51, %v9242_v41 }
 0x241   : > { %v10463_v38 = vpop.permute.xlu0 %9245 }
 0x242   : > { %v9276_v2 = vpop.permute.xlu1 %9275  ;;  %8796 = vmatprep.subr.msk.bf16.mxu0 %vm10123_vm2, %v8794_v61 }
 0x243   : > { %v9278_v57 = vunpack.i.h.bf16 %v9276_v2  ;;  %v9277_v59 = vunpack.i.l.bf16 %v9276_v2  ;;  %8799 = vmatpush3.bf16.xpose.msk.msra.mxu0 %vm10123_vm2, %v8794_v61  ;;  %v658_v2 = vmul.f32 0.35355338, %v10225_v46  ;;  %v663_v46 = vmul.f32 0.35355338, %v10147_v24 }
 0x244   : > { %8808 = vmatprep.subr.msk.bf16.mxu0 %vm10123_vm2, %v8806_v26  ;;  %v9192_v61 = vunpack.i.l.bf16 %v9191_v44  ;;  %v9222_v24 = vunpack.i.l.bf16 %v10449_v17 }
 0x245   : > { %v8800_v10 = vpack.c.bf16 %v9278_v57, %v9277_v59  ;;  %v9251_v8 = vpop.permute.xlu0 %9250  ;;  %v661_v57 = vmul.f32 0.35355338, %v10101_v5 }
 0x246   : > { %v10471_v28 = vpop.permute.xlu1 %9280  ;;  %v9253_v51 = vunpack.i.h.bf16 %v9251_v8  ;;  %v9252_v41 = vunpack.i.l.bf16 %v9251_v8 }
 0x247   : > { %12089 = vst [vmem:[#allocation24_spill] sm:$0xff] %v10471_v28  ;;  %8802 = vmatprep.subr.msk.bf16.mxu1 %vm10123_vm2, %v8800_v10 }
 0x248   : > { %8805 = vmatpush3.bf16.xpose.msk.msra.mxu1 %vm10123_vm2, %v8800_v10  ;;  %v8818_v58 = vpack.c.bf16 %v9253_v51, %v9252_v41  ;;  %v8830_v10 = vpack.c.bf16 %v9193_v22, %v9192_v61  ;;  %v9223_v51 = vunpack.i.h.bf16 %v10449_v17  ;;  %v702_v17 = vld [vmem:[%s12007_s3 + $0x8] sm:$0xff] }
 0x249   : > { %8814 = vmatprep.subr.msk.bf16.mxu1 %vm10123_vm2, %v8812_v35 }
 0x24a   : > { %v10481_v59 = vpop.permute.xlu1 %9290  ;;  %8321 = vmatmul.mubr.msk.f32.vlgmr.msra.gmra.mrb[14].mxu0 %vm769_vm1, %v658_v2  ;;  %v9256_v2 = vpop.permute.xlu0 %9255 }
 0x24b   : > { %12090 = vst [vmem:[#allocation25_spill] sm:$0xff] %v10481_v59  ;;  %8811 = vmatpush3.bf16.xpose.msk.msra.mxu0 %vm10123_vm2, %v8806_v26  ;;  %8334 = vmatprep.mubr.msk.f32.mxu0 %vm769_vm1, %v661_v57  ;;  %v662_v26 = vmul.f32 0.35355338, %v10098_v4  ;;  %v664_v4 = vmul.f32 0.35355338, %v10176_v40  ;;  %v9257_v22 = vunpack.i.l.bf16 %v9256_v2 }
 0x24c   : > { %8820 = vmatprep.subr.msk.bf16.mxu0 %vm10123_vm2, %v8818_v58 }
 0x24e   : > { %v10491_v5 = vpop.permute.xlu1 %9300 }
 0x24f   : > { %12091 = vst [vmem:[#allocation26_spill] sm:$0xff] %v10491_v5  ;;  %8328 = vmatmul.mubr.msk.f32.vlgmr.msra.gmra.mrb[22].mxu1 %vm769_vm1, %v660_v9  ;;  %v8836_v9 = vpack.c.bf16 %v9223_v51, %v9222_v24 }
 0x250   : > { %8817 = vmatpush3.bf16.xpose.msk.msra.mxu1 %vm10123_vm2, %v8812_v35  ;;  %8341 = vmatprep.mubr.msk.f32.mxu1 %vm769_vm1, %v663_v46  ;;  %v9258_v46 = vunpack.i.h.bf16 %v9256_v2 }
 0x252   : > { %v9306_v8 = vpop.permute.xlu1 %9305  ;;  %8335 = vmatmul.mubr.msk.f32.vlgmr.msra.gmra.mrb[16].mxu0 %vm769_vm1, %v662_v26  ;;  %v669_v26 = vmul.f32 0.35355338, %v10105_v7  ;;  %v8842_v51 = vpack.c.bf16 %v9258_v46, %v9257_v22  ;;  %v668_v7 = vmul.f32 0.35355338, %v10257_v49  ;;  %v673_v46 = vmul.f32 0.35355338, %v10237_v23 }
 0x253   : > { %v9308_v44 = vunpack.i.h.bf16 %v9306_v8  ;;  %v9307_v41 = vunpack.i.l.bf16 %v9306_v8  ;;  %8823 = vmatpush3.bf16.xpose.msk.msra.mxu0 %vm10123_vm2, %v8818_v58  ;;  %8348 = vmatprep.mubr.msk.f32.mxu0 %vm769_vm1, %v665_v37  ;;  %v710_v8 = vld [vmem:[%s12007_s3 + $0x48] sm:$0xff]  ;;  %v709_v22 = vld [vmem:[%s12007_s3 + $0x40] sm:$0xff] }
 0x254   : > { %8832 = vmatprep.subr.msk.bf16.mxu0 %vm10123_vm2, %v8830_v10 }
 0x255   : > { %v8824_v35 = vpack.c.bf16 %v9308_v44, %v9307_v41  ;;  %v701_v44 = vld [vmem:[%s12007_s3] sm:$0xff] }
 0x256   : > { %v10509_v57 = vpop.permute.xlu1 %9310 }
 0x257   : > { %12092 = vst [vmem:[#allocation27_spill] sm:$0xff] %v10509_v57  ;;  %8342 = vmatmul.mubr.msk.f32.vlgmr.msra.gmra.mrb[24].mxu1 %vm769_vm1, %v664_v4  ;;  %8826 = vmatprep.subr.msk.bf16.mxu1 %vm10123_vm2, %v8824_v35  ;;  %v9198_v4 = vunpack.i.h.bf16 %v10451_v52 }
 0x258   : > { %8829 = vmatpush3.bf16.xpose.msk.msra.mxu1 %vm10123_vm2, %v8824_v35  ;;  %8355 = vmatprep.mubr.msk.f32.mxu1 %vm769_vm1, %v667_v11  ;;  %v8252_v40 = vpop.f32.mrb[8].mxu1  ;;  %v9197_v35 = vunpack.i.l.bf16 %v10451_v52 }
 0x259   : > { %v10521_v58 = vadd.f32 %v8252_v40, %v702_v17  ;;  %8838 = vmatprep.subr.msk.bf16.mxu1 %vm10123_vm2, %v8836_v9  ;;  %v846_v61 = vpop.f32.mrb[9].mxu1 }
 0x25a   : > { %v10526_v37 = vpop.permute.xlu1 %9320  ;;  %8349 = vmatmul.mubr.msk.f32.vlgmr.msra.gmra.mrb[18].mxu0 %vm769_vm1, %v666_v18  ;;  %v10551_v49 = vadd.f32 %v846_v61, %v701_v44  ;;  %v8854_v52 = vpack.c.bf16 %v9198_v4, %v9197_v35  ;;  %v9228_v18 = vunpack.i.h.bf16 %v10453_v60  ;;  %v9227_v61 = vunpack.i.l.bf16 %v10453_v60 }
 0x25b   : > { %12093 = vst [vmem:[#allocation28_spill] sm:$0xff] %v10526_v37  ;;  %8835 = vmatpush3.bf16.xpose.msk.msra.mxu0 %vm10123_vm2, %v8830_v10  ;;  %8362 = vmatprep.mubr.msk.f32.mxu0 %vm769_vm1, %v669_v26  ;;  %v3618_v24 = vsel %vm3614_vm3, %v10521_v58, -inf  ;;  %v671_v10 = vmul.f32 0.35355338, %v10174_v25  ;;  %v670_v25 = vmul.f32 0.35355338, %v10103_v6  ;;  %v9261_v6 = vpop.permute.xlu0 %9260 }
 0x25c   : > { %v8280_v63 = vpop.f32.mrb[8].mxu0  ;;  %8844 = vmatprep.subr.msk.bf16.mxu0 %vm10123_vm2, %v8842_v51  ;;  %3619 = vmax.xlane.f32.xlu1 %v3618_v24  ;;  %v672_v24 = vmul.f32 0.35355338, %v10193_v42  ;;  %v8860_v4 = vpack.c.bf16 %v9228_v18, %v9227_v61  ;;  %v9263_v35 = vunpack.i.h.bf16 %v9261_v6  ;;  %v679_v18 = vmul.f32 0.35355338, %v10202_v47 }
 0x25d   : > { %v10541_v41 = vadd.f32 %v8280_v63, %v710_v8  ;;  %v1202_v2 = vpop.f32.mrb[9].mxu0  ;;  %v3615_v63 = vsel %vm3614_vm3, %v10551_v49, -inf  ;;  %v9202_v61 = vunpack.i.l.bf16 %v10455_v21 }
 0x25e   : > { %v10548_v11 = vpop.permute.xlu1 %9325 }
 0x25f   : > { %12094 = vst [vmem:[#allocation29_spill] sm:$0xff] %v10548_v11  ;;  %8356 = vmatmul.mubr.msk.f32.vlgmr.msra.gmra.mrb[26].mxu1 %vm769_vm1, %v668_v7  ;;  %v3642_v17 = vsel %vm3614_vm3, %v10541_v41, -inf  ;;  %v10575_v7 = vadd.f32 %v1202_v2, %v709_v22 }
 0x260   : > { %8841 = vmatpush3.bf16.xpose.msk.msra.mxu1 %vm10123_vm2, %v8836_v9  ;;  %8369 = vmatprep.mubr.msk.f32.mxu1 %vm769_vm1, %v671_v10  ;;  %v704_v9 = vld [vmem:[%s12007_s3 + $0x18] sm:$0xff] }
 0x261   : > { %3643 = vmax.xlane.f32.xlu0 %v3642_v17  ;;  %v9262_v17 = vunpack.i.l.bf16 %v9261_v6  ;;  %v9266_v6 = vpop.permute.xlu0 %9265 }
 0x262   : > { %v9331_v40 = vpop.permute.xlu1 %9330  ;;  %8363 = vmatmul.mubr.msk.f32.vlgmr.msra.gmra.mrb[20].mxu0 %vm769_vm1, %v670_v25  ;;  %v674_v25 = vmul.f32 0.35355338, %v10233_v12  ;;  %v676_v12 = vmul.f32 0.35355338, %v10265_v54  ;;  %v681_v54 = vmul.f32 0.35355338, %v10248_v39 }
 0x263   : > { %v9333_v26 = vunpack.i.h.bf16 %v9331_v40  ;;  %v9332_v8 = vunpack.i.l.bf16 %v9331_v40  ;;  %8847 = vmatpush3.bf16.xpose.msk.msra.mxu0 %vm10123_vm2, %v8842_v51  ;;  %8376 = vmatprep.mubr.msk.f32.mxu0 %vm769_vm1, %v673_v46  ;;  %v675_v51 = vmul.f32 0.35355338, %v10304_v45  ;;  %v3639_v45 = vsel %vm3614_vm3, %v10575_v7, -inf }
 0x264   : > { %v8259_v23 = vpop.f32.mrb[10].mxu1  ;;  %8856 = vmatprep.subr.msk.bf16.mxu0 %vm10123_vm2, %v8854_v52  ;;  %v677_v46 = vmul.f32 0.35355338, %v10149_v27  ;;  %v8866_v22 = vpack.c.bf16 %v9263_v35, %v9262_v17  ;;  %v9203_v27 = vunpack.i.h.bf16 %v10455_v21  ;;  %v9232_v21 = vunpack.i.l.bf16 %v10457_v34 }
 0x265   : > { %v8848_v44 = vpack.c.bf16 %v9333_v26, %v9332_v8  ;;  %v10577_v60 = vadd.f32 %v8259_v23, %v704_v9  ;;  %3616 = vmax.xlane.f32.xlu0 %v3615_v63  ;;  %v10581_v10 = vpop.f32.mrb[11].mxu1  ;;  %v9233_v8 = vunpack.i.h.bf16 %v10457_v34  ;;  %v683_v39 = vmul.f32 0.35355338, %v10351_v62 }
 0x266   : > { %v9336_v42 = vpop.permute.xlu1 %9335  ;;  %v8878_v47 = vpack.c.bf16 %v9203_v27, %v9202_v61  ;;  %v9268_v63 = vunpack.i.h.bf16 %v9266_v6  ;;  %v684_v35 = vmul.f32 0.35355338, %v10271_v30  ;;  %v9208_v17 = vunpack.i.h.bf16 %v10459_v0 }
 0x267   : > { %8370 = vmatmul.mubr.msk.f32.vlgmr.msra.gmra.mrb[28].mxu1 %vm769_vm1, %v672_v24  ;;  %8850 = vmatprep.subr.msk.bf16.mxu1 %vm10123_vm2, %v8848_v44  ;;  %v3624_v2 = vsel %vm3614_vm3, %v10577_v60, -inf  ;;  %v9338_v40 = vunpack.i.h.bf16 %v9336_v42  ;;  %v9337_v9 = vunpack.i.l.bf16 %v9336_v42  ;;  %v8884_v23 = vpack.c.bf16 %v9233_v8, %v9232_v21  ;;  %v12097_v21 = vld [vmem:[#allocation14_spill] sm:$0xff] }
 0x268   : > { %8853 = vmatpush3.bf16.xpose.msk.msra.mxu1 %vm10123_vm2, %v8848_v44  ;;  %8383 = vmatprep.mubr.msk.f32.mxu1 %vm769_vm1, %v675_v51  ;;  %v9267_v24 = vunpack.i.l.bf16 %v9266_v6  ;;  %v682_v44 = vmul.f32 0.35355338, %v10235_v20  ;;  %v687_v20 = vmul.f32 0.35355338, %v10215_v53  ;;  %v689_v53 = vmul.f32 0.35355338, %v10259_v13 }
 0x269   : > { %8862 = vmatprep.subr.msk.bf16.mxu1 %vm10123_vm2, %v8860_v4  ;;  %3625 = vmax.xlane.f32.xlu1 %v3624_v2  ;;  %v8872_v26 = vpack.c.bf16 %v9338_v40, %v9337_v9  ;;  %v9271_v40 = vpop.permute.xlu0 %9270  ;;  %v12096_v9 = vld [vmem:[#allocation9_spill] sm:$0xff]  ;;  %v691_v13 = vmul.f32 0.35355338, %v10373_v55  ;;  %v703_v55 = vld [vmem:[%s12007_s3 + $0x10] sm:$0xff]  ;;  %v693_v6 = vmul.f32 0.35355338, %v12097_v21 }
 0x26a   : > { %3640 = vmax.xlane.f32.xlu0 %v3639_v45  ;;  %8377 = vmatmul.mubr.msk.f32.vlgmr.msra.gmra.mrb[22].mxu0 %vm769_vm1, %v674_v25  ;;  %v9341_v34 = vpop.permute.xlu1 %9340  ;;  %v8890_v51 = vpack.c.bf16 %v9268_v63, %v9267_v24  ;;  %v12095_v25 = vld [vmem:[#allocation6_spill] sm:$0xff]  ;;  %v9273_v27 = vunpack.i.h.bf16 %v9271_v40  ;;  %v9272_v61 = vunpack.i.l.bf16 %v9271_v40  ;;  %v10684_v63 = vadd.f32 %v10581_v10, %v703_v55  ;;  %v711_v21 = vld [vmem:[%s12007_s3 + $0x50] sm:$0xff] }
 0x26b   : > { %8859 = vmatpush3.bf16.xpose.msk.msra.mxu0 %vm10123_vm2, %v8854_v52  ;;  %8390 = vmatprep.mubr.msk.f32.mxu0 %vm769_vm1, %v677_v46  ;;  %v678_v52 = vmul.f32 0.35355338, %v10089_v1  ;;  %v680_v1 = vmul.f32 0.35355338, %v10204_v48  ;;  %v685_v48 = vmul.f32 0.35355338, %v10162_v31  ;;  %v9343_v62 = vunpack.i.h.bf16 %v9341_v34 }
 0x26c   : > { %8868 = vmatprep.subr.msk.bf16.mxu0 %vm10123_vm2, %v8866_v22  ;;  %v9207_v31 = vunpack.i.l.bf16 %v10459_v0  ;;  %v686_v30 = vmul.f32 0.35355338, %v12095_v25  ;;  %v9238_v0 = vunpack.i.h.bf16 %v10461_v43  ;;  %v692_v24 = vmul.f32 0.35355338, %v10275_v33 }
 0x26d   : > { %v3621_v33 = vsel %vm3614_vm3, %v10684_v63, -inf  ;;  %v9157_v40 = vunpack.i.l.bf16 %v10368_v56 }
 0x26e   : > { %v8902_v46 = vpack.c.bf16 %v9208_v17, %v9207_v31  ;;  %v697_v17 = vmul.f32 0.35355338, %v10306_v3  ;;  %v12100_v31 = vld [vmem:[#allocation13_spill] sm:$0xff]  ;;  %v705_v3 = vld [vmem:[%s12007_s3 + $0x20] sm:$0xff] }
 0x26f   : > { %8384 = vmatmul.mubr.msk.f32.vlgmr.msra.gmra.mrb[30].mxu1 %vm769_vm1, %v676_v12  ;;  %v688_v12 = vmul.f32 0.35355338, %v12096_v9  ;;  %v9152_v25 = vunpack.i.l.bf16 %v12100_v31 }
 0x270   : > { %8865 = vmatpush3.bf16.xpose.msk.msra.mxu1 %vm10123_vm2, %v8860_v4  ;;  %8397 = vmatprep.mubr.msk.f32.mxu1 %vm769_vm1, %v679_v18  ;;  %v9342_v4 = vunpack.i.l.bf16 %v9341_v34  ;;  %v714_v18 = vld [vmem:[%s12007_s3 + $0x68] sm:$0xff]  ;;  %v713_v34 = vld [vmem:[%s12007_s3 + $0x60] sm:$0xff] }
 0x271   : > { %8874 = vmatprep.subr.msk.bf16.mxu1 %vm10123_vm2, %v8872_v26 }
 0x272   : > { %8391 = vmatmul.mubr.msk.f32.vlgmr.msra.gmra.mrb[24].mxu0 %vm769_vm1, %v678_v52  ;;  %v8896_v42 = vpack.c.bf16 %v9343_v62, %v9342_v4 }
 0x273   : > { %8871 = vmatpush3.bf16.xpose.msk.msra.mxu0 %vm10123_vm2, %v8866_v22  ;;  %8404 = vmatprep.mubr.msk.f32.mxu0 %vm769_vm1, %v681_v54  ;;  %v9237_v22 = vunpack.i.l.bf16 %v10461_v43  ;;  %v690_v54 = vmul.f32 0.35355338, %v10243_v29 }
 0x274   : > { %8880 = vmatprep.subr.msk.bf16.mxu0 %vm10123_vm2, %v8878_v47 }
 0x275   : > { %v8908_v43 = vpack.c.bf16 %v9238_v0, %v9237_v22  ;;  %v696_v0 = vmul.f32 0.35355338, %v10291_v16  ;;  %v699_v22 = vmul.f32 0.35355338, %v10389_v36  ;;  %v698_v36 = vmul.f32 0.35355338, %v10273_v32 }
 0x277   : > { %8398 = vmatmul.mubr.msk.f32.vlgmr.msra.gmra.mrb[32].mxu1 %vm769_vm1, %v680_v1  ;;  %v8914_v1 = vpack.c.bf16 %v9273_v27, %v9272_v61  ;;  %v707_v27 = vld [vmem:[%s12007_s3 + $0x30] sm:$0xff] }
 0x278   : > { %8877 = vmatpush3.bf16.xpose.msk.msra.mxu1 %vm10123_vm2, %v8872_v26  ;;  %8411 = vmatprep.mubr.msk.f32.mxu1 %vm769_vm1, %v683_v39  ;;  %v9346_v26 = vpop.permute.xlu1 %9345 }
 0x279   : > { %8886 = vmatprep.subr.msk.bf16.mxu1 %vm10123_vm2, %v8884_v23  ;;  %v9348_v39 = vunpack.i.h.bf16 %v9346_v26 }
 0x27a   : > { %8405 = vmatmul.mubr.msk.f32.vlgmr.msra.gmra.mrb[26].mxu0 %vm769_vm1, %v682_v44  ;;  %v695_v44 = vmul.f32 0.35355338, %v10269_v19  ;;  %v706_v19 = vld [vmem:[%s12007_s3 + $0x28] sm:$0xff] }
 0x27b   : > { %8883 = vmatpush3.bf16.xpose.msk.msra.mxu0 %vm10123_vm2, %v8878_v47  ;;  %8418 = vmatprep.mubr.msk.f32.mxu0 %vm769_vm1, %v685_v48  ;;  %v12098_v48 = vld [vmem:[#allocation12_spill] sm:$0xff] }
 0x27c   : > { %8892 = vmatprep.subr.msk.bf16.mxu0 %vm10123_vm2, %v8890_v51  ;;  %v9148_v10 = vunpack.i.h.bf16 %v12098_v48 }
 0x27f   : > { %8412 = vmatmul.mubr.msk.f32.vlgmr.msra.gmra.mrb[34].mxu1 %vm769_vm1, %v684_v35  ;;  %v12099_v35 = vld [vmem:[#allocation11_spill] sm:$0xff] }
 0x280   : > { %8889 = vmatpush3.bf16.xpose.msk.msra.mxu1 %vm10123_vm2, %v8884_v23  ;;  %8425 = vmatprep.mubr.msk.f32.mxu1 %vm769_vm1, %v687_v20  ;;  %v8266_v2 = vpop.f32.mrb[12].mxu1  ;;  %v9347_v23 = vunpack.i.l.bf16 %v9346_v26  ;;  %v694_v20 = vmul.f32 0.35355338, %v12099_v35  ;;  %v718_v35 = vld [vmem:[%s12007_s3 + $0x88] sm:$0xff] }
 0x281   : > { %8898 = vmatprep.subr.msk.bf16.mxu1 %vm10123_vm2, %v8896_v42  ;;  %v10651_v45 = vpop.f32.mrb[13].mxu1 }
 0x282   : > { %8419 = vmatmul.mubr.msk.f32.vlgmr.msra.gmra.mrb[28].mxu0 %vm769_vm1, %v686_v30  ;;  %v8920_v62 = vpack.c.bf16 %v9348_v39, %v9347_v23 }
 0x283   : > { %8895 = vmatpush3.bf16.xpose.msk.msra.mxu0 %vm10123_vm2, %v8890_v51  ;;  %8432 = vmatprep.mubr.msk.f32.mxu0 %vm769_vm1, %v689_v53  ;;  %v9147_v51 = vunpack.i.l.bf16 %v12098_v48  ;;  %v10716_v53 = vadd.f32 %v8266_v2, %v706_v19  ;;  %v9158_v2 = vunpack.i.h.bf16 %v10368_v56  ;;  %v9178_v56 = vunpack.i.h.bf16 %v10398_v14  ;;  %v717_v19 = vld [vmem:[%s12007_s3 + $0x80] sm:$0xff] }
 0x284   : > { %8904 = vmatprep.subr.msk.bf16.mxu0 %vm10123_vm2, %v8902_v46 }
 0x285   : > { %v8926_v30 = vpack.c.bf16 %v9148_v10, %v9147_v51  ;;  %v3630_v16 = vsel %vm3614_vm3, %v10716_v53, -inf }
 0x287   : > { %8426 = vmatmul.mubr.msk.f32.vlgmr.msra.gmra.mrb[36].mxu1 %vm769_vm1, %v688_v12  ;;  %v10732_v12 = vadd.f32 %v10651_v45, %v705_v3  ;;  %v10743_v45 = vpack.c.bf16 %v9158_v2, %v9157_v40  ;;  %v719_v3 = vld [vmem:[%s12007_s3 + $0x90] sm:$0xff] }
 0x288   : > { %8901 = vmatpush3.bf16.xpose.msk.msra.mxu1 %vm10123_vm2, %v8896_v42  ;;  %8439 = vmatprep.mubr.msk.f32.mxu1 %vm769_vm1, %v691_v13  ;;  %v8294_v52 = vpop.f32.mrb[10].mxu0  ;;  %v9153_v42 = vunpack.i.h.bf16 %v12100_v31  ;;  %v9177_v13 = vunpack.i.l.bf16 %v10398_v14  ;;  %v708_v14 = vld [vmem:[%s12007_s3 + $0x38] sm:$0xff] }
 0x289   : > { %v10675_v47 = vadd.f32 %v8294_v52, %v714_v18  ;;  %8910 = vmatprep.subr.msk.bf16.mxu1 %vm10123_vm2, %v8908_v43  ;;  %v1380_v8 = vpop.f32.mrb[11].mxu0  ;;  %v3627_v15 = vsel %vm3614_vm3, %v10732_v12, -inf  ;;  %v700_v18 = vmul.f32 0.35355338, %v10345_v50 }
 0x28a   : > { %8433 = vmatmul.mubr.msk.f32.vlgmr.msra.gmra.mrb[30].mxu0 %vm769_vm1, %v690_v54  ;;  %v10699_v4 = vadd.f32 %v1380_v8, %v713_v34  ;;  %v8930_v9 = vpack.c.bf16 %v9153_v42, %v9152_v25  ;;  %v10750_v32 = vpack.c.bf16 %v9178_v56, %v9177_v13  ;;  %v712_v54 = vld [vmem:[%s12007_s3 + $0x58] sm:$0xff] }
 0x28b   : > { %v3654_v29 = vsel %vm3614_vm3, %v10675_v47, -inf  ;;  %8907 = vmatpush3.bf16.xpose.msk.msra.mxu0 %vm10123_vm2, %v8902_v46  ;;  %8446 = vmatprep.mubr.msk.f32.mxu0 %vm769_vm1, %v693_v6 }
 0x28c   : > { %8916 = vmatprep.subr.msk.bf16.mxu0 %vm10123_vm2, %v8914_v1  ;;  %3655 = vmax.xlane.f32.xlu0 %v3654_v29  ;;  %v3651_v46 = vsel %vm3614_vm3, %v10699_v4, -inf  ;;  %12101 = vst [vmem:[#allocation6_spill] sm:$0xff] %v10750_v32  ;;  %v716_v29 = vld [vmem:[%s12007_s3 + $0x78] sm:$0xff] }
 0x28f   : > { %8440 = vmatmul.mubr.msk.f32.vlgmr.msra.gmra.mrb[38].mxu1 %vm769_vm1, %v692_v24 }
 0x290   : > { %8913 = vmatpush3.bf16.xpose.msk.msra.mxu1 %vm10123_vm2, %v8908_v43  ;;  %8453 = vmatprep.mubr.msk.f32.mxu1 %vm769_vm1, %v695_v44  ;;  %v715_v44 = vld [vmem:[%s12007_s3 + $0x70] sm:$0xff] }
 0x291   : > { %8922 = vmatprep.subr.msk.bf16.mxu1 %vm10123_vm2, %v8920_v62  ;;  %3622 = vmax.xlane.f32.xlu0 %v3621_v33 }
 0x292   : > { %8447 = vmatmul.mubr.msk.f32.vlgmr.msra.gmra.mrb[32].mxu0 %vm769_vm1, %v694_v20 }
 0x293   : > { %8919 = vmatpush3.bf16.xpose.msk.msra.mxu0 %vm10123_vm2, %v8914_v1  ;;  %8460 = vmatprep.mubr.msk.f32.mxu0 %vm769_vm1, %v697_v17 }
 0x294   : > { %8927 = vmatprep.subr.bf16.mxu0 %v8926_v30 }
 0x295   : > { %3652 = vmax.xlane.f32.xlu0 %v3651_v46 }
 0x297   : > { %8454 = vmatmul.mubr.msk.f32.vlgmr.msra.gmra.mrb[40].mxu1 %vm769_vm1, %v696_v0 }
 0x298   : > { %8925 = vmatpush3.bf16.xpose.msk.msra.mxu1 %vm10123_vm2, %v8920_v62  ;;  %8467 = vmatprep.mubr.msk.f32.mxu1 %vm769_vm1, %v699_v22 }
 0x299   : > { %8931 = vmatprep.subr.bf16.mxu1 %v8930_v9  ;;  %3631 = vmax.xlane.f32.xlu0 %v3630_v16 }
 0x29a   : > { %8461 = vmatmul.mubr.msk.f32.vlgmr.msra.gmra.mrb[34].mxu0 %vm769_vm1, %v698_v36  ;;  %v10823_v36 = vpop.permute.xlu0 %9285 }
 0x29b   : > { %8929 = vmatpush3.bf16.msra.mxu0 %v8926_v30  ;;  %v720_v30 = vld [vmem:[%s12007_s3 + $0x98] sm:$0xff]  ;;  %12102 = vst [vmem:[#allocation9_spill] sm:$0xff] %v10823_v36 }
 0x29c   : > { %8935 = vmatprep.subr.bf16.mxu0 %v10743_v45 }
 0x29d   : > { %3628 = vmax.xlane.f32.xlu0 %v3627_v15 }
 0x29e   : > { %v10825_v56 = vpop.permute.xlu0 %9295 }
 0x29f   : > { %8468 = vmatmul.mubr.msk.f32.vlgmr.msra.gmra.mrb[42].mxu1 %vm769_vm1, %v700_v18  ;;  %12103 = vst [vmem:[#allocation14_spill] sm:$0xff] %v10825_v56 }
 0x2a0   : > { %8933 = vmatpush3.bf16.msra.mxu1 %v8930_v9 }
 0x2a1   : > { %8939 = vmatprep.subr.bf16.mxu1 %v10750_v32 }
 0x2a2   : > { %v10827_v13 = vpop.permute.xlu0 %9315 }
 0x2a3   : > { %12104 = vst [vmem:[#allocation12_spill] sm:$0xff] %v10827_v13 }
 0x2a6   : > { %v10829_v15 = vpop.permute.xlu0 %9350 }
 0x2a7   : > { %12105 = vst [vmem:[#allocation11_spill] sm:$0xff] %v10829_v15 }
 0x2a8   : > { %v8273_v43 = vpop.f32.mrb[14].mxu1 }
 0x2a9   : > { %v10759_v50 = vadd.f32 %v8273_v43, %v708_v14  ;;  %v1113_v61 = vpop.f32.mrb[15].mxu1  ;;  %v722_v14 = vld [vmem:[%s12007_s3 + $0xa8] sm:$0xff] }
 0x2aa   : > { %v10761_v26 = vadd.f32 %v1113_v61, %v707_v27  ;;  %v10831_v18 = vpop.permute.xlu0 %9355  ;;  %v721_v27 = vld [vmem:[%s12007_s3 + $0xa0] sm:$0xff] }
 0x2ab   : > { %v3636_v52 = vsel %vm3614_vm3, %v10759_v50, -inf  ;;  %12106 = vst [vmem:[#allocation13_spill] sm:$0xff] %v10831_v18 }
 0x2ac   : > { %3637 = vmax.xlane.f32.xlu1 %v3636_v52  ;;  %v3633_v55 = vsel %vm3614_vm3, %v10761_v26, -inf }
 0x2b0   : > { %v8287_v8 = vpop.f32.mrb[16].mxu1  ;;  %3634 = vmax.xlane.f32.xlu1 %v3633_v55  ;;  %v10844_v55 = vpop.permute.xlu0 %9360 }
 0x2b1   : > { %v10773_v6 = vadd.f32 %v8287_v8, %v712_v54  ;;  %v1291_v1 = vpop.f32.mrb[17].mxu1  ;;  %v724_v54 = vld [vmem:[%s12007_s3 + $0xb8] sm:$0xff]  ;;  %12107 = vst [vmem:[#allocation30_spill] sm:$0xff] %v10844_v55 }
 0x2b2   : > { %v10775_v39 = vadd.f32 %v1291_v1, %v711_v21 }
 0x2b3   : > { %v3648_v23 = vsel %vm3614_vm3, %v10773_v6, -inf }
 0x2b4   : > { %3649 = vmax.xlane.f32.xlu1 %v3648_v23  ;;  %v3645_v24 = vsel %vm3614_vm3, %v10775_v39, -inf  ;;  %v723_v23 = vld [vmem:[%s12007_s3 + $0xb0] sm:$0xff] }
 0x2b8   : > { %v8301_v34 = vpop.f32.mrb[18].mxu1  ;;  %3646 = vmax.xlane.f32.xlu1 %v3645_v24 }
 0x2b9   : > { %v10787_v48 = vadd.f32 %v8301_v34, %v716_v29  ;;  %v1469_v10 = vpop.f32.mrb[19].mxu1  ;;  %v726_v34 = vld [vmem:[%s12007_s3 + $0xc8] sm:$0xff] }
 0x2ba   : > { %v10789_v51 = vadd.f32 %v1469_v10, %v715_v44 }
 0x2bb   : > { %v3660_v62 = vsel %vm3614_vm3, %v10787_v48, -inf }
 0x2bc   : > { %3661 = vmax.xlane.f32.xlu1 %v3660_v62  ;;  %v3657_v33 = vsel %vm3614_vm3, %v10789_v51, -inf }
 0x2c0   : > { %3658 = vmax.xlane.f32.xlu1 %v3657_v33  ;;  %v10864_v33 = vpop.permute.xlu1 %9365 }
 0x2c1   : > { %12108 = vst [vmem:[#allocation31_spill] sm:$0xff] %v10864_v33 }
 0x2c9   : > { %v8308_v20 = vpop.f32.mrb[12].mxu0 }
 0x2ca   : > { %v10801_v17 = vadd.f32 %v8308_v20, %v718_v35  ;;  %v1558_v31 = vpop.f32.mrb[13].mxu0  ;;  %v725_v20 = vld [vmem:[%s12007_s3 + $0xc0] sm:$0xff] }
 0x2cb   : > { %v10803_v42 = vadd.f32 %v1558_v31, %v717_v19  ;;  %v10869_v19 = vpop.permute.xlu0 %9370 }
 0x2cc   : > { %v3666_v25 = vsel %vm3614_vm3, %v10801_v17, -inf  ;;  %12109 = vst [vmem:[#allocation32_spill] sm:$0xff] %v10869_v19 }
 0x2cd   : > { %3667 = vmax.xlane.f32.xlu0 %v3666_v25  ;;  %v3663_v46 = vsel %vm3614_vm3, %v10803_v42, -inf }
 0x2d1   : > { %v8315_v0 = vpop.f32.mrb[20].mxu1  ;;  %3664 = vmax.xlane.f32.xlu0 %v3663_v46 }
 0x2d2   : > { %v10815_v22 = vadd.f32 %v8315_v0, %v720_v30  ;;  %v1647_v2 = vpop.f32.mrb[21].mxu1  ;;  %v728_v30 = vld [vmem:[%s12007_s3 + $0xd8] sm:$0xff] }
 0x2d3   : > { %v10817_v40 = vadd.f32 %v1647_v2, %v719_v3 }
 0x2d4   : > { %v3672_v9 = vsel %vm3614_vm3, %v10815_v22, -inf }
 0x2d5   : > { %3673 = vmax.xlane.f32.xlu1 %v3672_v9  ;;  %v3669_v16 = vsel %vm3614_vm3, %v10817_v40, -inf  ;;  %v727_v9 = vld [vmem:[%s12007_s3 + $0xd0] sm:$0xff] }
 0x2d9   : > { %3670 = vmax.xlane.f32.xlu1 %v3669_v16 }
 0x2ee   : > { %v3644_v16 = vpop.xlane.xlu0 %3643 }
 0x31d   : > { %v8322_v43 = vpop.f32.mrb[14].mxu0 }
 0x31e   : > { %v10839_v61 = vadd.f32 %v8322_v43, %v722_v14  ;;  %v1736_v52 = vpop.f32.mrb[15].mxu0 }
 0x31f   : > { %v10846_v8 = vadd.f32 %v1736_v52, %v721_v27  ;;  %v10887_v27 = vpop.permute.xlu1 %9375  ;;  %v730_v52 = vld [vmem:[%s12007_s3 + $0xe8] sm:$0xff] }
 0x320   : > { %v3678_v21 = vsel %vm3614_vm3, %v10839_v61, -inf  ;;  %12110 = vst [vmem:[#allocation33_spill] sm:$0xff] %v10887_v27 }
 0x321   : > { %3679 = vmax.xlane.f32.xlu0 %v3678_v21  ;;  %v3675_v62 = vsel %vm3614_vm3, %v10846_v8, -inf }
 0x322   : > { %v8329_v1 = vpop.f32.mrb[22].mxu1 }
 0x323   : > { %v10853_v29 = vadd.f32 %v8329_v1, %v724_v54  ;;  %v1825_v24 = vpop.f32.mrb[23].mxu1 }
 0x324   : > { %v10858_v44 = vadd.f32 %v1825_v24, %v723_v23  ;;  %v729_v24 = vld [vmem:[%s12007_s3 + $0xe0] sm:$0xff] }
 0x325   : > { %v3684_v10 = vsel %vm3614_vm3, %v10853_v29, -inf  ;;  %v8336_v35 = vpop.f32.mrb[16].mxu0  ;;  %3676 = vmax.xlane.f32.xlu0 %v3675_v62  ;;  %v3620_v62 = vpop.xlane.xlu1 %3619 }
 0x326   : > { %3685 = vmax.xlane.f32.xlu1 %v3684_v10  ;;  %v10871_v31 = vadd.f32 %v8336_v35, %v726_v34  ;;  %v1914_v25 = vpop.f32.mrb[17].mxu0  ;;  %v3681_v0 = vsel %vm3614_vm3, %v10858_v44, -inf  ;;  %v732_v35 = vld [vmem:[%s12007_s3 + $0xf8] sm:$0xff] }
 0x327   : > { %v10876_v46 = vadd.f32 %v1914_v25, %v725_v20  ;;  %v3617_v20 = vpop.xlane.xlu0 %3616 }
 0x328   : > { %v3690_v3 = vsel %vm3614_vm3, %v10871_v31, -inf }
 0x329   : > { %3691 = vmax.xlane.f32.xlu0 %v3690_v3  ;;  %v3687_v1 = vsel %vm3614_vm3, %v10876_v46, -inf }
 0x32a   : > { %v8343_v2 = vpop.f32.mrb[24].mxu1  ;;  %3682 = vmax.xlane.f32.xlu1 %v3681_v0 }
 0x32b   : > { %v10885_v14 = vadd.f32 %v8343_v2, %v728_v30  ;;  %v2003_v43 = vpop.f32.mrb[25].mxu1  ;;  %v731_v2 = vld [vmem:[%s12007_s3 + $0xf0] sm:$0xff] }
 0x32c   : > { %v10892_v54 = vadd.f32 %v2003_v43, %v727_v9  ;;  %v3808_v9 = vsub.f32 %v10521_v58, %v3620_v62  ;;  %v733_v58 = vld [vmem:[%s12007_s3 + $0x100] sm:$0xff]  ;;  %v3641_v62 = vpop.xlane.xlu0 %3640 }
 0x32d   : > { %v3696_v21 = vsel %vm3614_vm3, %v10885_v14, -inf  ;;  %v8350_v23 = vpop.f32.mrb[18].mxu0  ;;  %3688 = vmax.xlane.f32.xlu0 %v3687_v1  ;;  %v734_v1 = vld [vmem:[%s12007_s3 + $0x108] sm:$0xff] }
 0x32e   : > { %3697 = vmax.xlane.f32.xlu1 %v3696_v21  ;;  %v10901_v34 = vadd.f32 %v8350_v23, %v730_v52  ;;  %v2092_v10 = vpop.f32.mrb[19].mxu0  ;;  %v3693_v30 = vsel %vm3614_vm3, %v10892_v54, -inf  ;;  %v3807_v21 = vsub.f32 %v10551_v49, %v3617_v20  ;;  %v3873_v49 = vmul.f32 1.442695, %v3808_v9 }
 0x32f   : > { %v10906_v25 = vadd.f32 %v2092_v10, %v729_v24 }
 0x330   : > { %v3702_v0 = vsel %vm3614_vm3, %v10901_v34, -inf  ;;  %9434 = vpow2.f32 %v3873_v49 }
 0x331   : > { %3703 = vmax.xlane.f32.xlu0 %v3702_v0  ;;  %v3699_v10 = vsel %vm3614_vm3, %v10906_v25, -inf  ;;  %v3816_v0 = vsub.f32 %v10541_v41, %v3644_v16  ;;  %v735_v41 = vld [vmem:[%s12007_s3 + $0x110] sm:$0xff] }
 0x332   : > { %v8357_v3 = vpop.f32.mrb[26].mxu1  ;;  %3694 = vmax.xlane.f32.xlu1 %v3693_v30 }
 0x333   : > { %v10916_v43 = vadd.f32 %v8357_v3, %v732_v35  ;;  %v2181_v52 = vpop.f32.mrb[27].mxu1  ;;  %v3871_v3 = vmul.f32 1.442695, %v3807_v21  ;;  %v3656_v21 = vpop.xlane.xlu0 %3655 }
 0x334   : > { %v10922_v23 = vadd.f32 %v2181_v52, %v731_v2  ;;  %v3626_v2 = vpop.xlane.xlu1 %3625  ;;  %v736_v52 = vld [vmem:[%s12007_s3 + $0x118] sm:$0xff] }
 0x335   : > { %v3708_v24 = vsel %vm3614_vm3, %v10916_v43, -inf  ;;  %v8364_v30 = vpop.f32.mrb[20].mxu0  ;;  %3700 = vmax.xlane.f32.xlu0 %v3699_v10  ;;  %v3810_v16 = vsub.f32 %v10577_v60, %v3626_v2  ;;  %9436 = vpow2.f32 %v3871_v3 }
 0x336   : > { %3709 = vmax.xlane.f32.xlu1 %v3708_v24  ;;  %v10931_v35 = vadd.f32 %v8364_v30, %v734_v1  ;;  %v2270_v20 = vpop.f32.mrb[21].mxu0  ;;  %v3705_v24 = vsel %vm3614_vm3, %v10922_v23, -inf }
 0x337   : > { %v10937_v27 = vadd.f32 %v2270_v20, %v733_v58  ;;  %v3889_v58 = vmul.f32 1.442695, %v3816_v0  ;;  %v3815_v20 = vsub.f32 %v10575_v7, %v3641_v62  ;;  %v737_v0 = vld [vmem:[%s12007_s3 + $0x120] sm:$0xff]  ;;  %v3877_v7 = vmul.f32 1.442695, %v3810_v16 }
 0x338   : > { %v3714_v9 = vsel %vm3614_vm3, %v10931_v35, -inf }
 0x339   : > { %3715 = vmax.xlane.f32.xlu0 %v3714_v9  ;;  %v3711_v60 = vsel %vm3614_vm3, %v10937_v27, -inf  ;;  %9438 = vpow2.f32 %v3889_v58  ;;  %v3887_v2 = vmul.f32 1.442695, %v3815_v20 }
 0x33a   : > { %v8371_v10 = vpop.f32.mrb[28].mxu1  ;;  %3706 = vmax.xlane.f32.xlu1 %v3705_v24  ;;  %v738_v24 = vld [vmem:[%s12007_s3 + $0x128] sm:$0xff]  ;;  %9440 = vpow2.f32 %v3877_v7  ;;  %v739_v7 = vld [vmem:[%s12007_s3 + $0x130] sm:$0xff] }
 0x33b   : > { %v10947_v1 = vadd.f32 %v8371_v10, %v736_v52  ;;  %v2359_v30 = vpop.f32.mrb[29].mxu1  ;;  %v740_v52 = vld [vmem:[%s12007_s3 + $0x138] sm:$0xff]  ;;  %v3623_v10 = vpop.xlane.xlu0 %3622  ;;  %9442 = vpow2.f32 %v3887_v2 }
 0x33c   : > { %v10953_v9 = vadd.f32 %v2359_v30, %v735_v41  ;;  %v3809_v20 = vsub.f32 %v10684_v63, %v3623_v10  ;;  %v3820_v63 = vsub.f32 %v10675_v47, %v3656_v21 }
 0x33d   : > { %v3720_v19 = vsel %vm3614_vm3, %v10947_v1, -inf  ;;  %v8378_v49 = vpop.f32.mrb[22].mxu0  ;;  %3712 = vmax.xlane.f32.xlu0 %v3711_v60 }
 0x33e   : > { %3721 = vmax.xlane.f32.xlu1 %v3720_v19  ;;  %v10962_v62 = vadd.f32 %v8378_v49, %v738_v24  ;;  %v2448_v3 = vpop.f32.mrb[23].mxu0  ;;  %v3717_v19 = vsel %vm3614_vm3, %v10953_v9, -inf  ;;  %v10976_v24 = vpop.eup %9434  ;;  %v3875_v10 = vmul.f32 1.442695, %v3809_v20 }
 0x33f   : > { %v10967_v41 = vadd.f32 %v2448_v3, %v737_v0  ;;  %v10982_v3 = vpop.eup %9436 }
 0x340   : > { %v3726_v30 = vsel %vm3614_vm3, %v10962_v62, -inf  ;;  %v3999_v33 = vsel %vm3614_vm3, %v10982_v3, 0.0  ;;  %9444 = vpow2.f32 %v3875_v10 }
 0x341   : > { %3727 = vmax.xlane.f32.xlu0 %v3726_v30  ;;  %v3723_v0 = vsel %vm3614_vm3, %v10967_v41, -inf }
 0x342   : > { %v8385_v60 = vpop.f32.mrb[30].mxu1  ;;  %3718 = vmax.xlane.f32.xlu1 %v3717_v19  ;;  %v3653_v19 = vpop.xlane.xlu0 %3652 }
 0x343   : > { %v10973_v16 = vadd.f32 %v8385_v60, %v740_v52  ;;  %v2537_v58 = vpop.f32.mrb[31].mxu1  ;;  %v4002_v60 = vsel %vm3614_vm3, %v10976_v24, 0.0  ;;  %v10994_v11 = vpop.eup %9438  ;;  %v3819_v47 = vsub.f32 %v10699_v4, %v3653_v19 }
 0x344   : > { %v10988_v30 = vadd.f32 %v2537_v58, %v739_v7  ;;  %12111 = vst [vmem:[#allocation34_spill] sm:$0xff] %v10994_v11  ;;  %v10997_v21 = vpop.eup %9440  ;;  %v4026_v58 = vsel %vm3614_vm3, %v10994_v11, 0.0  ;;  %v3638_v4 = vpop.xlane.xlu1 %3637 }
 0x345   : > { %v3732_v49 = vsel %vm3614_vm3, %v10973_v16, -inf  ;;  %v8392_v52 = vpop.f32.mrb[24].mxu0  ;;  %3724 = vmax.xlane.f32.xlu0 %v3723_v0  ;;  %v3897_v0 = vmul.f32 1.442695, %v3820_v63  ;;  %v11003_v7 = vpop.eup %9442  ;;  %v3895_v19 = vmul.f32 1.442695, %v3819_v47 }
 0x346   : > { %3733 = vmax.xlane.f32.xlu1 %v3732_v49  ;;  %v2626_v2 = vpop.f32.mrb[25].mxu0  ;;  %v3729_v20 = vsel %vm3614_vm3, %v10988_v30, -inf  ;;  %12112 = vst [vmem:[#allocation35_spill] sm:$0xff] %v11003_v7  ;;  %v4008_v13 = vsel %vm3614_vm3, %v10997_v21, 0.0  ;;  %v4023_v57 = vsel %vm3614_vm3, %v11003_v7, 0.0  ;;  %v3632_v15 = vpop.xlane.xlu0 %3631 }
 0x347   : > { %9446 = vpow2.f32 %v3897_v0 }
 0x348   : > { %9448 = vpow2.f32 %v3895_v19 }
 0x349   : > { %4003 = vadd.xlane.f32.xlu0 %v4002_v60  ;;  %v742_v60 = vld [vmem:[%s12007_s3 + $0x148] sm:$0xff] }
 0x34a   : > { %v8399_v55 = vpop.f32.mrb[32].mxu1  ;;  %4000 = vadd.xlane.f32.xlu1 %v3999_v33  ;;  %v744_v33 = vld [vmem:[%s12007_s3 + $0x158] sm:$0xff]  ;;  %v11013_v18 = vadd.f32 %v8392_v52, %v742_v60  ;;  %v3814_v52 = vsub.f32 %v10759_v50, %v3638_v4  ;;  %v11031_v56 = vpop.eup %9444  ;;  %v3812_v50 = vsub.f32 %v10716_v53, %v3632_v15 }
 0x34b   : > { %v2715_v49 = vpop.f32.mrb[33].mxu1  ;;  %v11015_v37 = vadd.f32 %v8399_v55, %v744_v33  ;;  %v3635_v55 = vpop.xlane.xlu1 %3634  ;;  %v4005_v7 = vsel %vm3614_vm3, %v11031_v56, 0.0  ;;  %v748_v53 = vld [vmem:[%s12007_s3 + $0x178] sm:$0xff] }
 0x34c   : > { %v3738_v33 = vsel %vm3614_vm3, %v11013_v18, -inf  ;;  %v3885_v4 = vmul.f32 1.442695, %v3814_v52  ;;  %v3813_v19 = vsub.f32 %v10761_v26, %v3635_v55  ;;  %v3881_v26 = vmul.f32 1.442695, %v3812_v50 }
 0x34d   : > { %v8406_v63 = vpop.f32.mrb[26].mxu0  ;;  %4027 = vadd.xlane.f32.xlu0 %v4026_v58  ;;  %v741_v58 = vld [vmem:[%s12007_s3 + $0x140] sm:$0xff]  ;;  %v3744_v60 = vsel %vm3614_vm3, %v11015_v37, -inf }
 0x34e   : > { %3730 = vmax.xlane.f32.xlu1 %v3729_v20  ;;  %v11011_v10 = vpop.f32.mrb[27].mxu0  ;;  %v11025_v47 = vadd.f32 %v2626_v2, %v741_v58  ;;  %v3629_v58 = vpop.xlane.xlu0 %3628  ;;  %9450 = vpow2.f32 %v3885_v4  ;;  %v3883_v55 = vmul.f32 1.442695, %v3813_v19 }
 0x34f   : > { %9452 = vpow2.f32 %v3881_v26 }
 0x350   : > { %v3735_v11 = vsel %vm3614_vm3, %v11025_v47, -inf  ;;  %9454 = vpow2.f32 %v3883_v55 }
 0x351   : > { %4024 = vadd.xlane.f32.xlu0 %v4023_v57  ;;  %v743_v57 = vld [vmem:[%s12007_s3 + $0x150] sm:$0xff]  ;;  %v11048_v59 = vpop.eup %9446 }
 0x352   : > { %v8413_v20 = vpop.f32.mrb[34].mxu1  ;;  %4009 = vadd.xlane.f32.xlu1 %v4008_v13  ;;  %v11042_v5 = vadd.f32 %v2715_v49, %v743_v57  ;;  %12113 = vst [vmem:[#allocation36_spill] sm:$0xff] %v11048_v59  ;;  %v3811_v49 = vsub.f32 %v10732_v12, %v3629_v58  ;;  %v11062_v28 = vpop.eup %9448  ;;  %v747_v12 = vld [vmem:[%s12007_s3 + $0x170] sm:$0xff] }
 0x353   : > { %v2893_v0 = vpop.f32.mrb[35].mxu1  ;;  %12114 = vst [vmem:[#allocation37_spill] sm:$0xff] %v11062_v28 }
 0x354   : > { %v3741_v57 = vsel %vm3614_vm3, %v11042_v5, -inf  ;;  %v3879_v4 = vmul.f32 1.442695, %v3811_v49  ;;  %v11074_v58 = vadd.f32 %v2893_v0, %v747_v12 }
 0x355   : > { %v11036_v13 = vpop.f32.mrb[28].mxu0  ;;  %3739 = vmax.xlane.f32.xlu0 %v3738_v33  ;;  %v4038_v33 = vsel %vm3614_vm3, %v11048_v59, 0.0  ;;  %v4035_v59 = vsel %vm3614_vm3, %v11062_v28, 0.0 }
 0x356   : > { %3745 = vmax.xlane.f32.xlu1 %v3744_v60  ;;  %v11039_v2 = vpop.f32.mrb[29].mxu0  ;;  %v11056_v60 = vadd.f32 %v8413_v20, %v748_v53  ;;  %v3650_v20 = vpop.xlane.xlu1 %3649  ;;  %9456 = vpow2.f32 %v3879_v4  ;;  %v3753_v55 = vsel %vm3614_vm3, %v11074_v58, -inf }
 0x358   : > { %v3756_v53 = vsel %vm3614_vm3, %v11056_v60, -inf  ;;  %v11095_v12 = vpop.eup %9450 }
 0x359   : > { %3736 = vmax.xlane.f32.xlu0 %v3735_v11  ;;  %v746_v11 = vld [vmem:[%s12007_s3 + $0x168] sm:$0xff]  ;;  %12116 = vst [vmem:[#allocation39_spill] sm:$0xff] %v11095_v12 }
 0x35a   : > { %v11053_v15 = vpop.f32.mrb[36].mxu1  ;;  %4006 = vadd.xlane.f32.xlu1 %v4005_v7  ;;  %v11072_v19 = vadd.f32 %v8406_v63, %v746_v11  ;;  %v3818_v63 = vsub.f32 %v10773_v6, %v3650_v20  ;;  %v3647_v0 = vpop.xlane.xlu1 %3646 }
 0x35b   : > { %v3071_v52 = vpop.f32.mrb[37].mxu1  ;;  %v3817_v6 = vsub.f32 %v10775_v39, %v3647_v0  ;;  %v11102_v20 = vpop.eup %9452 }
 0x35c   : > { %v3750_v11 = vsel %vm3614_vm3, %v11072_v19, -inf  ;;  %v3893_v4 = vmul.f32 1.442695, %v3818_v63  ;;  %12117 = vst [vmem:[#allocation40_spill] sm:$0xff] %v11102_v20  ;;  %v4014_v36 = vsel %vm3614_vm3, %v11102_v20, 0.0 }
 0x35d   : > { %v11070_v7 = vpop.f32.mrb[30].mxu0  ;;  %4039 = vadd.xlane.f32.xlu0 %v4038_v33  ;;  %v745_v33 = vld [vmem:[%s12007_s3 + $0x160] sm:$0xff]  ;;  %v3891_v39 = vmul.f32 1.442695, %v3817_v6 }
 0x35e   : > { %3742 = vmax.xlane.f32.xlu1 %v3741_v57  ;;  %v3160_v50 = vpop.f32.mrb[31].mxu0  ;;  %v11089_v49 = vadd.f32 %v11011_v10, %v745_v33  ;;  %v4020_v10 = vsel %vm3614_vm3, %v11095_v12, 0.0  ;;  %v11108_v33 = vpop.eup %9454  ;;  %9458 = vpow2.f32 %v3893_v4 }
 0x35f   : > { %12118 = vst [vmem:[#allocation41_spill] sm:$0xff] %v11108_v33  ;;  %v4017_v12 = vsel %vm3614_vm3, %v11108_v33, 0.0  ;;  %9460 = vpow2.f32 %v3891_v39 }
 0x360   : > { %12115 = vst [vmem:[#allocation38_spill] sm:$0xff] %v11089_v49  ;;  %v11123_v32 = vpop.eup %9456 }
 0x361   : > { %4036 = vadd.xlane.f32.xlu0 %v4035_v59  ;;  %12120 = vst [vmem:[#allocation43_spill] sm:$0xff] %v11123_v32  ;;  %v4011_v33 = vsel %vm3614_vm3, %v11123_v32, 0.0 }
 0x362   : > { %v11083_v57 = vpop.f32.mrb[38].mxu1  ;;  %3757 = vmax.xlane.f32.xlu1 %v3756_v53  ;;  %v3747_v53 = vsel %vm3614_vm3, %v11089_v49, -inf  ;;  %v750_v49 = vld [vmem:[%s12007_s3 + $0x188] sm:$0xff] }
 0x363   : > { %v11085_v26 = vpop.f32.mrb[39].mxu1 }
 0x365   : > { %v11097_v28 = vpop.f32.mrb[32].mxu0  ;;  %3751 = vmax.xlane.f32.xlu0 %v3750_v11 }
 0x366   : > { %3754 = vmax.xlane.f32.xlu1 %v3753_v55  ;;  %v11099_v59 = vpop.f32.mrb[33].mxu0  ;;  %v751_v55 = vld [vmem:[%s12007_s3 + $0x190] sm:$0xff] }
 0x367   : > { %v11117_v0 = vadd.f32 %v3071_v52, %v751_v55  ;;  %v3662_v52 = vpop.xlane.xlu1 %3661 }
 0x369   : > { %3748 = vmax.xlane.f32.xlu0 %v3747_v53  ;;  %12119 = vst [vmem:[#allocation42_spill] sm:$0xff] %v11117_v0  ;;  %v11136_v53 = vadd.f32 %v11036_v13, %v750_v49  ;;  %v3765_v20 = vsel %vm3614_vm3, %v11117_v0, -inf  ;;  %v3822_v13 = vsub.f32 %v10787_v48, %v3662_v52  ;;  %v11159_v0 = vpop.eup %9458 }
 0x36a   : > { %v11113_v11 = vpop.f32.mrb[40].mxu1  ;;  %4021 = vadd.xlane.f32.xlu1 %v4020_v10  ;;  %v753_v10 = vld [vmem:[%s12007_s3 + $0x1a0] sm:$0xff]  ;;  %12123 = vst [vmem:[#allocation46_spill] sm:$0xff] %v11159_v0  ;;  %v4032_v52 = vsel %vm3614_vm3, %v11159_v0, 0.0 }
 0x36b   : > { %v11115_v63 = vpop.f32.mrb[41].mxu1  ;;  %12121 = vst [vmem:[#allocation44_spill] sm:$0xff] %v11136_v53  ;;  %v11138_v55 = vadd.f32 %v3160_v50, %v753_v10  ;;  %v3659_v50 = vpop.xlane.xlu1 %3658  ;;  %v3762_v32 = vsel %vm3614_vm3, %v11136_v53, -inf  ;;  %v754_v53 = vld [vmem:[%s12007_s3 + $0x1a8] sm:$0xff] }
 0x36c   : > { %v3821_v48 = vsub.f32 %v10789_v51, %v3659_v50 }
 0x36d   : > { %v11131_v4 = vpop.f32.mrb[34].mxu0  ;;  %4015 = vadd.xlane.f32.xlu0 %v4014_v36  ;;  %12122 = vst [vmem:[#allocation45_spill] sm:$0xff] %v11138_v55  ;;  %v3771_v10 = vsel %vm3614_vm3, %v11138_v55, -inf  ;;  %v11172_v55 = vpop.eup %9460 }
 0x36e   : > { %4018 = vadd.xlane.f32.xlu1 %v4017_v12  ;;  %v11133_v6 = vpop.f32.mrb[35].mxu0  ;;  %v749_v12 = vld [vmem:[%s12007_s3 + $0x180] sm:$0xff]  ;;  %12124 = vst [vmem:[#allocation47_spill] sm:$0xff] %v11172_v55  ;;  %v3899_v51 = vmul.f32 1.442695, %v3821_v48  ;;  %v4029_v50 = vsel %vm3614_vm3, %v11172_v55, 0.0 }
 0x36f   : > { %v11153_v49 = vadd.f32 %v11039_v2, %v749_v12 }
 0x371   : > { %4012 = vadd.xlane.f32.xlu0 %v4011_v33  ;;  %v3901_v33 = vmul.f32 1.442695, %v3822_v13  ;;  %v3759_v12 = vsel %vm3614_vm3, %v11153_v49, -inf }
 0x372   : > { %v11147_v36 = vpop.f32.mrb[42].mxu1  ;;  %3766 = vmax.xlane.f32.xlu1 %v3765_v20  ;;  %v752_v20 = vld [vmem:[%s12007_s3 + $0x198] sm:$0xff] }
 0x373   : > { %v11149_v39 = vpop.f32.mrb[43].mxu1  ;;  %v11166_v2 = vadd.f32 %v11053_v15, %v752_v20  ;;  %9462 = vpow2.f32 %v3901_v33  ;;  %v11181_v15 = vadd.f32 %v11070_v7, %v754_v53  ;;  %v3668_v20 = vpop.xlane.xlu0 %3667  ;;  %v757_v33 = vld [vmem:[%s12007_s3 + $0x1c0] sm:$0xff] }
 0x374   : > { %9464 = vpow2.f32 %v3899_v51  ;;  %v3824_v51 = vsub.f32 %v10801_v17, %v3668_v20 }
 0x375   : > { %3763 = vmax.xlane.f32.xlu0 %v3762_v32  ;;  %v755_v32 = vld [vmem:[%s12007_s3 + $0x1b0] sm:$0xff]  ;;  %v3774_v48 = vsel %vm3614_vm3, %v11181_v15, -inf }
 0x376   : > { %3772 = vmax.xlane.f32.xlu1 %v3771_v10  ;;  %v11184_v13 = vadd.f32 %v11085_v26, %v755_v32  ;;  %v3768_v10 = vsel %vm3614_vm3, %v11166_v2, -inf  ;;  %v11200_v26 = vadd.f32 %v11099_v59, %v757_v33  ;;  %v3674_v32 = vpop.xlane.xlu1 %3673  ;;  %v760_v33 = vld [vmem:[%s12007_s3 + $0x1d8] sm:$0xff]  ;;  %v3905_v20 = vmul.f32 1.442695, %v3824_v51 }
 0x378   : > { %v3777_v53 = vsel %vm3614_vm3, %v11184_v13, -inf  ;;  %v3783_v59 = vsel %vm3614_vm3, %v11200_v26, -inf  ;;  %9466 = vpow2.f32 %v3905_v20 }
 0x379   : > { %3760 = vmax.xlane.f32.xlu0 %v3759_v12  ;;  %v758_v12 = vld [vmem:[%s12007_s3 + $0x1c8] sm:$0xff] }
 0x37a   : > { %4033 = vadd.xlane.f32.xlu1 %v4032_v52  ;;  %v756_v52 = vld [vmem:[%s12007_s3 + $0x1b8] sm:$0xff] }
 0x37b   : > { %v11197_v7 = vadd.f32 %v11083_v57, %v756_v52  ;;  %v3665_v57 = vpop.xlane.xlu0 %3664 }
 0x37c   : > { %v3823_v17 = vsub.f32 %v10803_v42, %v3665_v57  ;;  %v762_v42 = vld [vmem:[%s12007_s3 + $0x1e8] sm:$0xff] }
 0x37d   : > { %3769 = vmax.xlane.f32.xlu0 %v3768_v10  ;;  %v3780_v10 = vsel %vm3614_vm3, %v11197_v7, -inf  ;;  %v11217_v52 = vpop.eup %9462  ;;  %v11244_v57 = vadd.f32 %v11131_v4, %v762_v42 }
 0x37e   : > { %4030 = vadd.xlane.f32.xlu1 %v4029_v50  ;;  %v11211_v50 = vadd.f32 %v11097_v28, %v758_v12  ;;  %v3826_v28 = vsub.f32 %v10815_v22, %v3674_v32  ;;  %v4044_v12 = vsel %vm3614_vm3, %v11217_v52, 0.0  ;;  %v11231_v55 = vpop.eup %9464  ;;  %v3903_v22 = vmul.f32 1.442695, %v3823_v17 }
 0x37f   : > { %12125 = vst [vmem:[#allocation48_spill] sm:$0xff] %v11244_v57 }
 0x380   : > { %v3786_v0 = vsel %vm3614_vm3, %v11211_v50, -inf  ;;  %9468 = vpow2.f32 %v3903_v22 }
 0x381   : > { %3775 = vmax.xlane.f32.xlu0 %v3774_v48  ;;  %v11225_v48 = vadd.f32 %v11113_v11, %v760_v33  ;;  %v3909_v11 = vmul.f32 1.442695, %v3826_v28  ;;  %v3798_v28 = vsel %vm3614_vm3, %v11244_v57, -inf }
 0x382   : > { %3778 = vmax.xlane.f32.xlu1 %v3777_v53  ;;  %v3671_v53 = vpop.xlane.xlu1 %3670 }
 0x383   : > { %v3825_v32 = vsub.f32 %v10817_v40, %v3671_v53  ;;  %v3792_v33 = vsel %vm3614_vm3, %v11225_v48, -inf  ;;  %v764_v40 = vld [vmem:[%s12007_s3 + $0x1f8] sm:$0xff]  ;;  %9470 = vpow2.f32 %v3909_v11  ;;  %v763_v53 = vld [vmem:[%s12007_s3 + $0x1f0] sm:$0xff] }
 0x384   : > { %v11260_v17 = vadd.f32 %v11147_v36, %v764_v40 }
 0x385   : > { %3781 = vmax.xlane.f32.xlu0 %v3780_v10  ;;  %v4041_v10 = vsel %vm3614_vm3, %v11231_v55, 0.0 }
 0x386   : > { %3784 = vmax.xlane.f32.xlu1 %v3783_v59  ;;  %v759_v59 = vld [vmem:[%s12007_s3 + $0x1d0] sm:$0xff]  ;;  %12126 = vst [vmem:[#allocation49_spill] sm:$0xff] %v11260_v17  ;;  %v3804_v36 = vsel %vm3614_vm3, %v11260_v17, -inf }
 0x387   : > { %v11241_v51 = vadd.f32 %v11115_v63, %v759_v59  ;;  %v3907_v63 = vmul.f32 1.442695, %v3825_v32  ;;  %v11276_v59 = vpop.eup %9466 }
 0x388   : > { %v4050_v11 = vsel %vm3614_vm3, %v11276_v59, 0.0 }
 0x389   : > { %3787 = vmax.xlane.f32.xlu0 %v3786_v0  ;;  %v761_v0 = vld [vmem:[%s12007_s3 + $0x1e0] sm:$0xff]  ;;  %v3789_v20 = vsel %vm3614_vm3, %v11241_v51, -inf  ;;  %9472 = vpow2.f32 %v3907_v63 }
 0x38a   : > { %4045 = vadd.xlane.f32.xlu1 %v4044_v12  ;;  %v11257_v4 = vadd.f32 %v11133_v6, %v761_v0  ;;  %v11270_v12 = vadd.f32 %v11149_v39, %v763_v53  ;;  %v11278_v42 = vpop.eup %9468 }
 0x38c   : > { %12127 = vst [vmem:[#allocation50_spill] sm:$0xff] %v11270_v12  ;;  %v3795_v6 = vsel %vm3614_vm3, %v11257_v4, -inf  ;;  %v3801_v22 = vsel %vm3614_vm3, %v11270_v12, -inf }
 0x38d   : > { %3793 = vmax.xlane.f32.xlu0 %v3792_v33  ;;  %v11284_v39 = vpop.eup %9470 }
 0x38e   : > { %4042 = vadd.xlane.f32.xlu1 %v4041_v10  ;;  %v4056_v32 = vsel %vm3614_vm3, %v11284_v39, 0.0  ;;  %v4047_v10 = vsel %vm3614_vm3, %v11278_v42, 0.0 }
 0x391   : > { %3799 = vmax.xlane.f32.xlu0 %v3798_v28 }
 0x392   : > { %3790 = vmax.xlane.f32.xlu1 %v3789_v20 }
 0x393   : > { %v11290_v33 = vpop.eup %9472 }
 0x394   : > { %v4053_v0 = vsel %vm3614_vm3, %v11290_v33, 0.0 }
 0x395   : > { %3805 = vmax.xlane.f32.xlu0 %v3804_v36 }
 0x396   : > { %3796 = vmax.xlane.f32.xlu1 %v3795_v6 }
 0x399   : > { %4051 = vadd.xlane.f32.xlu0 %v4050_v11 }
 0x39a   : > { %3802 = vmax.xlane.f32.xlu1 %v3801_v22 }
 0x39d   : > { %4048 = vadd.xlane.f32.xlu0 %v4047_v10 }
 0x39e   : > { %4057 = vadd.xlane.f32.xlu1 %v4056_v32 }
 0x3a2   : > { %4054 = vadd.xlane.f32.xlu1 %v4053_v0 }
 0x3ae   : > { %v3680_v40 = vpop.xlane.xlu0 %3679 }
 0x3af   : > { %v3828_v63 = vsub.f32 %v10839_v61, %v3680_v40 }
 0x3b1   : > { %v3913_v20 = vmul.f32 1.442695, %v3828_v63 }
 0x3b2   : > { %v3677_v53 = vpop.xlane.xlu0 %3676 }
 0x3b3   : > { %v3686_v28 = vpop.xlane.xlu1 %3685  ;;  %9474 = vpow2.f32 %v3913_v20  ;;  %v3827_v36 = vsub.f32 %v10846_v8, %v3677_v53 }
 0x3b4   : > { %v3830_v6 = vsub.f32 %v10853_v29, %v3686_v28 }
 0x3b5   : > { %v3911_v22 = vmul.f32 1.442695, %v3827_v36 }
 0x3b6   : > { %v3917_v11 = vmul.f32 1.442695, %v3830_v6  ;;  %v3692_v32 = vpop.xlane.xlu0 %3691 }
 0x3b7   : > { %v3683_v17 = vpop.xlane.xlu1 %3682  ;;  %9476 = vpow2.f32 %v3911_v22  ;;  %v3832_v12 = vsub.f32 %v10871_v31, %v3692_v32 }
 0x3b8   : > { %v3829_v10 = vsub.f32 %v10858_v44, %v3683_v17  ;;  %9478 = vpow2.f32 %v3917_v11 }
 0x3b9   : > { %v3921_v8 = vmul.f32 1.442695, %v3832_v12 }
 0x3ba   : > { %v3915_v0 = vmul.f32 1.442695, %v3829_v10  ;;  %v3689_v40 = vpop.xlane.xlu0 %3688 }
 0x3bb   : > { %v3698_v61 = vpop.xlane.xlu1 %3697  ;;  %v3831_v28 = vsub.f32 %v10876_v46, %v3689_v40 }
 0x3bc   : > { %v3834_v63 = vsub.f32 %v10885_v14, %v3698_v61  ;;  %9480 = vpow2.f32 %v3915_v0 }
 0x3bd   : > { %v11300_v20 = vpop.eup %9474  ;;  %v3919_v11 = vmul.f32 1.442695, %v3831_v28 }
 0x3be   : > { %v3925_v29 = vmul.f32 1.442695, %v3834_v63  ;;  %v3704_v6 = vpop.xlane.xlu0 %3703  ;;  %v4062_v44 = vsel %vm3614_vm3, %v11300_v20, 0.0 }
 0x3bf   : > { %v3695_v53 = vpop.xlane.xlu1 %3694  ;;  %v3836_v31 = vsub.f32 %v10901_v34, %v3704_v6  ;;  %4063 = vadd.xlane.f32.xlu0 %v4062_v44 }
 0x3c0   : > { %9482 = vpow2.f32 %v3925_v29  ;;  %v3833_v17 = vsub.f32 %v10892_v54, %v3695_v53 }
 0x3c1   : > { %v3929_v14 = vmul.f32 1.442695, %v3836_v31  ;;  %v11307_v22 = vpop.eup %9476  ;;  %9484 = vpow2.f32 %v3921_v8 }
 0x3c2   : > { %v3923_v36 = vmul.f32 1.442695, %v3833_v17  ;;  %v3701_v32 = vpop.xlane.xlu0 %3700  ;;  %v4059_v0 = vsel %vm3614_vm3, %v11307_v22, 0.0  ;;  %v11313_v54 = vpop.eup %9478 }
 0x3c3   : > { %v3710_v12 = vpop.xlane.xlu1 %3709  ;;  %v3835_v10 = vsub.f32 %v10906_v25, %v3701_v32  ;;  %4060 = vadd.xlane.f32.xlu0 %v4059_v0  ;;  %v4068_v8 = vsel %vm3614_vm3, %v11313_v54, 0.0 }
 0x3c4   : > { %9486 = vpow2.f32 %v3923_v36  ;;  %v3838_v46 = vsub.f32 %v10916_v43, %v3710_v12 }
 0x3c5   : > { %9488 = vpow2.f32 %v3929_v14  ;;  %v3927_v61 = vmul.f32 1.442695, %v3835_v10 }
 0x3c6   : > { %v3933_v34 = vmul.f32 1.442695, %v3838_v46  ;;  %9490 = vpow2.f32 %v3919_v11  ;;  %v3716_v63 = vpop.xlane.xlu0 %3715  ;;  %v11318_v43 = vpop.eup %9480 }
 0x3c7   : > { %v3707_v40 = vpop.xlane.xlu1 %3706  ;;  %4069 = vadd.xlane.f32.xlu0 %v4068_v8  ;;  %v3840_v53 = vsub.f32 %v10931_v35, %v3716_v63  ;;  %v4065_v36 = vsel %vm3614_vm3, %v11318_v43, 0.0 }
 0x3c8   : > { %v3837_v29 = vsub.f32 %v10922_v23, %v3707_v40  ;;  %9492 = vpow2.f32 %v3933_v34 }
 0x3c9   : > { %9494 = vpow2.f32 %v3927_v61  ;;  %v3937_v35 = vmul.f32 1.442695, %v3840_v53 }
 0x3ca   : > { %v11320_v25 = vpop.eup %9482  ;;  %v3931_v28 = vmul.f32 1.442695, %v3837_v29  ;;  %v3713_v44 = vpop.xlane.xlu0 %3712 }
 0x3cb   : > { %v3722_v6 = vpop.xlane.xlu1 %3721  ;;  %v4080_v17 = vsel %vm3614_vm3, %v11320_v25, 0.0  ;;  %v3839_v31 = vsub.f32 %v10937_v27, %v3713_v44  ;;  %v11329_v14 = vpop.eup %9484  ;;  %4066 = vadd.xlane.f32.xlu0 %v4065_v36 }
 0x3cc   : > { %v3842_v23 = vsub.f32 %v10947_v1, %v3722_v6  ;;  %4081 = vadd.xlane.f32.xlu1 %v4080_v17  ;;  %9496 = vpow2.f32 %v3931_v28  ;;  %v4074_v61 = vsel %vm3614_vm3, %v11329_v14, 0.0 }
 0x3cd   : > { %v3935_v12 = vmul.f32 1.442695, %v3839_v31 }
 0x3ce   : > { %v11331_v11 = vpop.eup %9486  ;;  %v3941_v32 = vmul.f32 1.442695, %v3842_v23  ;;  %v3728_v10 = vpop.xlane.xlu0 %3727 }
 0x3cf   : > { %v3719_v46 = vpop.xlane.xlu1 %3718  ;;  %v4077_v1 = vsel %vm3614_vm3, %v11331_v11, 0.0  ;;  %v11335_v0 = vpop.eup %9488  ;;  %v3844_v34 = vsub.f32 %v10962_v62, %v3728_v10  ;;  %9498 = vpow2.f32 %v3935_v12  ;;  %4075 = vadd.xlane.f32.xlu0 %v4074_v61 }
 0x3d0   : > { %v3841_v27 = vsub.f32 %v10953_v9, %v3719_v46  ;;  %4078 = vadd.xlane.f32.xlu1 %v4077_v1  ;;  %v11341_v40 = vpop.eup %9490  ;;  %9500 = vpow2.f32 %v3937_v35  ;;  %v4086_v53 = vsel %vm3614_vm3, %v11335_v0, 0.0 }
 0x3d1   : > { %9502 = vpow2.f32 %v3941_v32  ;;  %v3945_v29 = vmul.f32 1.442695, %v3844_v34  ;;  %v4071_v44 = vsel %vm3614_vm3, %v11341_v40, 0.0 }
 0x3d2   : > { %v3939_v63 = vmul.f32 1.442695, %v3841_v27  ;;  %v3725_v28 = vpop.xlane.xlu0 %3724  ;;  %v11345_v9 = vpop.eup %9492 }
 0x3d3   : > { %v3734_v8 = vpop.xlane.xlu1 %3733  ;;  %v3843_v6 = vsub.f32 %v10967_v41, %v3725_v28  ;;  %v11351_v17 = vpop.eup %9494  ;;  %4072 = vadd.xlane.f32.xlu0 %v4071_v44  ;;  %v4092_v12 = vsel %vm3614_vm3, %v11345_v9, 0.0 }
 0x3d4   : > { %v3846_v62 = vsub.f32 %v10973_v16, %v3734_v8  ;;  %4087 = vadd.xlane.f32.xlu1 %v4086_v53  ;;  %9504 = vpow2.f32 %v3939_v63  ;;  %v4083_v41 = vsel %vm3614_vm3, %v11351_v17, 0.0 }
 0x3d5   : > { %v3943_v31 = vmul.f32 1.442695, %v3843_v6  ;;  %9506 = vpow2.f32 %v3945_v29 }
 0x3d6   : > { %v3949_v23 = vmul.f32 1.442695, %v3846_v62  ;;  %v4004_v35 = vpop.xlane.xlu0 %4003  ;;  %v11355_v32 = vpop.eup %9496 }
 0x3d7   : > { %v4001_v36 = vpop.xlane.xlu1 %4000  ;;  %4084 = vadd.xlane.f32.xlu0 %v4083_v41  ;;  %v4089_v1 = vsel %vm3614_vm3, %v11355_v32, 0.0  ;;  %v12131_v41 = vld [vmem:[#allocation20_spill] sm:$0xff] }
 0x3d8   : > { %9508 = vpow2.f32 %v3949_v23  ;;  %4093 = vadd.xlane.f32.xlu1 %v4092_v12 }
 0x3d9   : > { %9510 = vpow2.f32 %v3943_v31  ;;  %v11359_v16 = vpop.eup %9498 }
 0x3da   : > { %9512 = vrcp.f32 %v4001_v36  ;;  %v11361_v10 = vpop.xlane.xlu0 %4027  ;;  %v11365_v27 = vpop.eup %9500  ;;  %v4095_v61 = vsel %vm3614_vm3, %v11359_v16, 0.0 }
 0x3db   : > { %9514 = vrcp.f32 %v4004_v35  ;;  %v3731_v46 = vpop.xlane.xlu1 %3730  ;;  %12128 = vst [vmem:[#allocation51_spill] sm:$0xff] %v11365_v27  ;;  %v11370_v63 = vpop.eup %9502  ;;  %4096 = vadd.xlane.f32.xlu0 %v4095_v61  ;;  %v4098_v53 = vsel %vm3614_vm3, %v11365_v27, 0.0 }
 0x3dc   : > { %v3845_v34 = vsub.f32 %v10988_v30, %v3731_v46  ;;  %4090 = vadd.xlane.f32.xlu1 %v4089_v1  ;;  %12129 = vst [vmem:[#allocation52_spill] sm:$0xff] %v11370_v63  ;;  %v4104_v30 = vsel %vm3614_vm3, %v11370_v63, 0.0  ;;  %v9163_v46 = vunpack.i.h.bf16 %v12131_v41  ;;  %v9162_v1 = vunpack.i.l.bf16 %v12131_v41 }
 0x3de   : > { %v3947_v29 = vmul.f32 1.442695, %v3845_v34  ;;  %v11372_v28 = vpop.xlane.xlu0 %4024  ;;  %v11376_v62 = vpop.eup %9504 }
 0x3df   : > { %v4010_v8 = vpop.xlane.xlu1 %4009  ;;  %12130 = vst [vmem:[#allocation53_spill] sm:$0xff] %v11376_v62  ;;  %v11380_v6 = vpop.eup %9506  ;;  %4105 = vadd.xlane.f32.xlu0 %v4104_v30  ;;  %v4101_v35 = vsel %vm3614_vm3, %v11376_v62, 0.0 }
 0x3e0   : > { %9516 = vpow2.f32 %v3947_v29  ;;  %4099 = vadd.xlane.f32.xlu1 %v4098_v53 }
 0x3e1   : > { %9518 = vrcp.f32 %v4010_v8 }
 0x3e2   : > { %v11382_v44 = vpop.eup %9508  ;;  %v3740_v36 = vpop.xlane.xlu0 %3739 }
 0x3e3   : > { %v11384_v23 = vpop.eup %9510  ;;  %v3746_v31 = vpop.xlane.xlu1 %3745  ;;  %v3848_v34 = vsub.f32 %v11013_v18, %v3740_v36  ;;  %v4110_v18 = vsel %vm3614_vm3, %v11380_v6, 0.0  ;;  %v11400_v36 = vpack.c.bf16 %v9163_v46, %v9162_v1  ;;  %v9248_v46 = vunpack.i.h.bf16 %v10463_v38 }
 0x3e4   : > { %v9513_v12 = vpop.eup %9512  ;;  %4102 = vadd.xlane.f32.xlu1 %v4101_v35  ;;  %v4107_v61 = vsel %vm3614_vm3, %v11384_v23, 0.0  ;;  %v3850_v30 = vsub.f32 %v11015_v37, %v3746_v31  ;;  %v4116_v37 = vsel %vm3614_vm3, %v11382_v44, 0.0 }
 0x3e5   : > { %v9515_v29 = vpop.eup %9514  ;;  %4108 = vadd.xlane.f32.xlu0 %v4107_v61  ;;  %v4255_v53 = vmul.f32 %v9513_v12, %v10982_v3  ;;  %v3953_v63 = vmul.f32 1.442695, %v3848_v34 }
 0x3e6   : > { %v4256_v62 = vmul.f32 %v9515_v29, %v10976_v24  ;;  %v3737_v27 = vpop.xlane.xlu0 %3736  ;;  %v3957_v3 = vmul.f32 1.442695, %v3850_v30  ;;  %v9247_v29 = vunpack.i.l.bf16 %v10463_v38 }
 0x3e7   : > { %8474 = vmatprep.mubr.msk.f32.mxu0 %vm3614_vm3, %v4255_v53  ;;  %v4007_v57 = vpop.xlane.xlu1 %4006  ;;  %v3847_v35 = vsub.f32 %v11025_v47, %v3737_v27  ;;  %9520 = vpow2.f32 %v3953_v63 }
 0x3e8   : > { %8475 = vmatmul.mubr.msk.f32.vlgmr.msra.gmra.mrb[36].mxu0 %vm3614_vm3, %v4256_v62  ;;  %4111 = vadd.xlane.f32.xlu1 %v4110_v18  ;;  %9522 = vrcp.f32 %v4007_v57 }
 0x3e9   : > { %8937 = vmatpush3.bf16.msra.mxu0 %v10743_v45  ;;  %4117 = vadd.xlane.f32.xlu0 %v4116_v37  ;;  %v3951_v8 = vmul.f32 1.442695, %v3847_v35 }
 0x3ea   : > { %v11406_v24 = vpop.eup %9516  ;;  %8943 = vmatprep.subr.bf16.mxu0 %v11400_v36  ;;  %v11409_v31 = vpop.xlane.xlu0 %4039 }
 0x3eb   : > { %v3743_v62 = vpop.xlane.xlu1 %3742  ;;  %v4113_v47 = vsel %vm3614_vm3, %v11406_v24, 0.0  ;;  %9524 = vpow2.f32 %v3951_v8  ;;  %v9519_v41 = vpop.eup %9518 }
 0x3ec   : > { %v3849_v27 = vsub.f32 %v11042_v5, %v3743_v62  ;;  %4114 = vadd.xlane.f32.xlu1 %v4113_v47  ;;  %9526 = vpow2.f32 %v3957_v3  ;;  %v4258_v62 = vmul.f32 %v9519_v41, %v10997_v21  ;;  %v12134_v21 = vld [vmem:[#allocation6_spill] sm:$0xff] }
 0x3ee   : > { %v3955_v45 = vmul.f32 1.442695, %v3849_v27  ;;  %v4037_v12 = vpop.xlane.xlu0 %4036 }
 0x3ef   : > { %v3758_v63 = vpop.xlane.xlu1 %3757 }
 0x3f0   : > { %9528 = vpow2.f32 %v3955_v45  ;;  %v3854_v37 = vsub.f32 %v11056_v60, %v3758_v63  ;;  %v12133_v60 = vld [vmem:[#allocation38_spill] sm:$0xff] }
 0x3f1   : > { %v11414_v57 = vpop.eup %9520  ;;  %9530 = vrcp.f32 %v11372_v28 }
 0x3f2   : > { %v3752_v34 = vpop.xlane.xlu0 %3751  ;;  %v9523_v61 = vpop.eup %9522  ;;  %v4122_v30 = vsel %vm3614_vm3, %v11414_v57, 0.0  ;;  %v3965_v63 = vmul.f32 1.442695, %v3854_v37 }
 0x3f3   : > { %v3755_v1 = vpop.xlane.xlu1 %3754  ;;  %v3852_v5 = vsub.f32 %v11072_v19, %v3752_v34  ;;  %4123 = vadd.xlane.f32.xlu1 %v4122_v30  ;;  %v4257_v18 = vmul.f32 %v9523_v61, %v11031_v56  ;;  %v11434_v56 = vpack.c.bf16 %v9248_v46, %v9247_v29 }
 0x3f4   : > { %v3853_v53 = vsub.f32 %v11074_v58, %v3755_v1 }
 0x3f5   : > { %v11423_v35 = vpop.eup %9524  ;;  %v3961_v8 = vmul.f32 1.442695, %v3852_v5  ;;  %8481 = vmatprep.mubr.msk.f32.mxu1 %vm3614_vm3, %v4257_v18  ;;  %v12135_v5 = vld [vmem:[#allocation42_spill] sm:$0xff] }
 0x3f6   : > { %v3963_v3 = vmul.f32 1.442695, %v3853_v53  ;;  %v3749_v58 = vpop.xlane.xlu0 %3748  ;;  %v4119_v19 = vsel %vm3614_vm3, %v11423_v35, 0.0  ;;  %v11430_v47 = vpop.eup %9526  ;;  %8482 = vmatmul.mubr.msk.f32.vlgmr.msra.gmra.mrb[44].mxu1 %vm3614_vm3, %v4258_v62  ;;  %v12137_v62 = vld [vmem:[#allocation44_spill] sm:$0xff] }
 0x3f7   : > { %v4022_v38 = vpop.xlane.xlu1 %4021  ;;  %12132 = vst [vmem:[#allocation20_spill] sm:$0xff] %v11430_v47  ;;  %v3851_v27 = vsub.f32 %v12133_v60, %v3749_v58  ;;  %4120 = vadd.xlane.f32.xlu0 %v4119_v19  ;;  %9532 = vpow2.f32 %v3961_v8  ;;  %8941 = vmatpush3.bf16.msra.mxu1 %v12134_v21  ;;  %v4128_v34 = vsel %vm3614_vm3, %v11430_v47, 0.0  ;;  %v12138_v60 = vld [vmem:[#allocation9_spill] sm:$0xff] }
 0x3f8   : > { %9534 = vpow2.f32 %v3963_v3  ;;  %8947 = vmatprep.subr.bf16.mxu1 %v11434_v56 }
 0x3f9   : > { %v3959_v41 = vmul.f32 1.442695, %v3851_v27  ;;  %9536 = vrcp.f32 %v4022_v38  ;;  %v9288_v27 = vunpack.i.h.bf16 %v12138_v60 }
 0x3fa   : > { %v11438_v45 = vpop.eup %9528  ;;  %v4016_v28 = vpop.xlane.xlu0 %4015 }
 0x3fb   : > { %v4019_v1 = vpop.xlane.xlu1 %4018  ;;  %v4125_v46 = vsel %vm3614_vm3, %v11438_v45, 0.0  ;;  %9538 = vpow2.f32 %v3959_v41  ;;  %4129 = vadd.xlane.f32.xlu0 %v4128_v34  ;;  %v9531_v53 = vpop.eup %9530 }
 0x3fc   : > { %4126 = vadd.xlane.f32.xlu1 %v4125_v46  ;;  %9540 = vrcp.f32 %v4019_v1 }
 0x3fd   : > { %9542 = vpow2.f32 %v3965_v63  ;;  %v9287_v63 = vunpack.i.l.bf16 %v12138_v60 }
 0x3fe   : > { %9544 = vrcp.f32 %v4016_v28  ;;  %v4013_v29 = vpop.xlane.xlu0 %4012  ;;  %v12139_v28 = vld [vmem:[#allocation45_spill] sm:$0xff] }
 0x3ff   : > { %v3767_v61 = vpop.xlane.xlu1 %3766  ;;  %9546 = vrcp.f32 %v4013_v29 }
 0x400   : > { %v3857_v30 = vsub.f32 %v12135_v5, %v3767_v61  ;;  %9548 = vrcp.f32 %v11361_v10 }
 0x401   : > { %v11446_v18 = vpop.eup %9532  ;;  %9550 = vrcp.f32 %v4037_v12 }
 0x402   : > { %12136 = vst [vmem:[#allocation38_spill] sm:$0xff] %v11446_v18  ;;  %v3764_v3 = vpop.xlane.xlu0 %3763  ;;  %v11449_v8 = vpop.eup %9534  ;;  %v4134_v58 = vsel %vm3614_vm3, %v11446_v18, 0.0  ;;  %9552 = vrcp.f32 %v11409_v31  ;;  %v3971_v10 = vmul.f32 1.442695, %v3857_v30 }
 0x403   : > { %v3773_v37 = vpop.xlane.xlu1 %3772  ;;  %v3856_v38 = vsub.f32 %v12137_v62, %v3764_v3  ;;  %v9537_v19 = vpop.eup %9536  ;;  %4135 = vadd.xlane.f32.xlu1 %v4134_v58  ;;  %v4137_v3 = vsel %vm3614_vm3, %v11449_v8, 0.0  ;;  %v12140_v62 = vld [vmem:[#allocation41_spill] sm:$0xff] }
 0x404   : > { %v3859_v12 = vsub.f32 %v12139_v28, %v3773_v37  ;;  %v12142_v37 = vld [vmem:[#allocation39_spill] sm:$0xff] }
 0x405   : > { %v11455_v21 = vpop.eup %9538  ;;  %v3969_v41 = vmul.f32 1.442695, %v3856_v38  ;;  %v12141_v38 = vld [vmem:[#allocation24_spill] sm:$0xff]  ;;  %v4262_v60 = vmul.f32 %v9537_v19, %v12142_v37 }
 0x406   : > { %v9541_v1 = vpop.eup %9540  ;;  %v3761_v34 = vpop.xlane.xlu0 %3760  ;;  %v4131_v61 = vsel %vm3614_vm3, %v11455_v21, 0.0  ;;  %v9283_v58 = vunpack.i.h.bf16 %v12141_v38  ;;  %v9282_v47 = vunpack.i.l.bf16 %v12141_v38 }
 0x407   : > { %v4034_v46 = vpop.xlane.xlu1 %4033  ;;  %v11462_v29 = vpop.eup %9542  ;;  %v3855_v5 = vsub.f32 %v11153_v49, %v3761_v34  ;;  %4132 = vadd.xlane.f32.xlu0 %v4131_v61  ;;  %v4261_v31 = vmul.f32 %v9541_v1, %v12140_v62  ;;  %9554 = vpow2.f32 %v3969_v41  ;;  %4138 = vadd.xlane.f32.xlu1 %v4137_v3  ;;  %v11472_v49 = vpack.c.bf16 %v9288_v27, %v9287_v63  ;;  %v12143_v3 = vld [vmem:[#allocation43_spill] sm:$0xff] }
 0x408   : > { %v9545_v30 = vpop.eup %9544  ;;  %9556 = vpow2.f32 %v3971_v10  ;;  %v3975_v34 = vmul.f32 1.442695, %v3859_v12  ;;  %v4140_v41 = vsel %vm3614_vm3, %v11462_v29, 0.0  ;;  %v12145_v12 = vld [vmem:[#allocation25_spill] sm:$0xff] }
 0x409   : > { %v9547_v28 = vpop.eup %9546  ;;  %v3967_v18 = vmul.f32 1.442695, %v3855_v5  ;;  %8495 = vmatprep.mubr.msk.f32.mxu1 %vm3614_vm3, %v4261_v31  ;;  %9558 = vrcp.f32 %v4034_v46  ;;  %v12144_v5 = vld [vmem:[#allocation40_spill] sm:$0xff]  ;;  %v9293_v46 = vunpack.i.h.bf16 %v12145_v12  ;;  %v9292_v62 = vunpack.i.l.bf16 %v12145_v12  ;;  %v12146_v31 = vld [vmem:[#allocation35_spill] sm:$0xff] }
 0x40a   : > { %8496 = vmatmul.mubr.msk.f32.vlgmr.msra.gmra.mrb[46].mxu1 %vm3614_vm3, %v4262_v60  ;;  %v3770_v61 = vpop.xlane.xlu0 %3769  ;;  %v4259_v19 = vmul.f32 %v9547_v28, %v12143_v3  ;;  %v4260_v27 = vmul.f32 %v9545_v30, %v12144_v5  ;;  %v9549_v63 = vpop.eup %9548  ;;  %v4263_v38 = vmul.f32 %v9531_v53, %v12146_v31  ;;  %v12147_v53 = vld [vmem:[#allocation34_spill] sm:$0xff] }
 0x40b   : > { %v4031_v1 = vpop.xlane.xlu1 %4030  ;;  %9560 = vpow2.f32 %v3967_v18  ;;  %8949 = vmatpush3.bf16.msra.mxu1 %v11434_v56  ;;  %v3858_v10 = vsub.f32 %v11166_v2, %v3770_v61  ;;  %4141 = vadd.xlane.f32.xlu0 %v4140_v41  ;;  %v9551_v18 = vpop.eup %9550  ;;  %v8950_v2 = vpack.c.bf16 %v9283_v58, %v9282_v47  ;;  %v4264_v61 = vmul.f32 %v9549_v63, %v12147_v53  ;;  %v12148_v41 = vld [vmem:[#allocation37_spill] sm:$0xff]  ;;  %v12149_v47 = vld [vmem:[#allocation26_spill] sm:$0xff] }
 0x40c   : > { %8955 = vmatprep.subr.bf16.mxu1 %v11472_v49  ;;  %9562 = vrcp.f32 %v4031_v1  ;;  %8488 = vmatprep.mubr.msk.f32.mxu0 %vm3614_vm3, %v4259_v19  ;;  %v9553_v60 = vpop.eup %9552  ;;  %v4267_v3 = vmul.f32 %v9551_v18, %v12148_v41  ;;  %v8958_v19 = vpack.c.bf16 %v9293_v46, %v9292_v62  ;;  %v9303_v58 = vunpack.i.h.bf16 %v12149_v47 }
 0x40d   : > { %v3973_v37 = vmul.f32 1.442695, %v3858_v10  ;;  %8489 = vmatmul.mubr.msk.f32.vlgmr.msra.gmra.mrb[38].mxu0 %vm3614_vm3, %v4260_v27  ;;  %9564 = vpow2.f32 %v3975_v34  ;;  %v12150_v27 = vld [vmem:[#allocation36_spill] sm:$0xff] }
 0x40e   : > { %8945 = vmatpush3.bf16.msra.mxu0 %v11400_v36  ;;  %8502 = vmatprep.mubr.msk.f32.mxu0 %vm3614_vm3, %v4263_v38  ;;  %v3776_v30 = vpop.xlane.xlu0 %3775  ;;  %v9302_v36 = vunpack.i.l.bf16 %v12149_v47  ;;  %v4268_v63 = vmul.f32 %v9553_v60, %v12150_v27  ;;  %v12151_v60 = vld [vmem:[#allocation14_spill] sm:$0xff] }
 0x40f   : > { %v3779_v56 = vpop.xlane.xlu1 %3778  ;;  %9566 = vpow2.f32 %v3973_v37  ;;  %8951 = vmatprep.subr.bf16.mxu0 %v8950_v2  ;;  %v3860_v1 = vsub.f32 %v11181_v15, %v3776_v30 }
 0x410   : > { %v3861_v28 = vsub.f32 %v11184_v13, %v3779_v56  ;;  %v11509_v56 = vpack.c.bf16 %v9303_v58, %v9302_v36 }
 0x411   : > { %v3977_v10 = vmul.f32 1.442695, %v3860_v1  ;;  %8503 = vmatmul.mubr.msk.f32.vlgmr.msra.gmra.mrb[40].mxu0 %vm3614_vm3, %v4264_v61  ;;  %v11496_v5 = vpop.eup %9554 }
 0x412   : > { %v3979_v34 = vmul.f32 1.442695, %v3861_v28  ;;  %8953 = vmatpush3.bf16.msra.mxu0 %v8950_v2  ;;  %8516 = vmatprep.mubr.msk.f32.mxu0 %vm3614_vm3, %v4267_v3  ;;  %v3782_v15 = vpop.xlane.xlu0 %3781  ;;  %v11500_v12 = vpop.eup %9556  ;;  %v4146_v31 = vsel %vm3614_vm3, %v11496_v5, 0.0  ;;  %v9297_v28 = vunpack.i.l.bf16 %v12151_v60  ;;  %v12152_v3 = vld [vmem:[#allocation47_spill] sm:$0xff] }
 0x413   : > { %v3785_v13 = vpop.xlane.xlu1 %3784  ;;  %8959 = vmatprep.subr.bf16.mxu0 %v8958_v19  ;;  %v3862_v62 = vsub.f32 %v11197_v7, %v3782_v15  ;;  %v9559_v38 = vpop.eup %9558  ;;  %4147 = vadd.xlane.f32.xlu1 %v4146_v31  ;;  %v4149_v41 = vsel %vm3614_vm3, %v11500_v12, 0.0 }
 0x414   : > { %9568 = vpow2.f32 %v3979_v34  ;;  %v3863_v46 = vsub.f32 %v11200_v26, %v3785_v13  ;;  %v9298_v26 = vunpack.i.h.bf16 %v12151_v60 }
 0x415   : > { %9570 = vpow2.f32 %v3977_v10  ;;  %v11506_v18 = vpop.eup %9560  ;;  %v3981_v2 = vmul.f32 1.442695, %v3862_v62  ;;  %8517 = vmatmul.mubr.msk.f32.vlgmr.msra.gmra.mrb[42].mxu0 %vm3614_vm3, %v4268_v63 }
 0x416   : > { %v3983_v37 = vmul.f32 1.442695, %v3863_v46  ;;  %v9563_v30 = vpop.eup %9562  ;;  %8961 = vmatpush3.bf16.msra.mxu0 %v8958_v19  ;;  %v3788_v1 = vpop.xlane.xlu0 %3787  ;;  %v4143_v53 = vsel %vm3614_vm3, %v11506_v18, 0.0  ;;  %v12153_v19 = vld [vmem:[#allocation46_spill] sm:$0xff] }
 0x417   : > { %v4046_v7 = vpop.xlane.xlu1 %4045  ;;  %8967 = vmatprep.subr.bf16.mxu0 %v11509_v56  ;;  %v3864_v61 = vsub.f32 %v11211_v50, %v3788_v1  ;;  %4144 = vadd.xlane.f32.xlu0 %v4143_v53  ;;  %v4265_v47 = vmul.f32 %v9563_v30, %v12152_v3  ;;  %v11520_v58 = vpop.eup %9564  ;;  %v4266_v36 = vmul.f32 %v9559_v38, %v12153_v19 }
 0x418   : > { %9572 = vpow2.f32 %v3983_v37  ;;  %4150 = vadd.xlane.f32.xlu1 %v4149_v41  ;;  %v8962_v50 = vpack.c.bf16 %v9298_v26, %v9297_v28  ;;  %v4155_v63 = vsel %vm3614_vm3, %v11520_v58, 0.0  ;;  %v12154_v41 = vld [vmem:[#allocation11_spill] sm:$0xff] }
 0x419   : > { %9574 = vpow2.f32 %v3981_v2  ;;  %v11523_v34 = vpop.eup %9566  ;;  %v3985_v10 = vmul.f32 1.442695, %v3864_v61  ;;  %8509 = vmatprep.mubr.msk.f32.mxu1 %vm3614_vm3, %v4265_v47  ;;  %v9353_v3 = vunpack.i.h.bf16 %v12154_v41  ;;  %v9352_v47 = vunpack.i.l.bf16 %v12154_v41 }
 0x41a   : > { %9576 = vrcp.f32 %v4046_v7  ;;  %8510 = vmatmul.mubr.msk.f32.vlgmr.msra.gmra.mrb[48].mxu1 %vm3614_vm3, %v4266_v36  ;;  %v11527_v15 = vpop.xlane.xlu0 %3793  ;;  %v4152_v27 = vsel %vm3614_vm3, %v11523_v34, 0.0 }
 0x41b   : > { %v4043_v13 = vpop.xlane.xlu1 %4042  ;;  %9578 = vpow2.f32 %v3985_v10  ;;  %8957 = vmatpush3.bf16.msra.mxu1 %v11472_v49  ;;  %4153 = vadd.xlane.f32.xlu0 %v4152_v27 }
 0x41c   : > { %8963 = vmatprep.subr.bf16.mxu1 %v8962_v50  ;;  %9580 = vrcp.f32 %v4043_v13  ;;  %4156 = vadd.xlane.f32.xlu1 %v4155_v63  ;;  %v8970_v63 = vpack.c.bf16 %v9353_v3, %v9352_v47 }
 0x41e   : > { %v11534_v46 = vpop.eup %9568  ;;  %v11540_v38 = vpop.xlane.xlu0 %3799 }
 0x41f   : > { %v11536_v62 = vpop.eup %9570  ;;  %v11538_v31 = vpop.xlane.xlu1 %3790  ;;  %v4161_v37 = vsel %vm3614_vm3, %v11534_v46, 0.0 }
 0x420   : > { %v4158_v49 = vsel %vm3614_vm3, %v11536_v62, 0.0  ;;  %4162 = vadd.xlane.f32.xlu1 %v4161_v37 }
 0x421   : > { %4159 = vadd.xlane.f32.xlu0 %v4158_v49 }
 0x422   : > { %v11546_v2 = vpop.eup %9572  ;;  %v11552_v26 = vpop.xlane.xlu0 %3805 }
 0x423   : > { %v11548_v30 = vpop.eup %9574  ;;  %v11550_v60 = vpop.xlane.xlu1 %3796  ;;  %v4167_v28 = vsel %vm3614_vm3, %v11546_v2, 0.0 }
 0x424   : > { %v4164_v7 = vsel %vm3614_vm3, %v11548_v30, 0.0  ;;  %v9577_v1 = vpop.eup %9576  ;;  %4168 = vadd.xlane.f32.xlu1 %v4167_v28 }
 0x425   : > { %4165 = vadd.xlane.f32.xlu0 %v4164_v7  ;;  %v11558_v53 = vpop.eup %9578  ;;  %v4270_v27 = vmul.f32 %v9577_v1, %v11217_v52  ;;  %v12155_v7 = vld [vmem:[#allocation17_spill] sm:$0xff]  ;;  %v12156_v52 = vld [vmem:[#allocation27_spill] sm:$0xff] }
 0x426   : > { %v9581_v61 = vpop.eup %9580  ;;  %v4052_v36 = vpop.xlane.xlu0 %4051  ;;  %v4170_v10 = vsel %vm3614_vm3, %v11558_v53, 0.0  ;;  %v9313_v1 = vunpack.i.h.bf16 %v12156_v52  ;;  %v9312_v41 = vunpack.i.l.bf16 %v12156_v52 }
 0x427   : > { %v11562_v19 = vpop.xlane.xlu1 %3802  ;;  %v4269_v13 = vmul.f32 %v9581_v61, %v11231_v55  ;;  %9582 = vrcp.f32 %v4052_v36 }
 0x429   : > { %4171 = vadd.xlane.f32.xlu0 %v4170_v10  ;;  %8523 = vmatprep.mubr.msk.f32.mxu1 %vm3614_vm3, %v4269_v13 }
 0x42a   : > { %8524 = vmatmul.mubr.msk.f32.vlgmr.msra.gmra.mrb[50].mxu1 %vm3614_vm3, %v4270_v27  ;;  %v4049_v49 = vpop.xlane.xlu0 %4048 }
 0x42b   : > { %v4058_v37 = vpop.xlane.xlu1 %4057  ;;  %8965 = vmatpush3.bf16.msra.mxu1 %v8962_v50  ;;  %9584 = vrcp.f32 %v4049_v49  ;;  %v12157_v50 = vld [vmem:[#allocation12_spill] sm:$0xff]  ;;  %v8974_v49 = vpack.c.bf16 %v9313_v1, %v9312_v41 }
 0x42c   : > { %8971 = vmatprep.subr.bf16.mxu1 %v8970_v63  ;;  %9586 = vrcp.f32 %v4058_v37  ;;  %v9318_v36 = vunpack.i.h.bf16 %v12157_v50  ;;  %v9317_v13 = vunpack.i.l.bf16 %v12157_v50 }
 0x42f   : > { %v4055_v28 = vpop.xlane.xlu1 %4054 }
 0x430   : > { %9588 = vrcp.f32 %v4055_v28 }
 0x431   : > { %v9583_v55 = vpop.eup %9582 }
 0x432   : > { %v4272_v27 = vmul.f32 %v9583_v55, %v11276_v59  ;;  %v12158_v59 = vld [vmem:[#allocation8_spill] sm:$0xff] }
 0x435   : > { %9385 = vrot.lane.b32.xlu1 %v12155_v7, %s9758_s13  ;;  %v9585_v61 = vpop.eup %9584 }
 0x436   : > { %v9587_v10 = vpop.eup %9586  ;;  %v4271_v3 = vmul.f32 %v9585_v61, %v11278_v42  ;;  %v11585_v42 = vpack.c.bf16 %v9318_v36, %v9317_v13 }
 0x437   : > { %v4274_v28 = vmul.f32 %v9587_v10, %v11284_v39  ;;  %v3866_v39 = vsub.f32 %v11225_v48, %v11527_v15 }
 0x438   : > { %8530 = vmatprep.mubr.msk.f32.mxu0 %vm3614_vm3, %v4271_v3 }
 0x439   : > { %8531 = vmatmul.mubr.msk.f32.vlgmr.msra.gmra.mrb[44].mxu0 %vm3614_vm3, %v4272_v27  ;;  %v3989_v7 = vmul.f32 1.442695, %v3866_v39 }
 0x43a   : > { %v9589_v47 = vpop.eup %9588  ;;  %8969 = vmatpush3.bf16.msra.mxu0 %v11509_v56 }
 0x43b   : > { %v4273_v37 = vmul.f32 %v9589_v47, %v11290_v33  ;;  %8975 = vmatprep.subr.bf16.mxu0 %v8974_v49  ;;  %v3865_v33 = vsub.f32 %v11241_v51, %v11538_v31  ;;  %v12159_v31 = vld [vmem:[#allocation28_spill] sm:$0xff] }
 0x43c   : > { %v9323_v3 = vunpack.i.h.bf16 %v12159_v31  ;;  %v9322_v47 = vunpack.i.l.bf16 %v12159_v31 }
 0x43d   : > { %8537 = vmatprep.mubr.msk.f32.mxu1 %vm3614_vm3, %v4273_v37  ;;  %v3987_v56 = vmul.f32 1.442695, %v3865_v33 }
 0x43e   : > { %8538 = vmatmul.mubr.msk.f32.vlgmr.msra.gmra.mrb[52].mxu1 %vm3614_vm3, %v4274_v28 }
 0x43f   : > { %8973 = vmatpush3.bf16.msra.mxu1 %v8970_v63  ;;  %9380 = vrot.lane.b32.xlu0 %v12158_v59, %s9758_s13  ;;  %9590 = vpow2.f32 %v3987_v56  ;;  %v8982_v59 = vpack.c.bf16 %v9323_v3, %v9322_v47  ;;  %v12160_v56 = vld [vmem:[#allocation13_spill] sm:$0xff] }
 0x440   : > { %8979 = vmatprep.subr.bf16.mxu1 %v11585_v42  ;;  %9592 = vpow2.f32 %v3989_v7  ;;  %v9358_v7 = vunpack.i.h.bf16 %v12160_v56 }
 0x449   : > { %v11594_v63 = vpop.eup %9590 }
 0x44a   : > { %v4173_v41 = vsel %vm3614_vm3, %v11594_v63, 0.0  ;;  %v11598_v10 = vpop.eup %9592 }
 0x44b   : > { %v4176_v36 = vsel %vm3614_vm3, %v11598_v10, 0.0 }
 0x44c   : > { %v4064_v55 = vpop.xlane.xlu0 %4063 }
 0x44d   : > { %9594 = vrcp.f32 %v4064_v55  ;;  %v9357_v55 = vunpack.i.l.bf16 %v12160_v56 }
 0x450   : > { %v4061_v61 = vpop.xlane.xlu0 %4060 }
 0x451   : > { %9596 = vrcp.f32 %v4061_v61 }
 0x454   : > { %v4070_v52 = vpop.xlane.xlu0 %4069 }
 0x455   : > { %9598 = vrcp.f32 %v4070_v52 }
 0x457   : > { %v9595_v51 = vpop.eup %9594 }
 0x458   : > { %v4067_v48 = vpop.xlane.xlu0 %4066  ;;  %v4276_v37 = vmul.f32 %v9595_v51, %v11300_v20  ;;  %v12161_v51 = vld [vmem:[#allocation30_spill] sm:$0xff] }
 0x459   : > { %v4082_v1 = vpop.xlane.xlu1 %4081  ;;  %4174 = vadd.xlane.f32.xlu1 %v4173_v41  ;;  %9600 = vrcp.f32 %v4067_v48  ;;  %v9362_v31 = vunpack.i.l.bf16 %v12161_v51 }
 0x45a   : > { %9602 = vrcp.f32 %v4082_v1 }
 0x45b   : > { %v9597_v15 = vpop.eup %9596 }
 0x45c   : > { %v4076_v13 = vpop.xlane.xlu0 %4075  ;;  %v4275_v27 = vmul.f32 %v9597_v15, %v11307_v22  ;;  %v9363_v15 = vunpack.i.h.bf16 %v12161_v51 }
 0x45d   : > { %v4079_v50 = vpop.xlane.xlu1 %4078 }
 0x45e   : > { %9604 = vrcp.f32 %v4079_v50  ;;  %4177 = vadd.xlane.f32.xlu0 %v4176_v36  ;;  %8544 = vmatprep.mubr.msk.f32.mxu0 %vm3614_vm3, %v4275_v27  ;;  %v12163_v27 = vld [vmem:[#allocation29_spill] sm:$0xff] }
 0x45f   : > { %8545 = vmatmul.mubr.msk.f32.vlgmr.msra.gmra.mrb[46].mxu0 %vm3614_vm3, %v4276_v37  ;;  %9606 = vrcp.f32 %v4076_v13  ;;  %v9599_v39 = vpop.eup %9598  ;;  %v9328_v37 = vunpack.i.h.bf16 %v12163_v27 }
 0x460   : > { %8977 = vmatpush3.bf16.msra.mxu0 %v8974_v49  ;;  %v4073_v33 = vpop.xlane.xlu0 %4072  ;;  %v4278_v41 = vmul.f32 %v9599_v39, %v11313_v54  ;;  %v8986_v49 = vpack.c.bf16 %v9358_v7, %v9357_v55  ;;  %v12162_v54 = vld [vmem:[#allocation7_spill] sm:$0xff] }
 0x461   : > { %v4088_v28 = vpop.xlane.xlu1 %4087  ;;  %8983 = vmatprep.subr.bf16.mxu0 %v8982_v59  ;;  %9608 = vrcp.f32 %v4073_v33  ;;  %v12164_v55 = vld [vmem:[#allocation31_spill] sm:$0xff] }
 0x462   : > { %9610 = vrcp.f32 %v4088_v28  ;;  %v9327_v28 = vunpack.i.l.bf16 %v12163_v27 }
 0x463   : > { %v9601_v61 = vpop.eup %9600 }
 0x464   : > { %v4085_v20 = vpop.xlane.xlu0 %4084  ;;  %v4277_v52 = vmul.f32 %v9601_v61, %v11318_v43  ;;  %v9603_v1 = vpop.eup %9602  ;;  %v9368_v61 = vunpack.i.h.bf16 %v12164_v55 }
 0x465   : > { %v4094_v22 = vpop.xlane.xlu1 %4093  ;;  %9612 = vrcp.f32 %v4085_v20  ;;  %v4282_v50 = vmul.f32 %v9603_v1, %v11320_v25 }
 0x466   : > { %8551 = vmatprep.mubr.msk.f32.mxu1 %vm3614_vm3, %v4277_v52  ;;  %9614 = vrcp.f32 %v4094_v22  ;;  %v9367_v22 = vunpack.i.l.bf16 %v12164_v55  ;;  %v8990_v52 = vpack.c.bf16 %v9328_v37, %v9327_v28  ;;  %v12168_v37 = vld [vmem:[#allocation51_spill] sm:$0xff] }
 0x467   : > { %8552 = vmatmul.mubr.msk.f32.vlgmr.msra.gmra.mrb[54].mxu1 %vm3614_vm3, %v4278_v41 }
 0x468   : > { %v9605_v48 = vpop.eup %9604  ;;  %8981 = vmatpush3.bf16.msra.mxu1 %v11585_v42  ;;  %v4097_v43 = vpop.xlane.xlu0 %4096  ;;  %v8994_v42 = vpack.c.bf16 %v9363_v15, %v9362_v31  ;;  %v12166_v31 = vld [vmem:[#allocation21_spill] sm:$0xff] }
 0x469   : > { %v4091_v3 = vpop.xlane.xlu1 %4090  ;;  %v4281_v47 = vmul.f32 %v9605_v48, %v11331_v11  ;;  %8987 = vmatprep.subr.bf16.mxu1 %v8986_v49  ;;  %v9607_v36 = vpop.eup %9606 }
 0x46a   : > { %9616 = vrcp.f32 %v4091_v3  ;;  %9395 = vrot.lane.b32.xlu1 %v12162_v54, %s9758_s13  ;;  %v4280_v56 = vmul.f32 %v9607_v36, %v11329_v14 }
 0x46b   : > { %9618 = vrcp.f32 %v4097_v43  ;;  %8565 = vmatprep.mubr.msk.f32.mxu1 %vm3614_vm3, %v4281_v47  ;;  %v9609_v13 = vpop.eup %9608 }
 0x46c   : > { %8566 = vmatmul.mubr.msk.f32.vlgmr.msra.gmra.mrb[56].mxu1 %vm3614_vm3, %v4282_v50  ;;  %v4106_v33 = vpop.xlane.xlu0 %4105  ;;  %v4279_v39 = vmul.f32 %v9609_v13, %v11341_v40  ;;  %v9611_v25 = vpop.eup %9610  ;;  %v12167_v50 = vld [vmem:[#allocation33_spill] sm:$0xff] }
 0x46d   : > { %v4100_v11 = vpop.xlane.xlu1 %4099  ;;  %8989 = vmatpush3.bf16.msra.mxu1 %v8986_v49  ;;  %v4284_v41 = vmul.f32 %v9611_v25, %v11335_v0  ;;  %v12165_v49 = vld [vmem:[#allocation32_spill] sm:$0xff]  ;;  %v9378_v36 = vunpack.i.h.bf16 %v12167_v50  ;;  %v9377_v13 = vunpack.i.l.bf16 %v12167_v50 }
 0x46e   : > { %9620 = vrcp.f32 %v4100_v11  ;;  %8995 = vmatprep.subr.bf16.mxu1 %v8994_v42  ;;  %8558 = vmatprep.mubr.msk.f32.mxu0 %vm3614_vm3, %v4279_v39  ;;  %v9373_v51 = vunpack.i.h.bf16 %v12165_v49  ;;  %v9372_v15 = vunpack.i.l.bf16 %v12165_v49 }
 0x46f   : > { %v9613_v7 = vpop.eup %9612  ;;  %9622 = vrcp.f32 %v4106_v33  ;;  %8559 = vmatmul.mubr.msk.f32.vlgmr.msra.gmra.mrb[48].mxu0 %vm3614_vm3, %v4280_v56  ;;  %v12169_v33 = vld [vmem:[#allocation48_spill] sm:$0xff]  ;;  %v9006_v56 = vpack.c.bf16 %v9378_v36, %v9377_v13 }
 0x470   : > { %8985 = vmatpush3.bf16.msra.mxu0 %v8982_v59  ;;  %v4283_v40 = vmul.f32 %v9613_v7, %v11351_v17  ;;  %v9615_v14 = vpop.eup %9614  ;;  %v8998_v17 = vpack.c.bf16 %v9368_v61, %v9367_v22  ;;  %v3868_v39 = vsub.f32 %v12169_v33, %v11540_v38  ;;  %v12170_v7 = vld [vmem:[#allocation50_spill] sm:$0xff]  ;;  %v12171_v61 = vld [vmem:[#allocation53_spill] sm:$0xff]  ;;  %v12172_v22 = vld [vmem:[#allocation52_spill] sm:$0xff] }
 0x471   : > { %v4103_v20 = vpop.xlane.xlu1 %4102  ;;  %8991 = vmatprep.subr.bf16.mxu0 %v8990_v52  ;;  %v4286_v0 = vmul.f32 %v9615_v14, %v11345_v9  ;;  %v3867_v9 = vsub.f32 %v11257_v4, %v11550_v60  ;;  %v3869_v55 = vsub.f32 %v12170_v7, %v11562_v19  ;;  %v12173_v19 = vld [vmem:[#allocation49_spill] sm:$0xff] }
 0x472   : > { %9624 = vrcp.f32 %v4103_v20  ;;  %v4109_v1 = vpop.xlane.xlu0 %4108  ;;  %8572 = vmatprep.mubr.msk.f32.mxu0 %vm3614_vm3, %v4283_v40  ;;  %v3870_v14 = vsub.f32 %v12173_v19, %v11552_v26 }
 0x473   : > { %9626 = vrcp.f32 %v4109_v1  ;;  %8573 = vmatmul.mubr.msk.f32.vlgmr.msra.gmra.mrb[50].mxu0 %vm3614_vm3, %v4284_v41  ;;  %v3991_v60 = vmul.f32 1.442695, %v3867_v9  ;;  %v3993_v1 = vmul.f32 1.442695, %v3868_v39  ;;  %v3995_v40 = vmul.f32 1.442695, %v3869_v55 }
 0x474   : > { %v9617_v48 = vpop.eup %9616  ;;  %9390 = vrot.lane.b32.xlu0 %v12166_v31, %s9758_s13  ;;  %8993 = vmatpush3.bf16.msra.mxu0 %v8990_v52 }
 0x475   : > { %v9619_v59 = vpop.eup %9618  ;;  %v4112_v3 = vpop.xlane.xlu1 %4111  ;;  %v4285_v47 = vmul.f32 %v9617_v48, %v11355_v32  ;;  %8999 = vmatprep.subr.bf16.mxu0 %v8998_v17  ;;  %v9002_v32 = vpack.c.bf16 %v9373_v51, %v9372_v15  ;;  %v3997_v51 = vmul.f32 1.442695, %v3870_v14 }
 0x476   : > { %9628 = vrcp.f32 %v4112_v3  ;;  %v4118_v43 = vpop.xlane.xlu0 %4117  ;;  %v4287_v54 = vmul.f32 %v9619_v59, %v11359_v16 }
 0x477   : > { %8579 = vmatprep.mubr.msk.f32.mxu1 %vm3614_vm3, %v4285_v47  ;;  %9630 = vrcp.f32 %v4118_v43 }
 0x478   : > { %v9621_v27 = vpop.eup %9620  ;;  %8586 = vmatprep.mubr.msk.f32.mxu0 %vm3614_vm3, %v4287_v54  ;;  %8580 = vmatmul.mubr.msk.f32.vlgmr.msra.gmra.mrb[58].mxu1 %vm3614_vm3, %v4286_v0 }
 0x479   : > { %v4288_v28 = vmul.f32 %v9621_v27, %v12168_v37  ;;  %8997 = vmatpush3.bf16.msra.mxu1 %v8994_v42  ;;  %v4115_v16 = vpop.xlane.xlu1 %4114  ;;  %v9623_v11 = vpop.eup %9622 }
 0x47a   : > { %9632 = vrcp.f32 %v4115_v16  ;;  %9003 = vmatprep.subr.bf16.mxu1 %v9002_v32  ;;  %v4290_v20 = vmul.f32 %v9623_v11, %v12172_v22  ;;  %v12179_v22 = vld [vmem:[#allocation15_spill] sm:$0xff] }
 0x47b   : > { %8587 = vmatmul.mubr.msk.f32.vlgmr.msra.gmra.mrb[52].mxu0 %vm3614_vm3, %v4288_v28  ;;  %9634 = vpow2.f32 %v3991_v60 }
 0x47c   : > { %v9625_v25 = vpop.eup %9624  ;;  %9001 = vmatpush3.bf16.msra.mxu0 %v8998_v17  ;;  %9636 = vpow2.f32 %v3993_v1  ;;  %v12180_v1 = vld [vmem:[#allocation19_spill] sm:$0xff] }
 0x47d   : > { %v9627_v4 = vpop.eup %9626  ;;  %9007 = vmatprep.subr.bf16.mxu0 %v9006_v56  ;;  %v4289_v42 = vmul.f32 %v9625_v25, %v12171_v61  ;;  %9638 = vpow2.f32 %v3995_v40  ;;  %v12175_v25 = vld [vmem:[#allocation10_spill] sm:$0xff] }
 0x47e   : > { %v4291_v52 = vmul.f32 %v9627_v4, %v11384_v23  ;;  %v12176_v4 = vld [vmem:[#allocation16_spill] sm:$0xff] }
 0x47f   : > { %8593 = vmatprep.mubr.msk.f32.mxu1 %vm3614_vm3, %v4289_v42  ;;  %v12178_v42 = vld [vmem:[#allocation23_spill] sm:$0xff] }
 0x480   : > { %v9629_v38 = vpop.eup %9628  ;;  %8600 = vmatprep.mubr.msk.f32.mxu0 %vm3614_vm3, %v4291_v52  ;;  %8594 = vmatmul.mubr.msk.f32.vlgmr.msra.gmra.mrb[60].mxu1 %vm3614_vm3, %v4290_v20  ;;  %v4124_v48 = vpop.xlane.xlu1 %4123 }
 0x481   : > { %v4292_v41 = vmul.f32 %v9629_v38, %v11380_v6  ;;  %9005 = vmatpush3.bf16.msra.mxu1 %v9002_v32  ;;  %v9631_v49 = vpop.eup %9630  ;;  %9640 = vrcp.f32 %v4124_v48 }
 0x482   : > { %v4294_v59 = vmul.f32 %v9631_v49, %v11382_v44 }
 0x483   : > { %8601 = vmatmul.mubr.msk.f32.vlgmr.msra.gmra.mrb[54].mxu0 %vm3614_vm3, %v4292_v41 }
 0x484   : > { %v9633_v23 = vpop.eup %9632  ;;  %9009 = vmatpush3.bf16.msra.mxu0 %v9006_v56  ;;  %v4121_v15 = vpop.xlane.xlu0 %4120 }
 0x485   : > { %v4293_v31 = vmul.f32 %v9633_v23, %v11406_v24  ;;  %9642 = vrcp.f32 %v4121_v15  ;;  %v11669_v26 = vpop.eup %9634 }
 0x486   : > { %9644 = vpow2.f32 %v3997_v51  ;;  %v11671_v3 = vpop.eup %9636  ;;  %v4179_v47 = vsel %vm3614_vm3, %v11669_v26, 0.0 }
 0x487   : > { %8607 = vmatprep.mubr.msk.f32.mxu1 %vm3614_vm3, %v4293_v31  ;;  %v11673_v17 = vpop.eup %9638  ;;  %v4182_v50 = vsel %vm3614_vm3, %v11671_v3, 0.0 }
 0x488   : > { %8608 = vmatmul.mubr.msk.f32.vlgmr.msra.gmra.mrb[62].mxu1 %vm3614_vm3, %v4294_v59  ;;  %v4130_v0 = vpop.xlane.xlu0 %4129  ;;  %v4185_v54 = vsel %vm3614_vm3, %v11673_v17, 0.0 }
 0x489   : > { %v4127_v6 = vpop.xlane.xlu1 %4126 }
 0x48a   : > { %9646 = vrcp.f32 %v4127_v6  ;;  %v12181_v6 = vld [vmem:[#allocation38_spill] sm:$0xff] }
 0x48b   : > { %v9641_v24 = vpop.eup %9640 }
 0x48c   : > { %v4296_v13 = vmul.f32 %v9641_v24, %v11414_v57 }
 0x48e   : > { %4180 = vadd.xlane.f32.xlu1 %v4179_v47 }
 0x48f   : > { %v9643_v44 = vpop.eup %9642 }
 0x490   : > { %v4295_v43 = vmul.f32 %v9643_v44, %v11423_v35  ;;  %v11682_v36 = vpop.eup %9644  ;;  %v4136_v37 = vpop.xlane.xlu1 %4135 }
 0x491   : > { %v4188_v9 = vsel %vm3614_vm3, %v11682_v36, 0.0 }
 0x492   : > { %4186 = vadd.xlane.f32.xlu1 %v4185_v54  ;;  %8614 = vmatprep.mubr.msk.f32.mxu0 %vm3614_vm3, %v4295_v43  ;;  %v12182_v54 = vld [vmem:[#allocation20_spill] sm:$0xff] }
 0x493   : > { %4183 = vadd.xlane.f32.xlu0 %v4182_v50  ;;  %8615 = vmatmul.mubr.msk.f32.vlgmr.msra.gmra.mrb[56].mxu0 %vm3614_vm3, %v4296_v13 }
 0x494   : > { %v9647_v27 = vpop.eup %9646  ;;  %v4133_v32 = vpop.xlane.xlu0 %4132 }
 0x495   : > { %v4297_v35 = vmul.f32 %v9647_v27, %v11438_v45  ;;  %9648 = vrcp.f32 %v4133_v32  ;;  %v4139_v28 = vpop.xlane.xlu1 %4138  ;;  %v12174_v45 = vld [vmem:[#allocation18_spill] sm:$0xff] }
 0x496   : > { %4189 = vadd.xlane.f32.xlu1 %v4188_v9  ;;  %9650 = vrcp.f32 %v4136_v37 }
 0x497   : > { %8621 = vmatprep.mubr.msk.f32.mxu1 %vm3614_vm3, %v4297_v35 }
 0x498   : > { %v11691_v16 = vpop.xlane.xlu0 %4141 }
 0x49f   : > { %v9649_v57 = vpop.eup %9648 }
 0x4a0   : > { %v4299_v11 = vmul.f32 %v9649_v57, %v11455_v21  ;;  %v4148_v33 = vpop.xlane.xlu1 %4147  ;;  %v12177_v21 = vld [vmem:[#allocation22_spill] sm:$0xff]  ;;  %v9651_v48 = vpop.eup %9650 }
 0x4a1   : > { %v4300_v47 = vmul.f32 %v9651_v48, %v12181_v6 }
 0x4a2   : > { %8628 = vmatprep.mubr.msk.f32.mxu0 %vm3614_vm3, %v4299_v11 }
 0x4a4   : > { %v4145_v39 = vpop.xlane.xlu0 %4144 }
 0x4a5   : > { %v11695_v56 = vpop.xlane.xlu1 %4150  ;;  %9652 = vrcp.f32 %v4145_v39 }
 0x4a6   : > { %9654 = vrcp.f32 %v4130_v0 }
 0x4a7   : > { %9405 = vrot.lane.b32.xlu1 %v12174_v45, %s9758_s13  ;;  %9656 = vrcp.f32 %v4139_v28 }
 0x4a8   : > { %v11701_v7 = vpop.xlane.xlu0 %4153  ;;  %9658 = vrcp.f32 %v4148_v33 }
 0x4a9   : > { %9400 = vrot.lane.b32.xlu0 %v12175_v25, %s9758_s13  ;;  %v4157_v55 = vpop.xlane.xlu1 %4156 }
 0x4aa   : > { %9660 = vrcp.f32 %v4157_v55 }
 0x4ab   : > { %9420 = vrot.lane.b32.xlu1 %v12176_v4, %s9758_s13  ;;  %9662 = vrcp.f32 %v11691_v16 }
 0x4ac   : > { %9664 = vrcp.f32 %v11695_v56 }
 0x4ad   : > { %9410 = vrot.lane.b32.xlu0 %v12177_v21, %s9758_s13  ;;  %v11707_v60 = vpop.xlane.xlu1 %4162  ;;  %9666 = vrcp.f32 %v11701_v7 }
 0x4ae   : > { %v11709_v61 = vpop.xlane.xlu0 %4159  ;;  %9668 = vrcp.f32 %v11707_v60 }
 0x4af   : > { %9430 = vrot.lane.b32.xlu1 %v12178_v42, %s9758_s13  ;;  %v9653_v23 = vpop.eup %9652  ;;  %9670 = vrcp.f32 %v11709_v61 }
 0x4b0   : > { %v9655_v44 = vpop.eup %9654  ;;  %v4303_v0 = vmul.f32 %v9653_v23, %v11506_v18 }
 0x4b1   : > { %9415 = vrot.lane.b32.xlu0 %v12179_v22, %s9758_s13  ;;  %v11715_v20 = vpop.xlane.xlu1 %4168  ;;  %v9657_v43 = vpop.eup %9656  ;;  %v4298_v50 = vmul.f32 %v9655_v44, %v12182_v54 }
 0x4b2   : > { %v11717_v52 = vpop.xlane.xlu0 %4165  ;;  %v4301_v13 = vmul.f32 %v9657_v43, %v11449_v8  ;;  %v9659_v42 = vpop.eup %9658  ;;  %9672 = vrcp.f32 %v11715_v20 }
 0x4b3   : > { %9674 = vrcp.f32 %v11717_v52 }
 0x4b4   : > { %v9661_v16 = vpop.eup %9660 }
 0x4b5   : > { %9425 = vrot.lane.b32.xlu0 %v12180_v1, %s9758_s13  ;;  %v9386_v38 = vpop.permute.xlu1 %9385  ;;  %v4307_v48 = vmul.f32 %v9661_v16, %v11520_v58  ;;  %s9759_s13 = smov 8  }
 0x4b6   : > { %v11721_v40 = vpop.xlane.xlu0 %4171  ;;  %v9388_v19 = vunpack.i.h.bf16 %v9386_v38  ;;  %v9387_v14 = vunpack.i.l.bf16 %v9386_v38 }
 0x4b8   : > { %v9014_v41 = vpack.c.bf16 %v9388_v19, %v9387_v14  ;;  %v4304_v19 = vmul.f32 %v9659_v42, %v11496_v5 }
 0x4ba   : > { %v9381_v49 = vpop.permute.xlu0 %9380  ;;  %9015 = vmatprep.subr.bf16.mxu0 %v9014_v41 }
 0x4bb   : > { %v8476_v51 = vpop.f32.mrb[36].mxu0  ;;  %v9383_v15 = vunpack.i.h.bf16 %v9381_v49  ;;  %v9382_v31 = vunpack.i.l.bf16 %v9381_v49  ;;  %9017 = vmatpush3.bf16.msra.mxu0 %v9014_v41  ;;  %v9663_v41 = vpop.eup %9662 }
 0x4bc   : > { %7104 = vst.msk [vmem:[#allocation2 + $0x8] sm:$0xff] %vm769_vm1, %v8476_v51  ;;  %v4397_v59 = vpop.f32.mrb[37].mxu0  ;;  %v9665_v49 = vpop.eup %9664  ;;  %v4302_v23 = vmul.f32 %v9663_v41, %v11462_v29 }
 0x4bd   : > { %v9010_v24 = vpack.c.bf16 %v9383_v15, %v9382_v31  ;;  %7103 = vst.msk [vmem:[#allocation2] sm:$0xff] %vm769_vm1, %v4397_v59  ;;  %v4305_v51 = vmul.f32 %v9665_v49, %v11500_v12  ;;  %v9667_v7 = vpop.eup %9666 }
 0x4be   : > { %8629 = vmatmul.mubr.msk.f32.vlgmr.msra.gmra.mrb[58].mxu0 %vm3614_vm3, %v4300_v47 }
 0x4bf   : > { %9011 = vmatprep.subr.bf16.mxu1 %v9010_v24  ;;  %8642 = vmatprep.mubr.msk.f32.mxu0 %vm3614_vm3, %v4303_v0 }
 0x4c0   : > { %9013 = vmatpush3.bf16.msra.mxu1 %v9010_v24 }
 0x4c3   : > { %8622 = vmatmul.mubr.msk.f32.vlgmr.msra.gmra.mrb[64].mxu1 %vm3614_vm3, %v4298_v50 }
 0x4c4   : > { %8635 = vmatprep.mubr.msk.f32.mxu1 %vm3614_vm3, %v4301_v13  ;;  %v9669_v13 = vpop.eup %9668 }
 0x4c5   : > { %v9671_v52 = vpop.eup %9670 }
 0x4c9   : > { %v8483_v27 = vpop.f32.mrb[44].mxu1 }
 0x4ca   : > { %7106 = vst.msk [vmem:[#allocation2 + $0x18] sm:$0xff] %vm769_vm1, %v8483_v27  ;;  %v4484_v32 = vpop.f32.mrb[45].mxu1 }
 0x4cb   : > { %7105 = vst.msk [vmem:[#allocation2 + $0x10] sm:$0xff] %vm769_vm1, %v4484_v32 }
 0x4dd   : > { %v8497_v18 = vpop.f32.mrb[46].mxu1 }
 0x4de   : > { %7110 = vst.msk [vmem:[#allocation2 + $0x38] sm:$0xff] %vm769_vm1, %v8497_v18  ;;  %v4658_v35 = vpop.f32.mrb[47].mxu1  ;;  %v4306_v18 = vmul.f32 %v9667_v7, %v11523_v34 }
 0x4df   : > { %7109 = vst.msk [vmem:[#allocation2 + $0x30] sm:$0xff] %vm769_vm1, %v4658_v35 }
 0x4e0   : > { %v8490_v9 = vpop.f32.mrb[38].mxu0 }
 0x4e1   : > { %7108 = vst.msk [vmem:[#allocation2 + $0x28] sm:$0xff] %vm769_vm1, %v8490_v9  ;;  %v4571_v8 = vpop.f32.mrb[39].mxu0 }
 0x4e2   : > { %7107 = vst.msk [vmem:[#allocation2 + $0x20] sm:$0xff] %vm769_vm1, %v4571_v8 }
 0x4e4   : > { %v8504_v37 = vpop.f32.mrb[40].mxu0 }
 0x4e5   : > { %7112 = vst.msk [vmem:[#allocation2 + $0x48] sm:$0xff] %vm769_vm1, %v8504_v37  ;;  %v4745_v28 = vpop.f32.mrb[41].mxu0 }
 0x4e6   : > { %7111 = vst.msk [vmem:[#allocation2 + $0x40] sm:$0xff] %vm769_vm1, %v4745_v28  ;;  %v4175_v57 = vpop.xlane.xlu1 %4174  ;;  %v4309_v28 = vmul.f32 %v9669_v13, %v11534_v46 }
 0x4e7   : > { %9676 = vrcp.f32 %v4175_v57 }
 0x4e8   : > { %v8518_v11 = vpop.f32.mrb[42].mxu0  ;;  %9678 = vrcp.f32 %v11721_v40  ;;  %v9673_v40 = vpop.eup %9672 }
 0x4e9   : > { %7116 = vst.msk [vmem:[#allocation2 + $0x68] sm:$0xff] %vm769_vm1, %v8518_v11  ;;  %v4919_v39 = vpop.f32.mrb[43].mxu0  ;;  %v9675_v57 = vpop.eup %9674 }
 0x4ea   : > { %7115 = vst.msk [vmem:[#allocation2 + $0x60] sm:$0xff] %vm769_vm1, %v4919_v39  ;;  %v9396_v45 = vpop.permute.xlu1 %9395  ;;  %v4310_v46 = vmul.f32 %v9675_v57, %v11548_v30 }
 0x4eb   : > { %v4178_v33 = vpop.xlane.xlu0 %4177  ;;  %v9398_v25 = vunpack.i.h.bf16 %v9396_v45  ;;  %v9397_v55 = vunpack.i.l.bf16 %v9396_v45 }
 0x4ec   : > { %9680 = vrcp.f32 %v4178_v33 }
 0x4ed   : > { %v9022_v4 = vpack.c.bf16 %v9398_v25, %v9397_v55  ;;  %v8511_v21 = vpop.f32.mrb[48].mxu1  ;;  %v4308_v25 = vmul.f32 %v9671_v52, %v11536_v62 }
 0x4ee   : > { %7114 = vst.msk [vmem:[#allocation2 + $0x58] sm:$0xff] %vm769_vm1, %v8511_v21  ;;  %v4832_v22 = vpop.f32.mrb[49].mxu1 }
 0x4ef   : > { %v9391_v1 = vpop.permute.xlu0 %9390  ;;  %7113 = vst.msk [vmem:[#allocation2 + $0x50] sm:$0xff] %vm769_vm1, %v4832_v22  ;;  %9023 = vmatprep.subr.bf16.mxu0 %v9022_v4 }
 0x4f0   : > { %v9393_v56 = vunpack.i.h.bf16 %v9391_v1  ;;  %v9392_v38 = vunpack.i.l.bf16 %v9391_v1  ;;  %9025 = vmatpush3.bf16.msra.mxu0 %v9022_v4  ;;  %v4311_v1 = vmul.f32 %v9673_v40, %v11546_v2 }
 0x4f1   : > { %v9677_v34 = vpop.eup %9676 }
 0x4f2   : > { %v9018_v14 = vpack.c.bf16 %v9393_v56, %v9392_v38  ;;  %v9679_v4 = vpop.eup %9678  ;;  %v4313_v41 = vmul.f32 %v9677_v34, %v11594_v63 }
 0x4f3   : > { %8643 = vmatmul.mubr.msk.f32.vlgmr.msra.gmra.mrb[60].mxu0 %vm3614_vm3, %v4304_v19  ;;  %v4312_v49 = vmul.f32 %v9679_v4, %v11558_v53 }
 0x4f4   : > { %9019 = vmatprep.subr.bf16.mxu1 %v9018_v14  ;;  %8656 = vmatprep.mubr.msk.f32.mxu0 %vm3614_vm3, %v4307_v48 }
 0x4f5   : > { %9021 = vmatpush3.bf16.msra.mxu1 %v9018_v14 }
 0x4f6   : > { %v9681_v16 = vpop.eup %9680 }
 0x4f8   : > { %8636 = vmatmul.mubr.msk.f32.vlgmr.msra.gmra.mrb[66].mxu1 %vm3614_vm3, %v4302_v23 }
 0x4f9   : > { %8649 = vmatprep.mubr.msk.f32.mxu1 %vm3614_vm3, %v4305_v51  ;;  %v4314_v51 = vmul.f32 %v9681_v16, %v11598_v10  ;;  %v7381_v16 = vld [vmem:[%s12008_s4 + $0x18] sm:$0xff] }
 0x4fd   : > { %v8525_v5 = vpop.f32.mrb[50].mxu1 }
 0x4fe   : > { %7118 = vst.msk [vmem:[#allocation2 + $0x78] sm:$0xff] %vm769_vm1, %v8525_v5  ;;  %v5006_v15 = vpop.f32.mrb[51].mxu1 }
 0x4ff   : > { %7117 = vst.msk [vmem:[#allocation2 + $0x70] sm:$0xff] %vm769_vm1, %v5006_v15 }
 0x50c   : > { %v8532_v58 = vpop.f32.mrb[44].mxu0 }
 0x50d   : > { %7137 = vrot.lane.b32.xlu1 %v8532_v58, %s9759_s13  ;;  %v5093_v31 = vpop.f32.mrb[45].mxu0 }
 0x50e   : > { %7135 = vrot.lane.b32.xlu0 %v5093_v31, %s9759_s13 }
 0x511   : > { %v8539_v29 = vpop.f32.mrb[52].mxu1 }
 0x512   : > { %v5180_v59 = vpop.f32.mrb[53].mxu1  ;;  %7141 = vrot.lane.b32.xlu1 %v8539_v29, %s9759_s13 }
 0x513   : > { %7139 = vrot.lane.b32.xlu0 %v5180_v59, %s9759_s13 }
 0x51b   : > { %v4181_v12 = vpop.xlane.xlu1 %4180 }
 0x51c   : > { %9682 = vrcp.f32 %v4181_v12 }
 0x51f   : > { %v4187_v6 = vpop.xlane.xlu1 %4186 }
 0x520   : > { %v4184_v47 = vpop.xlane.xlu0 %4183  ;;  %9684 = vrcp.f32 %v4187_v6 }
 0x521   : > { %9686 = vrcp.f32 %v4184_v47 }
 0x523   : > { %v4190_v24 = vpop.xlane.xlu1 %4189 }
 0x524   : > { %v9401_v44 = vpop.permute.xlu0 %9400  ;;  %9688 = vrcp.f32 %v4190_v24 }
 0x525   : > { %v9403_v0 = vunpack.i.h.bf16 %v9401_v44  ;;  %v9402_v43 = vunpack.i.l.bf16 %v9401_v44 }
 0x526   : > { %v9683_v62 = vpop.eup %9682 }
 0x527   : > { %v9026_v54 = vpack.c.bf16 %v9403_v0, %v9402_v43  ;;  %v9406_v60 = vpop.permute.xlu1 %9405  ;;  %v4315_v63 = vmul.f32 %v9683_v62, %v11669_v26 }
 0x528   : > { %v9411_v50 = vpop.permute.xlu0 %9410  ;;  %v9408_v27 = vunpack.i.h.bf16 %v9406_v60  ;;  %v9407_v61 = vunpack.i.l.bf16 %v9406_v60 }
 0x529   : > { %v9413_v32 = vunpack.i.h.bf16 %v9411_v50  ;;  %v9412_v20 = vunpack.i.l.bf16 %v9411_v50  ;;  %9027 = vmatprep.subr.bf16.mxu1 %v9026_v54 }
 0x52a   : > { %9029 = vmatpush3.bf16.msra.mxu1 %v9026_v54  ;;  %v9030_v35 = vpack.c.bf16 %v9408_v27, %v9407_v61  ;;  %v9685_v2 = vpop.eup %9684 }
 0x52b   : > { %v9034_v9 = vpack.c.bf16 %v9413_v32, %v9412_v20  ;;  %v9421_v8 = vpop.permute.xlu1 %9420  ;;  %v9687_v15 = vpop.eup %9686  ;;  %v4317_v53 = vmul.f32 %v9685_v2, %v11673_v17 }
 0x52c   : > { %v9416_v37 = vpop.permute.xlu0 %9415  ;;  %v9423_v11 = vunpack.i.h.bf16 %v9421_v8  ;;  %v9422_v39 = vunpack.i.l.bf16 %v9421_v8  ;;  %9031 = vmatprep.subr.bf16.mxu0 %v9030_v35  ;;  %v4316_v10 = vmul.f32 %v9687_v15, %v11671_v3 }
 0x52d   : > { %v9418_v45 = vunpack.i.h.bf16 %v9416_v37  ;;  %8650 = vmatmul.mubr.msk.f32.vlgmr.msra.gmra.mrb[68].mxu1 %vm3614_vm3, %v4306_v18  ;;  %v9417_v33 = vunpack.i.l.bf16 %v9416_v37  ;;  %9035 = vmatprep.subr.bf16.mxu1 %v9034_v9 }
 0x52e   : > { %9033 = vmatpush3.bf16.msra.mxu0 %v9030_v35  ;;  %v9042_v55 = vpack.c.bf16 %v9423_v11, %v9422_v39  ;;  %9037 = vmatpush3.bf16.msra.mxu1 %v9034_v9  ;;  %v9689_v58 = vpop.eup %9688 }
 0x52f   : > { %8663 = vmatprep.mubr.msk.f32.mxu1 %vm3614_vm3, %v4309_v28  ;;  %v9038_v21 = vpack.c.bf16 %v9418_v45, %v9417_v33  ;;  %v9431_v42 = vpop.permute.xlu1 %9430  ;;  %v4318_v31 = vmul.f32 %v9689_v58, %v11682_v36 }
 0x530   : > { %v9426_v22 = vpop.permute.xlu0 %9425  ;;  %v9433_v56 = vunpack.i.h.bf16 %v9431_v42  ;;  %v9432_v38 = vunpack.i.l.bf16 %v9431_v42  ;;  %9043 = vmatprep.subr.bf16.mxu1 %v9042_v55  ;;  %v7379_v42 = vld [vmem:[%s12008_s4 + $0x8] sm:$0xff] }
 0x531   : > { %v9428_v19 = vunpack.i.h.bf16 %v9426_v22  ;;  %v9427_v14 = vunpack.i.l.bf16 %v9426_v22  ;;  %8657 = vmatmul.mubr.msk.f32.vlgmr.msra.gmra.mrb[62].mxu0 %vm3614_vm3, %v4308_v25  ;;  %8664 = vmatmul.mubr.msk.f32.vlgmr.msra.gmra.mrb[70].mxu1 %vm3614_vm3, %v4310_v46  ;;  %v7380_v22 = vld [vmem:[%s12008_s4 + $0x10] sm:$0xff] }
 0x532   : > { %9039 = vmatprep.subr.bf16.mxu0 %v9038_v21  ;;  %v9050_v30 = vpack.c.bf16 %v9433_v56, %v9432_v38  ;;  %8670 = vmatprep.mubr.msk.f32.mxu0 %vm3614_vm3, %v4311_v1  ;;  %v8546_v23 = vpop.f32.mrb[46].mxu0  ;;  %v9058_v56 = vpack.c.bf16 %v7381_v16, %v7380_v22 }
 0x533   : > { %v9046_v48 = vpack.c.bf16 %v9428_v19, %v9427_v14  ;;  %9041 = vmatpush3.bf16.msra.mxu0 %v9038_v21  ;;  %9045 = vmatpush3.bf16.msra.mxu1 %v9042_v55  ;;  %v5267_v5 = vpop.f32.mrb[47].mxu0  ;;  %v7378_v21 = vld [vmem:[%s12008_s4] sm:$0xff] }
 0x534   : > { %8677 = vmatprep.mubr.msk.f32.mxu1 %vm3614_vm3, %v4313_v41  ;;  %7145 = vrot.lane.b32.xlu1 %v8546_v23, %s9759_s13  ;;  %v9054_v1 = vpack.c.bf16 %v7379_v42, %v7378_v21 }
 0x535   : > { %9047 = vmatprep.subr.bf16.mxu0 %v9046_v48  ;;  %9051 = vmatprep.subr.bf16.mxu1 %v9050_v30 }
 0x536   : > { %8671 = vmatmul.mubr.msk.f32.vlgmr.msra.gmra.mrb[64].mxu0 %vm3614_vm3, %v4312_v49  ;;  %8678 = vmatmul.mubr.msk.f32.vlgmr.msra.gmra.mrb[72].mxu1 %vm3614_vm3, %v4314_v51 }
 0x537   : > { %7143 = vrot.lane.b32.xlu0 %v5267_v5, %s9759_s13  ;;  %9049 = vmatpush3.bf16.msra.mxu0 %v9046_v48 }
 0x538   : > { %8684 = vmatprep.mubr.msk.f32.mxu0 %vm3614_vm3, %v4315_v63  ;;  %9053 = vmatpush3.bf16.msra.mxu1 %v9050_v30 }
 0x539   : > { %8691 = vmatprep.mubr.msk.f32.mxu1 %vm3614_vm3, %v4317_v53  ;;  %9055 = vmatprep.subr.bf16.mxu0 %v9054_v1 }
 0x53a   : > { %8685 = vmatmul.mubr.msk.f32.vlgmr.msra.gmra.mrb[66].mxu0 %vm3614_vm3, %v4316_v10  ;;  %v8553_v26 = vpop.f32.mrb[54].mxu1 }
 0x53b   : > { %8692 = vmatmul.mubr.msk.f32.vlgmr.msra.gmra.mrb[74].mxu1 %vm3614_vm3, %v4318_v31  ;;  %7149 = vrot.lane.b32.xlu1 %v8553_v26, %s9759_s13  ;;  %v5354_v29 = vpop.f32.mrb[55].mxu1 }
 0x53c   : > { %7147 = vrot.lane.b32.xlu0 %v5354_v29, %s9759_s13  ;;  %9057 = vmatpush3.bf16.msra.mxu0 %v9054_v1 }
 0x53d   : > { %9059 = vmatprep.subr.bf16.mxu0 %v9058_v56 }
 0x53f   : > { %v8567_v17 = vpop.f32.mrb[56].mxu1 }
 0x540   : > { %v5528_v59 = vpop.f32.mrb[57].mxu1  ;;  %9061 = vmatpush3.bf16.msra.mxu0 %v9058_v56 }
 0x542   : > { %v8560_v12 = vpop.f32.mrb[48].mxu0 }
 0x543   : > { %7153 = vrot.lane.b32.xlu1 %v8560_v12, %s9759_s13  ;;  %v5441_v3 = vpop.f32.mrb[49].mxu0 }
 0x544   : > { %7151 = vrot.lane.b32.xlu0 %v5441_v3, %s9759_s13 }
 0x546   : > { %v8574_v6 = vpop.f32.mrb[50].mxu0 }
 0x547   : > { %7157 = vrot.lane.b32.xlu1 %v8567_v17, %s9759_s13  ;;  %v5615_v36 = vpop.f32.mrb[51].mxu0 }
 0x548   : > { %7155 = vrot.lane.b32.xlu0 %v5528_v59, %s9759_s13 }
 0x54b   : > { %v8581_v47 = vpop.f32.mrb[58].mxu1  ;;  %7161 = vrot.lane.b32.xlu1 %v8574_v6, %s9759_s13 }
 0x54c   : > { %v5702_v24 = vpop.f32.mrb[59].mxu1  ;;  %7159 = vrot.lane.b32.xlu0 %v5615_v36, %s9759_s13 }
 0x54e   : > { %v8588_v44 = vpop.f32.mrb[52].mxu0 }
 0x54f   : > { %v5789_v0 = vpop.f32.mrb[53].mxu0  ;;  %7165 = vrot.lane.b32.xlu1 %v8581_v47, %s9759_s13 }
 0x550   : > { %7163 = vrot.lane.b32.xlu0 %v5702_v24, %s9759_s13 }
 0x553   : > { %v8595_v43 = vpop.f32.mrb[60].mxu1  ;;  %7218 = vrot.lane.b32.xlu1 %v8588_v44, %s9760_s16 }
 0x554   : > { %v5876_v54 = vpop.f32.mrb[61].mxu1  ;;  %7216 = vrot.lane.b32.xlu0 %v5789_v0, %s9760_s16 }
 0x556   : > { %v8602_v7 = vpop.f32.mrb[54].mxu0 }
 0x557   : > { %v5963_v60 = vpop.f32.mrb[55].mxu0  ;;  %7222 = vrot.lane.b32.xlu1 %v8595_v43, %s9760_s16 }
 0x558   : > { %7220 = vrot.lane.b32.xlu0 %v5876_v54, %s9760_s16 }
 0x55b   : > { %v8609_v50 = vpop.f32.mrb[62].mxu1  ;;  %7226 = vrot.lane.b32.xlu1 %v8602_v7, %s9760_s16 }
 0x55c   : > { %v6050_v13 = vpop.f32.mrb[63].mxu1  ;;  %7224 = vrot.lane.b32.xlu0 %v5963_v60, %s9760_s16 }
 0x55f   : > { %7230 = vrot.lane.b32.xlu1 %v8609_v50, %s9760_s16 }
 0x560   : > { %7228 = vrot.lane.b32.xlu0 %v6050_v13, %s9760_s16 }
 0x566   : > { %v8616_v27 = vpop.f32.mrb[56].mxu0 }
 0x567   : > { %7234 = vrot.lane.b32.xlu1 %v8616_v27, %s9760_s16  ;;  %v6137_v61 = vpop.f32.mrb[57].mxu0 }
 0x568   : > { %7232 = vrot.lane.b32.xlu0 %v6137_v61, %s9760_s16 }
 0x57f   : > { %v7138_v32 = vpop.permute.xlu1 %7137 }
 0x580   : > { %7185 = vst.msk [vmem:[#allocation2 + $0x8] sm:$0xff] %vm7183_vm4, %v7138_v32  ;;  %v7136_v20 = vpop.permute.xlu0 %7135 }
 0x581   : > { %7184 = vst.msk [vmem:[#allocation2] sm:$0xff] %vm7183_vm4, %v7136_v20 }
 0x584   : > { %v7142_v52 = vpop.permute.xlu1 %7141 }
 0x585   : > { %7187 = vst.msk [vmem:[#allocation2 + $0x18] sm:$0xff] %vm7183_vm4, %v7142_v52  ;;  %v7140_v18 = vpop.permute.xlu0 %7139 }
 0x586   : > { %7186 = vst.msk [vmem:[#allocation2 + $0x10] sm:$0xff] %vm7183_vm4, %v7140_v18 }
 0x591   : > { %v8630_v35 = vpop.f32.mrb[58].mxu0 }
 0x592   : > { %v6311_v9 = vpop.f32.mrb[59].mxu0 }
 0x596   : > { %v8623_v40 = vpop.f32.mrb[64].mxu1 }
 0x597   : > { %7238 = vrot.lane.b32.xlu1 %v8623_v40, %s9760_s16  ;;  %v6224_v8 = vpop.f32.mrb[65].mxu1 }
 0x598   : > { %7236 = vrot.lane.b32.xlu0 %v6224_v8, %s9760_s16 }
 0x59b   : > { %7242 = vrot.lane.b32.xlu1 %v8630_v35, %s9760_s16 }
 0x59c   : > { %7240 = vrot.lane.b32.xlu0 %v6311_v9, %s9760_s16 }
 0x5a6   : > { %v7146_v37 = vpop.permute.xlu1 %7145 }
 0x5a7   : > { %7189 = vst.msk [vmem:[#allocation2 + $0x28] sm:$0xff] %vm7183_vm4, %v7146_v37 }
 0x5a9   : > { %v7144_v28 = vpop.permute.xlu0 %7143 }
 0x5aa   : > { %7188 = vst.msk [vmem:[#allocation2 + $0x20] sm:$0xff] %vm7183_vm4, %v7144_v28 }
 0x5ad   : > { %v7150_v57 = vpop.permute.xlu1 %7149 }
 0x5ae   : > { %7191 = vst.msk [vmem:[#allocation2 + $0x38] sm:$0xff] %vm7183_vm4, %v7150_v57  ;;  %v7148_v11 = vpop.permute.xlu0 %7147 }
 0x5af   : > { %7190 = vst.msk [vmem:[#allocation2 + $0x30] sm:$0xff] %vm7183_vm4, %v7148_v11 }
 0x5b5   : > { %v7154_v39 = vpop.permute.xlu1 %7153 }
 0x5b6   : > { %7193 = vst.msk [vmem:[#allocation2 + $0x48] sm:$0xff] %vm7183_vm4, %v7154_v39  ;;  %v7152_v45 = vpop.permute.xlu0 %7151 }
 0x5b7   : > { %7192 = vst.msk [vmem:[#allocation2 + $0x40] sm:$0xff] %vm7183_vm4, %v7152_v45 }
 0x5b9   : > { %v7158_v33 = vpop.permute.xlu1 %7157 }
 0x5ba   : > { %7195 = vst.msk [vmem:[#allocation2 + $0x58] sm:$0xff] %vm7183_vm4, %v7158_v33  ;;  %v7156_v34 = vpop.permute.xlu0 %7155 }
 0x5bb   : > { %7194 = vst.msk [vmem:[#allocation2 + $0x50] sm:$0xff] %vm7183_vm4, %v7156_v34 }
 0x5bd   : > { %v7162_v25 = vpop.permute.xlu1 %7161 }
 0x5be   : > { %7197 = vst.msk [vmem:[#allocation2 + $0x68] sm:$0xff] %vm7183_vm4, %v7162_v25  ;;  %v7160_v55 = vpop.permute.xlu0 %7159 }
 0x5bf   : > { %7196 = vst.msk [vmem:[#allocation2 + $0x60] sm:$0xff] %vm7183_vm4, %v7160_v55 }
 0x5c1   : > { %v7166_v4 = vpop.permute.xlu1 %7165 }
 0x5c2   : > { %7199 = vst.msk [vmem:[#allocation2 + $0x78] sm:$0xff] %vm7183_vm4, %v7166_v4  ;;  %v7164_v46 = vpop.permute.xlu0 %7163 }
 0x5c3   : > { %7198 = vst.msk [vmem:[#allocation2 + $0x70] sm:$0xff] %vm7183_vm4, %v7164_v46 }
 0x5c5   : > { %v7219_v38 = vpop.permute.xlu1 %7218 }
 0x5c6   : > { %v8644_v19 = vpop.f32.mrb[60].mxu0  ;;  %7266 = vst.msk [vmem:[#allocation2 + $0x8] sm:$0xff] %vm7264_vm5, %v7219_v38  ;;  %v7217_v62 = vpop.permute.xlu0 %7216 }
 0x5c7   : > { %v6485_v14 = vpop.f32.mrb[61].mxu0  ;;  %7265 = vst.msk [vmem:[#allocation2] sm:$0xff] %vm7264_vm5, %v7217_v62 }
 0x5c9   : > { %v7223_v41 = vpop.permute.xlu1 %7222 }
 0x5ca   : > { %7268 = vst.msk [vmem:[#allocation2 + $0x18] sm:$0xff] %vm7264_vm5, %v7223_v41  ;;  %v7221_v48 = vpop.permute.xlu0 %7220 }
 0x5cb   : > { %v8637_v30 = vpop.f32.mrb[66].mxu1  ;;  %7267 = vst.msk [vmem:[#allocation2 + $0x10] sm:$0xff] %vm7264_vm5, %v7221_v48 }
 0x5cc   : > { %7246 = vrot.lane.b32.xlu1 %v8637_v30, %s9760_s16  ;;  %v6398_v2 = vpop.f32.mrb[67].mxu1 }
 0x5cd   : > { %7244 = vrot.lane.b32.xlu0 %v6398_v2, %s9760_s16  ;;  %v7227_v49 = vpop.permute.xlu1 %7226  ;;  %s11917_s16 = scalar_lea.vmem [#allocation3], %s7679_s12 }
 0x5ce   : > { %7270 = vst.msk [vmem:[#allocation2 + $0x28] sm:$0xff] %vm7264_vm5, %v7227_v49  ;;  %v7225_v23 = vpop.permute.xlu0 %7224  ;;  %s7613_s18 = sshll.u32 %s11917_s16, 4  ;;  %s11954_s18 = int_to_ptr.vmem [resolvable:$true] %s7613_s18 }
 0x5cf   : > { %7269 = vst.msk [vmem:[#allocation2 + $0x20] sm:$0xff] %vm7264_vm5, %v7225_v23  ;;  %s9690_s28 = scalar_lea.vmem %s11954_s18, 2048  ;;  %p9697_p0 = scmp.lt.s32.totalorder %s11954_s18, %s9695_s9 }
 0x5d0   : > { %7299 = vrot.lane.b32.xlu1 %v8644_v19, %s9761_s10  ;;  %p9691_p11 = scmp.ne.s32.totalorder %s11954_s18, %s9690_s28 }
 0x5d1   : > { %7297 = vrot.lane.b32.xlu0 %v6485_v14, %s9761_s10  ;;  %v7231_v51 = vpop.permute.xlu1 %7230  ;;  %v7892_v14 = vld [vmem:[%s12009_s5] ss:$0 sm:$0xff] }
 0x5d2   : > { %7272 = vst.msk [vmem:[#allocation2 + $0x38] sm:$0xff] %vm7264_vm5, %v7231_v51  ;;  %v7229_v5 = vpop.permute.xlu0 %7228  ;;  %p9692_p12 = pnand %p9691_p11, %p9837_p5 }
 0x5d3   : > { %7271 = vst.msk [vmem:[#allocation2 + $0x30] sm:$0xff] %vm7264_vm5, %v7229_v5 }
 0x5d4   : > { %p9693_p13 = pneg %p9692_p12 }
 0x5d9   : > { %v7235_v15 = vpop.permute.xlu1 %7234 }
 0x5da   : > { %7274 = vst.msk [vmem:[#allocation2 + $0x48] sm:$0xff] %vm7264_vm5, %v7235_v15  ;;  %v7233_v63 = vpop.permute.xlu0 %7232 }
 0x5db   : > { %7273 = vst.msk [vmem:[#allocation2 + $0x40] sm:$0xff] %vm7264_vm5, %v7233_v63 }
 0x600   : > { %v8651_v58 = vpop.f32.mrb[68].mxu1 }
 0x601   : > { %7303 = vrot.lane.b32.xlu1 %v8651_v58, %s9761_s10  ;;  %v6572_v53 = vpop.f32.mrb[69].mxu1 }
 0x602   : > { %7301 = vrot.lane.b32.xlu0 %v6572_v53, %s9761_s10 }
 0x604   : > { %v8658_v10 = vpop.f32.mrb[62].mxu0  ;;  %v8665_v31 = vpop.f32.mrb[70].mxu1 }
 0x605   : > { %v6659_v26 = vpop.f32.mrb[63].mxu0  ;;  %7307 = vrot.lane.b32.xlu1 %v8658_v10, %s9761_s10  ;;  %v6746_v29 = vpop.f32.mrb[71].mxu1 }
 0x606   : > { %7305 = vrot.lane.b32.xlu0 %v6659_v26, %s9761_s10 }
 0x609   : > { %v8672_v17 = vpop.f32.mrb[64].mxu0  ;;  %v7239_v59 = vpop.permute.xlu1 %7238  ;;  %7311 = vrot.lane.b32.xlu1 %v8665_v31, %s9761_s10 }
 0x60a   : > { %v8679_v12 = vpop.f32.mrb[72].mxu1  ;;  %v6833_v3 = vpop.f32.mrb[65].mxu0  ;;  %7276 = vst.msk [vmem:[#allocation2 + $0x58] sm:$0xff] %vm7264_vm5, %v7239_v59  ;;  %7309 = vrot.lane.b32.xlu0 %v6746_v29, %s9761_s10 }
 0x60b   : > { %v6920_v6 = vpop.f32.mrb[73].mxu1  ;;  %v7237_v36 = vpop.permute.xlu0 %7236 }
 0x60c   : > { %7275 = vst.msk [vmem:[#allocation2 + $0x50] sm:$0xff] %vm7264_vm5, %v7237_v36 }
 0x60d   : > { %v7243_v47 = vpop.permute.xlu1 %7242  ;;  %7315 = vrot.lane.b32.xlu1 %v8672_v17, %s9761_s10  ;;  %v8686_v24 = vpop.f32.mrb[66].mxu0 }
 0x60e   : > { %7278 = vst.msk [vmem:[#allocation2 + $0x68] sm:$0xff] %vm7264_vm5, %v7243_v47  ;;  %7313 = vrot.lane.b32.xlu0 %v6833_v3, %s9761_s10  ;;  %v8693_v44 = vpop.f32.mrb[74].mxu1  ;;  %v7007_v0 = vpop.f32.mrb[67].mxu0 }
 0x60f   : > { %v7094_v43 = vpop.f32.mrb[75].mxu1  ;;  %v7241_v54 = vpop.permute.xlu0 %7240 }
 0x610   : > { %7277 = vst.msk [vmem:[#allocation2 + $0x60] sm:$0xff] %vm7264_vm5, %v7241_v54 }
 0x611   : > { %7319 = vrot.lane.b32.xlu1 %v8679_v12, %s9761_s10 }
 0x612   : > { %7317 = vrot.lane.b32.xlu0 %v6920_v6, %s9761_s10 }
 0x615   : > { %7323 = vrot.lane.b32.xlu1 %v8686_v24, %s9761_s10 }
 0x616   : > { %7321 = vrot.lane.b32.xlu0 %v7007_v0, %s9761_s10 }
 0x619   : > { %7327 = vrot.lane.b32.xlu1 %v8693_v44, %s9761_s10 }
 0x61a   : > { %7325 = vrot.lane.b32.xlu0 %v7094_v43, %s9761_s10  ;;  %s9696_s10 = scalar_lea.vmem %s9695_s9, 4096 }
 0x61b   : > { %p9698_p1 = scmp.lt.s32.totalorder %s9696_s10, %s9690_s28 }
 0x61d   : > { %p9699_p2 = por %p9698_p1, %p9697_p0 }
 0x61f   : > { %p9700_p3 = pnand %p9699_p2, %p9693_p13 }
 0x63e   : > { %v7247_v7 = vpop.permute.xlu1 %7246 }
 0x63f   : > { %7280 = vst.msk [vmem:[#allocation2 + $0x78] sm:$0xff] %vm7264_vm5, %v7247_v7  ;;  %v7245_v60 = vpop.permute.xlu0 %7244 }
 0x640   : > { %7279 = vst.msk [vmem:[#allocation2 + $0x70] sm:$0xff] %vm7264_vm5, %v7245_v60 }
 0x642   : > { %v7300_v50 = vpop.permute.xlu1 %7299 }
 0x643   : > { %7347 = vst.msk [vmem:[#allocation2 + $0x8] sm:$0xff] %vm7345_vm6, %v7300_v50  ;;  %v7298_v13 = vpop.permute.xlu0 %7297 }
 0x644   : > { %7346 = vst.msk [vmem:[#allocation2] sm:$0xff] %vm7345_vm6, %v7298_v13 }
 0x64a   : > { %v7363_v61 = vld [vmem:[#allocation2 + $0x8] sm:$0xff] }
 0x64b   : > { %v7362_v27 = vld [vmem:[#allocation2] sm:$0xff] }
 0x64c   : > { %8702 = vmatprep.mubr.msk.f32.mxu0 %vm283_vm0, %v7362_v27 }
 0x64d   : > { %8703 = vmatmul.mubr.msk.f32.vlgmr.msra.gmra.mrb[68].mxu0 %vm283_vm0, %v7363_v61 }
 0x673   : > { %v7304_v32 = vpop.permute.xlu1 %7303 }
 0x674   : > { %7349 = vst.msk [vmem:[#allocation2 + $0x18] sm:$0xff] %vm7345_vm6, %v7304_v32  ;;  %v7302_v20 = vpop.permute.xlu0 %7301 }
 0x675   : > { %7348 = vst.msk [vmem:[#allocation2 + $0x10] sm:$0xff] %vm7345_vm6, %v7302_v20 }
 0x677   : > { %v7308_v52 = vpop.permute.xlu1 %7307 }
 0x678   : > { %7351 = vst.msk [vmem:[#allocation2 + $0x28] sm:$0xff] %vm7345_vm6, %v7308_v52  ;;  %v7306_v18 = vpop.permute.xlu0 %7305 }
 0x679   : > { %7350 = vst.msk [vmem:[#allocation2 + $0x20] sm:$0xff] %vm7345_vm6, %v7306_v18 }
 0x67b   : > { %v7312_v35 = vpop.permute.xlu1 %7311  ;;  %v7365_v8 = vld [vmem:[#allocation2 + $0x18] sm:$0xff] }
 0x67c   : > { %7353 = vst.msk [vmem:[#allocation2 + $0x38] sm:$0xff] %vm7345_vm6, %v7312_v35  ;;  %v7310_v9 = vpop.permute.xlu0 %7309  ;;  %v7364_v40 = vld [vmem:[#allocation2 + $0x10] sm:$0xff] }
 0x67d   : > { %7352 = vst.msk [vmem:[#allocation2 + $0x30] sm:$0xff] %vm7345_vm6, %v7310_v9  ;;  %8705 = vmatprep.mubr.msk.f32.mxu0 %vm283_vm0, %v7364_v40 }
 0x67e   : > { %8706 = vmatmul.mubr.msk.f32.gmra.mrb[70].mxu0 %vm283_vm0, %v7365_v8 }
 0x67f   : > { %v7316_v37 = vpop.permute.xlu1 %7315  ;;  %v7367_v11 = vld [vmem:[#allocation2 + $0x28] sm:$0xff] }
 0x680   : > { %7355 = vst.msk [vmem:[#allocation2 + $0x48] sm:$0xff] %vm7345_vm6, %v7316_v37  ;;  %v7314_v28 = vpop.permute.xlu0 %7313  ;;  %v7366_v57 = vld [vmem:[#allocation2 + $0x20] sm:$0xff] }
 0x681   : > { %7354 = vst.msk [vmem:[#allocation2 + $0x40] sm:$0xff] %vm7345_vm6, %v7314_v28  ;;  %8708 = vmatprep.mubr.msk.f32.mxu0 %vm283_vm0, %v7366_v57 }
 0x682   : > { %8709 = vmatmul.mubr.msk.f32.gmra.mrb[72].mxu0 %vm283_vm0, %v7367_v11 }
 0x683   : > { %v7320_v39 = vpop.permute.xlu1 %7319  ;;  %v7369_v34 = vld [vmem:[#allocation2 + $0x38] sm:$0xff] }
 0x684   : > { %7357 = vst.msk [vmem:[#allocation2 + $0x58] sm:$0xff] %vm7345_vm6, %v7320_v39  ;;  %v7318_v45 = vpop.permute.xlu0 %7317  ;;  %v7368_v33 = vld [vmem:[#allocation2 + $0x30] sm:$0xff] }
 0x685   : > { %7356 = vst.msk [vmem:[#allocation2 + $0x50] sm:$0xff] %vm7345_vm6, %v7318_v45  ;;  %8711 = vmatprep.mubr.msk.f32.mxu0 %vm283_vm0, %v7368_v33 }
 0x686   : > { %8712 = vmatmul.mubr.msk.f32.gmra.mrb[74].mxu0 %vm283_vm0, %v7369_v34 }
 0x687   : > { %v7324_v25 = vpop.permute.xlu1 %7323  ;;  %v7371_v46 = vld [vmem:[#allocation2 + $0x48] sm:$0xff] }
 0x688   : > { %7359 = vst.msk [vmem:[#allocation2 + $0x68] sm:$0xff] %vm7345_vm6, %v7324_v25  ;;  %v7322_v55 = vpop.permute.xlu0 %7321  ;;  %v7370_v4 = vld [vmem:[#allocation2 + $0x40] sm:$0xff] }
 0x689   : > { %7358 = vst.msk [vmem:[#allocation2 + $0x60] sm:$0xff] %vm7345_vm6, %v7322_v55  ;;  %8714 = vmatprep.mubr.msk.f32.mxu0 %vm283_vm0, %v7370_v4 }
 0x68a   : > { %8715 = vmatmul.mubr.msk.f32.gmra.mrb[76].mxu0 %vm283_vm0, %v7371_v46 }
 0x68b   : > { %v7328_v21 = vpop.permute.xlu1 %7327  ;;  %v7373_v1 = vld [vmem:[#allocation2 + $0x58] sm:$0xff] }
 0x68c   : > { %7361 = vst.msk [vmem:[#allocation2 + $0x78] sm:$0xff] %vm7345_vm6, %v7328_v21  ;;  %v7326_v42 = vpop.permute.xlu0 %7325  ;;  %v7372_v22 = vld [vmem:[#allocation2 + $0x50] sm:$0xff] }
 0x68d   : > { %7360 = vst.msk [vmem:[#allocation2 + $0x70] sm:$0xff] %vm7345_vm6, %v7326_v42  ;;  %8717 = vmatprep.mubr.msk.f32.mxu0 %vm283_vm0, %v7372_v22 }
 0x68e   : > { %8718 = vmatmul.mubr.msk.f32.gmra.mrb[78].mxu0 %vm283_vm0, %v7373_v1 }
 0x68f   : > { %v7375_v56 = vld [vmem:[#allocation2 + $0x68] sm:$0xff] }
 0x690   : > { %v7374_v16 = vld [vmem:[#allocation2 + $0x60] sm:$0xff] }
 0x691   : > { %8720 = vmatprep.mubr.msk.f32.mxu0 %vm283_vm0, %v7374_v16 }
 0x692   : > { %8721 = vmatmul.mubr.msk.f32.gmra.mrb[80].mxu0 %vm283_vm0, %v7375_v56 }
 0x693   : > { %v7377_v19 = vld [vmem:[#allocation2 + $0x78] sm:$0xff] }
 0x694   : > { %v7376_v38 = vld [vmem:[#allocation2 + $0x70] sm:$0xff] }
 0x695   : > { %8723 = vmatprep.mubr.msk.f32.mxu0 %vm283_vm0, %v7376_v38 }
 0x696   : > { %8724 = vmatmul.mubr.msk.f32.gmra.mrb[82].mxu0 %vm283_vm0, %v7377_v19 }
 0x720   : > { %v8704_v62 = vpop.f32.mrb[68].mxu0 }
 0x721   : > { %v7509_v41 = vadd.f32 %v8704_v62, %v7892_v14  ;;  %v7503_v30 = vpop.f32.mrb[69].mxu0 }
 0x722   : > { %v7504_v48 = vadd.f32 %v7892_v14, %v7503_v30 }
 0x723   : > { %7583 = vst.msk [vmem:[%s11917_s16 + $0x8] sm:$0xff] %vm283_vm0, %v7509_v41 }
 0x724   : > { %7582 = vst.msk [vmem:[%s11917_s16] sm:$0xff] %vm283_vm0, %v7504_v48 }
 0x751   : > { %v8707_v2 = vpop.f32.mrb[70].mxu0 }
 0x752   : > { %v7519_v49 = vadd.f32 %v8707_v2, %v7892_v14  ;;  %v7513_v23 = vpop.f32.mrb[71].mxu0 }
 0x753   : > { %v7514_v51 = vadd.f32 %v7892_v14, %v7513_v23 }
 0x754   : > { %7585 = vst.msk [vmem:[%s11917_s16 + $0x18] sm:$0xff] %vm283_vm0, %v7519_v49 }
 0x755   : > { %7584 = vst.msk [vmem:[%s11917_s16 + $0x10] sm:$0xff] %vm283_vm0, %v7514_v51  ;;  %v8710_v5 = vpop.f32.mrb[72].mxu0 }
 0x756   : > { %v7529_v15 = vadd.f32 %v8710_v5, %v7892_v14  ;;  %v7523_v63 = vpop.f32.mrb[73].mxu0 }
 0x757   : > { %v7524_v58 = vadd.f32 %v7892_v14, %v7523_v63 }
 0x758   : > { %7587 = vst.msk [vmem:[%s11917_s16 + $0x28] sm:$0xff] %vm283_vm0, %v7529_v15 }
 0x759   : > { %7586 = vst.msk [vmem:[%s11917_s16 + $0x20] sm:$0xff] %vm283_vm0, %v7524_v58  ;;  %v8713_v53 = vpop.f32.mrb[74].mxu0 }
 0x75a   : > { %v7539_v10 = vadd.f32 %v8713_v53, %v7892_v14  ;;  %v7533_v31 = vpop.f32.mrb[75].mxu0 }
 0x75b   : > { %v7534_v26 = vadd.f32 %v7892_v14, %v7533_v31 }
 0x75c   : > { %7589 = vst.msk [vmem:[%s11917_s16 + $0x38] sm:$0xff] %vm283_vm0, %v7539_v10 }
 0x75d   : > { %7588 = vst.msk [vmem:[%s11917_s16 + $0x30] sm:$0xff] %vm283_vm0, %v7534_v26  ;;  %v8716_v29 = vpop.f32.mrb[76].mxu0 }
 0x75e   : > { %v7549_v17 = vadd.f32 %v8716_v29, %v7892_v14  ;;  %v7543_v59 = vpop.f32.mrb[77].mxu0 }
 0x75f   : > { %v7544_v12 = vadd.f32 %v7892_v14, %v7543_v59 }
 0x760   : > { %7591 = vst.msk [vmem:[%s11917_s16 + $0x48] sm:$0xff] %vm283_vm0, %v7549_v17 }
 0x761   : > { %7590 = vst.msk [vmem:[%s11917_s16 + $0x40] sm:$0xff] %vm283_vm0, %v7544_v12  ;;  %v8719_v3 = vpop.f32.mrb[78].mxu0 }
 0x762   : > { %v7559_v6 = vadd.f32 %v8719_v3, %v7892_v14  ;;  %v7553_v36 = vpop.f32.mrb[79].mxu0 }
 0x763   : > { %v7554_v47 = vadd.f32 %v7892_v14, %v7553_v36 }
 0x764   : > { %7593 = vst.msk [vmem:[%s11917_s16 + $0x58] sm:$0xff] %vm283_vm0, %v7559_v6 }
 0x765   : > { %7592 = vst.msk [vmem:[%s11917_s16 + $0x50] sm:$0xff] %vm283_vm0, %v7554_v47  ;;  %v8722_v24 = vpop.f32.mrb[80].mxu0 }
 0x766   : > { %v7569_v44 = vadd.f32 %v8722_v24, %v7892_v14  ;;  %v7563_v0 = vpop.f32.mrb[81].mxu0 }
 0x767   : > { %v7564_v43 = vadd.f32 %v7892_v14, %v7563_v0 }
 0x768   : > { %7595 = vst.msk [vmem:[%s11917_s16 + $0x68] sm:$0xff] %vm283_vm0, %v7569_v44 }
 0x769   : > { %7594 = vst.msk [vmem:[%s11917_s16 + $0x60] sm:$0xff] %vm283_vm0, %v7564_v43  ;;  %v8725_v54 = vpop.f32.mrb[82].mxu0 }
 0x76a   : > { %v7579_v7 = vadd.f32 %v8725_v54, %v7892_v14  ;;  %v7573_v60 = vpop.f32.mrb[83].mxu0 }
 0x76b   : > { %v7574_v50 = vadd.f32 %v7892_v14, %v7573_v60 }
 0x76c   : > { %7597 = vst.msk [vmem:[%s11917_s16 + $0x78] sm:$0xff] %vm283_vm0, %v7579_v7 }
 0x76d   : > { %7596 = vst.msk [vmem:[%s11917_s16 + $0x70] sm:$0xff] %vm283_vm0, %v7574_v50 }
 0x76e   : > { %9703 = shalt.err (!%p9700_p3)
}
 0x76f   : > { %s9704_s11 = scalar_lea.hbm %s11952_s26, 2048  ;;  %s9708_s15 = scalar_lea.hbm %s12010_s6, 8192 }
 0x770   : > { %p9705_p4 = scmp.ne.s32.totalorder %s11952_s26, %s9704_s11  ;;  %p9709_p9 = scmp.lt.u32.totalorder %s11952_s26, %s12010_s6 }
 0x771   : > { %p9710_p10 = scmp.lt.u32.totalorder %s9708_s15, %s9704_s11  ;;  %p9712_p12 = scmp.lt.u32.totalorder %s9704_s11, %s11952_s26 }
 0x772   : > { %p9706_p7 = pnand %p9705_p4, %p9837_p5 }
 0x773   : > { %p9711_p11 = por %p9710_p10, %p9709_p9 }
 0x774   : > { %p9707_p8 = pneg %p9706_p7 }
 0x775   : > { %p9713_p13 = por %p9712_p12, %p9711_p11 }
 0x777   : > { %p9714_p0 = pnand %p9713_p13, %p9707_p8 }
 0x779   : > { %9717 = shalt.err (!%p9714_p0)
}
 0x77a   : > { %s9763_s19 = smov 128  }
 0x77b   : > { %9066 = dma.vmem_to_hbm [thread:$0]  (%p9837_p5), %s11954_s18, 2048, %s11952_s26, %s11962_s25, %s9763_s19, %s9763_s19, %s9759_s13  }
 0x77c PF: > { %p9072_p1 = scmp.ge.s32.totalorder %s9752_s24, 2  ;;  %s7628_s20 = sand.u32 1, %s9740_s21  }
 0x77d   : > { %s7629_s28 = scalar_lea.sflag [#allocation4], %s7628_s20 }
 0x77e   : > { %p9069_p2 = pnand %p9072_p1, %p9841_p6 }
 0x780   : > { %9735 = dma.done.wait (!%p9069_p2), %s7629_s28, 2048  }
 0x781   : > { %9737 = vsyncadd (!%p9069_p2), %s7629_s28, 4294965248  ;;  %p16_p3 = scmp.ge.s32.totalorder %s9824_s27, 6   ;;  %s12183_s21 = smov %s9744_s22 }
 0x782   : > { %s12184_s22 = smov %s9748_s23  ;;  %s12185_s23 = smov %s9835_s30 }
 0x783   : > { %s12186_s24 = smov %s9824_s27  ;;  %18 = sbr.rel (!%p16_p3) target bundleno = 3 (0x3), region = 79 }
 0x78a   :  { %7634 = vsyncpa [#allocation4], 1 }
 0x78b   :  { %7636 = vsyncpa [#allocation4 + $0x1], 1 }

</bundles_post_ra>
